<compile_context>
chip_gen: v7x
topology: tpu7x:2x2x1
jax: 0.10.0
libtpu: 0.0.40
codegen_flags: <defaults>
</compile_context>

<pallas_src>
import jax
import jax.numpy as jnp
from jax import lax
from jax.experimental import pallas as pl
from jax.experimental.pallas import tpu as pltpu


def conv_pool_kernel(x_ref, w1_ref, b1_ref, w2_ref, b2_ref,          # inputs
                     before_ref, pooled_ref, sum_ref, sq_ref,         # outputs (streamed)
                     xpad_ref, y1pad_ref):                            # scratch
    """One grid step = one image: conv->relu->conv->relu, raw maxpool, BN partials.

    x_ref      : (1, H, W, Cin)   f32, current image
    w1_ref     : (9, Cin, Cout)   bf16, tap index = 3*ky + kx
    w2_ref     : (9, Cout, Cout)  bf16
    b1_ref/b2_ref : (1, Cout)     f32
    before_ref : (1, H, W, Cout)        raw pre-BN activations (this image)
    pooled_ref : (1, H//2, W//2, Cout)  raw maxpool of pre-BN activations
    sum_ref/sq_ref : (1, 1, Cout)       per-image BN partial sums
    xpad_ref   : (H+2, W+2, Cin)  f32 padded input scratch
    y1pad_ref  : (H+2, W+2, Cout) f32 padded conv1-output scratch
    """
    _, H, W, Cin = x_ref.shape
    Cout = w1_ref.shape[-1]
    HW = H * W

    # --- re-zero padded-scratch borders every step (cheap; keeps "parallel"/megacore
    #     splitting correct, since a pl.when(n==0) init would only touch one core's scratch)
    xpad_ref[pl.ds(0, 1)] = jnp.zeros((1, W + 2, Cin), jnp.float32)
    xpad_ref[pl.ds(H + 1, 1)] = jnp.zeros((1, W + 2, Cin), jnp.float32)
    xpad_ref[pl.ds(1, H), pl.ds(0, 1)] = jnp.zeros((H, 1, Cin), jnp.float32)
    xpad_ref[pl.ds(1, H), pl.ds(W + 1, 1)] = jnp.zeros((H, 1, Cin), jnp.float32)
    y1pad_ref[pl.ds(0, 1)] = jnp.zeros((1, W + 2, Cout), jnp.float32)
    y1pad_ref[pl.ds(H + 1, 1)] = jnp.zeros((1, W + 2, Cout), jnp.float32)
    y1pad_ref[pl.ds(1, H), pl.ds(0, 1)] = jnp.zeros((H, 1, Cout), jnp.float32)
    y1pad_ref[pl.ds(1, H), pl.ds(W + 1, 1)] = jnp.zeros((H, 1, Cout), jnp.float32)

    # --- stage current image into the padded interior ---------------------------
    xpad_ref[pl.ds(1, H), pl.ds(1, W)] = x_ref[0]

    # --- conv1 + ReLU: 9 shifted-view taps, bf16 MXU operands, f32 accumulation --
    acc1 = jnp.zeros((HW, Cout), jnp.float32)
    for ky in range(3):
        for kx in range(3):
            tap = xpad_ref[pl.ds(ky, H), pl.ds(kx, W)].reshape(HW, Cin)
            acc1 = acc1 + jnp.dot(tap.astype(jnp.bfloat16), w1_ref[3 * ky + kx],
                                  preferred_element_type=jnp.float32)
    y1 = jnp.maximum(acc1 + b1_ref[...], 0.0)                      # (HW, Cout) f32
    y1pad_ref[pl.ds(1, H), pl.ds(1, W)] = y1.reshape(H, W, Cout)

    # --- conv2 + ReLU ------------------------------------------------------------
    acc2 = jnp.zeros((HW, Cout), jnp.float32)
    for ky in range(3):
        for kx in range(3):
            tap = y1pad_ref[pl.ds(ky, H), pl.ds(kx, W)].reshape(HW, Cout)
            acc2 = acc2 + jnp.dot(tap.astype(jnp.bfloat16), w2_ref[3 * ky + kx],
                                  preferred_element_type=jnp.float32)
    y2 = jnp.maximum(acc2 + b2_ref[...], 0.0)                      # raw pre-BN (HW, Cout)

    # --- stream raw before_pool + per-image BN partial statistics ----------------
    before_ref[0] = y2.reshape(H, W, Cout)
    sum_ref[0] = jnp.sum(y2, axis=0, keepdims=True)
    sq_ref[0] = jnp.sum(y2 * y2, axis=0, keepdims=True)

    # --- 2x2/stride-2 maxpool on RAW y2 (BN affine applied afterwards, pass 2) ---
    y2p = y2.reshape(H // 2, 2, W, Cout)
    rmax = jnp.maximum(y2p[:, 0], y2p[:, 1])                       # (H//2, W, Cout)
    cp = rmax.reshape(H // 2, W // 2, 2, Cout)
    pooled_ref[0] = jnp.maximum(cp[:, :, 0], cp[:, :, 1])          # (H//2, W//2, Cout)


def bn_affine_kernel(mean_ref, inv_ref, braw_ref, praw_ref, bout_ref, pout_ref):
    """Pass 2: per-channel affine (x - mean) * inv_std on both streamed tensors."""
    mean = mean_ref[...]            # (1, Cout)
    inv = inv_ref[...]              # (1, Cout)
    bout_ref[...] = (braw_ref[...] - mean) * inv
    pout_ref[...] = (praw_ref[...] - mean) * inv


@jax.jit
def downconv_forward(x_nchw, w1_oihw, b1, w2_oihw, b2):
    """Wrapper: NCHW in / NCHW out (matches the PyTorch module, eps=1e-5)."""
    N, Cin, H, W = x_nchw.shape
    Cout = w1_oihw.shape[0]
    assert H % 2 == 0 and W % 2 == 0
    eps = 1e-5

    # NCHW -> NHWC (channels on the lane dim); in-kernel zero padding.
    x = jnp.transpose(x_nchw, (0, 2, 3, 1)).astype(jnp.float32)

    # (Cout, Cin, 3, 3) -> (9, Cin, Cout); tap index = 3*ky + kx. bf16 MXU operands.
    w1_k = jnp.transpose(w1_oihw, (2, 3, 1, 0)).reshape(9, Cin, Cout).astype(jnp.bfloat16)
    w2_k = jnp.transpose(w2_oihw, (2, 3, 1, 0)).reshape(9, Cout, Cout).astype(jnp.bfloat16)
    b1_k = b1.reshape(1, Cout).astype(jnp.float32)
    b2_k = b2.reshape(1, Cout).astype(jnp.float32)

    vmem_cap = 48 * 1024 * 1024   # generation-safe (<= v7x 64 MiB physical)

    # ---------------- Pass 1: conv -> relu -> conv -> relu, raw pool, BN partials
    before_raw, pooled_raw, psum, psq = pl.pallas_call(
        conv_pool_kernel,
        out_shape=(
            jax.ShapeDtypeStruct((N, H, W, Cout), jnp.float32),
            jax.ShapeDtypeStruct((N, H // 2, W // 2, Cout), jnp.float32),
            jax.ShapeDtypeStruct((N, 1, Cout), jnp.float32),
            jax.ShapeDtypeStruct((N, 1, Cout), jnp.float32),
        ),
        grid_spec=pltpu.PrefetchScalarGridSpec(
            num_scalar_prefetch=0,
            grid=(N,),
            in_specs=[
                pl.BlockSpec((1, H, W, Cin), lambda n: (n, 0, 0, 0)),     # streamed image
                pl.BlockSpec((9, Cin, Cout), lambda n: (0, 0, 0)),        # weights resident
                pl.BlockSpec((1, Cout), lambda n: (0, 0)),
                pl.BlockSpec((9, Cout, Cout), lambda n: (0, 0, 0)),
                pl.BlockSpec((1, Cout), lambda n: (0, 0)),
            ],
            out_specs=(
                pl.BlockSpec((1, H, W, Cout), lambda n: (n, 0, 0, 0)),        # streamed
                pl.BlockSpec((1, H // 2, W // 2, Cout), lambda n: (n, 0, 0, 0)),
                pl.BlockSpec((1, 1, Cout), lambda n: (n, 0, 0)),
                pl.BlockSpec((1, 1, Cout), lambda n: (n, 0, 0)),
            ),
            scratch_shapes=[
                pltpu.VMEM((H + 2, W + 2, Cin), jnp.float32),     # padded input
                pltpu.VMEM((H + 2, W + 2, Cout), jnp.float32),    # padded conv1 output
            ],
        ),
        compiler_params=pltpu.CompilerParams(
            dimension_semantics=("parallel",),            # no cross-step coupling -> megacore OK
            vmem_limit_bytes=vmem_cap),
    )(x, w1_k, b1_k, w2_k, b2_k)

    # ---------------- tiny global BN statistics (plain JAX) ----------------------
    # TODO(synk): E[x^2]-E[x]^2 in f32; switch to Welford/two-pass for very large N*H*W.
    cnt = float(N * H * W)
    mean = jnp.sum(psum, axis=0) / cnt                    # (1, Cout)
    var = jnp.sum(psq, axis=0) / cnt - mean * mean        # biased (training-mode) variance
    inv = lax.rsqrt(var + eps)                            # (1, Cout), > 0

    # ---------------- Pass 2: streamed per-channel affine ------------------------
    before, pooled = pl.pallas_call(
        bn_affine_kernel,
        out_shape=(
            jax.ShapeDtypeStruct((N, H, W, Cout), jnp.float32),
            jax.ShapeDtypeStruct((N, H // 2, W // 2, Cout), jnp.float32),
        ),
        grid_spec=pltpu.PrefetchScalarGridSpec(
            num_scalar_prefetch=0,
            grid=(N,),
            in_specs=[
                pl.BlockSpec((1, Cout), lambda n: (0, 0)),
                pl.BlockSpec((1, Cout), lambda n: (0, 0)),
                pl.BlockSpec((1, H, W, Cout), lambda n: (n, 0, 0, 0)),
                pl.BlockSpec((1, H // 2, W // 2, Cout), lambda n: (n, 0, 0, 0)),
            ],
            out_specs=(
                pl.BlockSpec((1, H, W, Cout), lambda n: (n, 0, 0, 0)),
                pl.BlockSpec((1, H // 2, W // 2, Cout), lambda n: (n, 0, 0, 0)),
            ),
        ),
        compiler_params=pltpu.CompilerParams(
            dimension_semantics=("parallel",),
            vmem_limit_bytes=vmem_cap),
    )(mean, inv, before_raw, pooled_raw)

    # back to NCHW (module returns (pooled, before_pool))
    pooled_nchw = jnp.transpose(pooled, (0, 3, 1, 2))
    before_nchw = jnp.transpose(before, (0, 3, 1, 2))
    return pooled_nchw, before_nchw


if __name__ == "__main__":
    N, Cin, Cout, H, W = 2, 4, 8, 16, 16

    key = jax.random.PRNGKey(0)
    k1, k2, k3, k4, k5 = jax.random.split(key, 5)
    x = jax.random.normal(k1, (N, Cin, H, W), jnp.float32)
    w1 = jax.random.normal(k2, (Cout, Cin, 3, 3), jnp.float32) * 0.1
    b1 = jax.random.normal(k3, (Cout,), jnp.float32) * 0.1
    w2 = jax.random.normal(k4, (Cout, Cout, 3, 3), jnp.float32) * 0.1
    b2 = jax.random.normal(k5, (Cout,), jnp.float32) * 0.1

    pooled, before = jax.block_until_ready(downconv_forward(x, w1, b1, w2, b2))

    # pure-JAX reference (mirrors the kernel's bf16 MXU operands, f32 accumulation)
    def ref_forward(x, w1, b1, w2, b2):
        dn = ('NCHW', 'OIHW', 'NCHW')
        y = lax.conv_general_dilated(
            x.astype(jnp.bfloat16), w1.astype(jnp.bfloat16), (1, 1), ((1, 1), (1, 1)),
            dimension_numbers=dn, preferred_element_type=jnp.float32)
        y = jnp.maximum(y + b1[None, :, None, None], 0.0)
        y = lax.conv_general_dilated(
            y.astype(jnp.bfloat16), w2.astype(jnp.bfloat16), (1, 1), ((1, 1), (1, 1)),
            dimension_numbers=dn, preferred_element_type=jnp.float32)
        y = jnp.maximum(y + b2[None, :, None, None], 0.0)
        mean = y.mean(axis=(0, 2, 3), keepdims=True)
        var = ((y - mean) ** 2).mean(axis=(0, 2, 3), keepdims=True)
        bn = (y - mean) * lax.rsqrt(var + 1e-5)
        p = bn.reshape(N, Cout, H // 2, 2, W // 2, 2).max(axis=(3, 5))
        return p, bn

    p_ref, b_ref = ref_forward(x, w1, b1, w2, b2)
    assert pooled.shape == (N, Cout, H // 2, W // 2) and before.shape == (N, Cout, H, W)
    assert jnp.allclose(before, b_ref, atol=2e-2, rtol=2e-2), "before_pool mismatch"
    assert jnp.allclose(pooled, p_ref, atol=2e-2, rtol=2e-2), "pooled output mismatch"

    print("KERNEL_OK")
</pallas_src>

<mosaic_0001>
module attributes {stable_mosaic.version = 11 : i64} {
  func.func @bn_affine_kernel(%arg0: i32, %arg1: memref<1x8xf32, #tpu.memory_space<vmem>>, %arg2: memref<1x8xf32, #tpu.memory_space<vmem>>, %arg3: memref<1x16x16x8xf32, #tpu.memory_space<vmem>>, %arg4: memref<1x8x8x8xf32, #tpu.memory_space<vmem>>, %arg5: memref<1x16x16x8xf32, #tpu.memory_space<vmem>>, %arg6: memref<1x8x8x8xf32, #tpu.memory_space<vmem>>) attributes {dimension_semantics = [#tpu.dimension_semantics<parallel>], iteration_bounds = array<i64: 2>, scalar_prefetch = 0 : i64, scratch_operands = 0 : i64, tpu.core_type = #tpu.core_type<tc>, window_params = [{pipeline_mode = #tpu.pipeline_mode<synchronous>, transform_indices = @transform_0, window_bounds = array<i64: 1, 8>}, {pipeline_mode = #tpu.pipeline_mode<synchronous>, transform_indices = @transform_1, window_bounds = array<i64: 1, 8>}, {transform_indices = @transform_2, window_bounds = array<i64: 1, 16, 16, 8>}, {transform_indices = @transform_3, window_bounds = array<i64: 1, 8, 8, 8>}, {transform_indices = @transform_4, window_bounds = array<i64: 1, 16, 16, 8>}, {transform_indices = @transform_5, window_bounds = array<i64: 1, 8, 8, 8>}]} {
    %c0 = arith.constant 0 : index
    %c0_0 = arith.constant 0 : index
    %0 = vector.load %arg1[%c0, %c0_0] : memref<1x8xf32, #tpu.memory_space<vmem>>, vector<1x8xf32>
    %c0_1 = arith.constant 0 : index
    %c0_2 = arith.constant 0 : index
    %1 = vector.load %arg2[%c0_1, %c0_2] : memref<1x8xf32, #tpu.memory_space<vmem>>, vector<1x8xf32>
    %c0_3 = arith.constant 0 : index
    %c0_4 = arith.constant 0 : index
    %c0_5 = arith.constant 0 : index
    %c0_6 = arith.constant 0 : index
    %2 = vector.load %arg3[%c0_3, %c0_4, %c0_5, %c0_6] : memref<1x16x16x8xf32, #tpu.memory_space<vmem>>, vector<1x16x16x8xf32>
    %3 = vector.shape_cast %0 : vector<1x8xf32> to vector<1x1x1x8xf32>
    %4 = vector.broadcast %3 : vector<1x1x1x8xf32> to vector<1x16x16x8xf32>
    %5 = arith.subf %2, %4 : vector<1x16x16x8xf32>
    %6 = vector.shape_cast %1 : vector<1x8xf32> to vector<1x1x1x8xf32>
    %7 = vector.broadcast %6 : vector<1x1x1x8xf32> to vector<1x16x16x8xf32>
    %8 = arith.mulf %5, %7 : vector<1x16x16x8xf32>
    %c0_7 = arith.constant 0 : index
    %c0_8 = arith.constant 0 : index
    %c0_9 = arith.constant 0 : index
    %c0_10 = arith.constant 0 : index
    %9 = vector.load %arg5[%c0_7, %c0_8, %c0_9, %c0_10] : memref<1x16x16x8xf32, #tpu.memory_space<vmem>>, vector<1x16x16x8xf32>
    tpu.vector_store %arg5[%c0_7, %c0_8, %c0_9, %c0_10], %8 {strides = array<i32>} : memref<1x16x16x8xf32, #tpu.memory_space<vmem>>, vector<1x16x16x8xf32>,
    %c0_11 = arith.constant 0 : index
    %c0_12 = arith.constant 0 : index
    %c0_13 = arith.constant 0 : index
    %c0_14 = arith.constant 0 : index
    %10 = vector.load %arg4[%c0_11, %c0_12, %c0_13, %c0_14] : memref<1x8x8x8xf32, #tpu.memory_space<vmem>>, vector<1x8x8x8xf32>
    %11 = vector.shape_cast %0 : vector<1x8xf32> to vector<1x1x1x8xf32>
    %12 = vector.broadcast %11 : vector<1x1x1x8xf32> to vector<1x8x8x8xf32>
    %13 = arith.subf %10, %12 : vector<1x8x8x8xf32>
    %14 = vector.shape_cast %1 : vector<1x8xf32> to vector<1x1x1x8xf32>
    %15 = vector.broadcast %14 : vector<1x1x1x8xf32> to vector<1x8x8x8xf32>
    %16 = arith.mulf %13, %15 : vector<1x8x8x8xf32>
    %c0_15 = arith.constant 0 : index
    %c0_16 = arith.constant 0 : index
    %c0_17 = arith.constant 0 : index
    %c0_18 = arith.constant 0 : index
    %17 = vector.load %arg6[%c0_15, %c0_16, %c0_17, %c0_18] : memref<1x8x8x8xf32, #tpu.memory_space<vmem>>, vector<1x8x8x8xf32>
    tpu.vector_store %arg6[%c0_15, %c0_16, %c0_17, %c0_18], %16 {strides = array<i32>} : memref<1x8x8x8xf32, #tpu.memory_space<vmem>>, vector<1x8x8x8xf32>,
    return
  }
  func.func @transform_0(%arg0: i32) -> (i32, i32) {
    %c0_i32 = arith.constant 0 : i32
    %c0_i32_0 = arith.constant 0 : i32
    %c0_i32_1 = arith.constant 0 : i32
    return %c0_i32, %c0_i32_0 : i32, i32
  }
  func.func @transform_1(%arg0: i32) -> (i32, i32) {
    %c0_i32 = arith.constant 0 : i32
    %c0_i32_0 = arith.constant 0 : i32
    %c0_i32_1 = arith.constant 0 : i32
    return %c0_i32, %c0_i32_0 : i32, i32
  }
  func.func @transform_2(%arg0: i32) -> (i32, i32, i32, i32) {
    %c0_i32 = arith.constant 0 : i32
    %c0_i32_0 = arith.constant 0 : i32
    %c0_i32_1 = arith.constant 0 : i32
    %c0_i32_2 = arith.constant 0 : i32
    return %arg0, %c0_i32, %c0_i32_0, %c0_i32_1 : i32, i32, i32, i32
  }
  func.func @transform_3(%arg0: i32) -> (i32, i32, i32, i32) {
    %c0_i32 = arith.constant 0 : i32
    %c0_i32_0 = arith.constant 0 : i32
    %c0_i32_1 = arith.constant 0 : i32
    %c0_i32_2 = arith.constant 0 : i32
    return %arg0, %c0_i32, %c0_i32_0, %c0_i32_1 : i32, i32, i32, i32
  }
  func.func @transform_4(%arg0: i32) -> (i32, i32, i32, i32) {
    %c0_i32 = arith.constant 0 : i32
    %c0_i32_0 = arith.constant 0 : i32
    %c0_i32_1 = arith.constant 0 : i32
    %c0_i32_2 = arith.constant 0 : i32
    return %arg0, %c0_i32, %c0_i32_0, %c0_i32_1 : i32, i32, i32, i32
  }
  func.func @transform_5(%arg0: i32) -> (i32, i32, i32, i32) {
    %c0_i32 = arith.constant 0 : i32
    %c0_i32_0 = arith.constant 0 : i32
    %c0_i32_1 = arith.constant 0 : i32
    %c0_i32_2 = arith.constant 0 : i32
    return %arg0, %c0_i32, %c0_i32_0, %c0_i32_1 : i32, i32, i32, i32
  }
}

module attributes {stable_mosaic.version = 11 : i64} {
  func.func @conv_pool_kernel(%arg0: i32, %arg1: memref<1x16x16x4xf32, #tpu.memory_space<vmem>>, %arg2: memref<9x4x8xbf16, #tpu.memory_space<vmem>>, %arg3: memref<1x8xf32, #tpu.memory_space<vmem>>, %arg4: memref<9x8x8xbf16, #tpu.memory_space<vmem>>, %arg5: memref<1x8xf32, #tpu.memory_space<vmem>>, %arg6: memref<1x16x16x8xf32, #tpu.memory_space<vmem>>, %arg7: memref<1x8x8x8xf32, #tpu.memory_space<vmem>>, %arg8: memref<1x1x8xf32, #tpu.memory_space<vmem>>, %arg9: memref<1x1x8xf32, #tpu.memory_space<vmem>>, %arg10: memref<18x18x4xf32, #tpu.memory_space<vmem>>, %arg11: memref<18x18x8xf32, #tpu.memory_space<vmem>>) attributes {dimension_semantics = [#tpu.dimension_semantics<parallel>], iteration_bounds = array<i64: 2>, scalar_prefetch = 0 : i64, scratch_operands = 2 : i64, tpu.core_type = #tpu.core_type<tc>, window_params = [{transform_indices = @transform_0, window_bounds = array<i64: 1, 16, 16, 4>}, {pipeline_mode = #tpu.pipeline_mode<synchronous>, transform_indices = @transform_1, window_bounds = array<i64: 9, 4, 8>}, {pipeline_mode = #tpu.pipeline_mode<synchronous>, transform_indices = @transform_2, window_bounds = array<i64: 1, 8>}, {pipeline_mode = #tpu.pipeline_mode<synchronous>, transform_indices = @transform_3, window_bounds = array<i64: 9, 8, 8>}, {pipeline_mode = #tpu.pipeline_mode<synchronous>, transform_indices = @transform_4, window_bounds = array<i64: 1, 8>}, {transform_indices = @transform_5, window_bounds = array<i64: 1, 16, 16, 8>}, {transform_indices = @transform_6, window_bounds = array<i64: 1, 8, 8, 8>}, {transform_indices = @transform_7, window_bounds = array<i64: 1, 1, 8>}, {transform_indices = @transform_8, window_bounds = array<i64: 1, 1, 8>}]} {
    %cst = arith.constant 0.000000e+00 : f32
    %0 = vector.broadcast %cst : f32 to vector<1x18x4xf32>
    %c0 = arith.constant 0 : index
    %c0_0 = arith.constant 0 : index
    %c0_1 = arith.constant 0 : index
    %1 = vector.load %arg10[%c0, %c0_0, %c0_1] : memref<18x18x4xf32, #tpu.memory_space<vmem>>, vector<1x18x4xf32>
    tpu.vector_store %arg10[%c0, %c0_0, %c0_1], %0 {strides = array<i32>} : memref<18x18x4xf32, #tpu.memory_space<vmem>>, vector<1x18x4xf32>,
    %cst_2 = arith.constant 0.000000e+00 : f32
    %2 = vector.broadcast %cst_2 : f32 to vector<1x18x4xf32>
    %c17 = arith.constant 17 : index
    %c0_3 = arith.constant 0 : index
    %c0_4 = arith.constant 0 : index
    %3 = vector.load %arg10[%c17, %c0_3, %c0_4] : memref<18x18x4xf32, #tpu.memory_space<vmem>>, vector<1x18x4xf32>
    tpu.vector_store %arg10[%c17, %c0_3, %c0_4], %2 {strides = array<i32>} : memref<18x18x4xf32, #tpu.memory_space<vmem>>, vector<1x18x4xf32>,
    %cst_5 = arith.constant 0.000000e+00 : f32
    %4 = vector.broadcast %cst_5 : f32 to vector<16x1x4xf32>
    %c1 = arith.constant 1 : index
    %c0_6 = arith.constant 0 : index
    %c0_7 = arith.constant 0 : index
    %5 = vector.load %arg10[%c1, %c0_6, %c0_7] : memref<18x18x4xf32, #tpu.memory_space<vmem>>, vector<16x1x4xf32>
    tpu.vector_store %arg10[%c1, %c0_6, %c0_7], %4 {strides = array<i32>} : memref<18x18x4xf32, #tpu.memory_space<vmem>>, vector<16x1x4xf32>,
    %cst_8 = arith.constant 0.000000e+00 : f32
    %6 = vector.broadcast %cst_8 : f32 to vector<16x1x4xf32>
    %c1_9 = arith.constant 1 : index
    %c17_10 = arith.constant 17 : index
    %c0_11 = arith.constant 0 : index
    %7 = vector.load %arg10[%c1_9, %c17_10, %c0_11] : memref<18x18x4xf32, #tpu.memory_space<vmem>>, vector<16x1x4xf32>
    tpu.vector_store %arg10[%c1_9, %c17_10, %c0_11], %6 {strides = array<i32>} : memref<18x18x4xf32, #tpu.memory_space<vmem>>, vector<16x1x4xf32>,
    %cst_12 = arith.constant 0.000000e+00 : f32
    %8 = vector.broadcast %cst_12 : f32 to vector<1x18x8xf32>
    %c0_13 = arith.constant 0 : index
    %c0_14 = arith.constant 0 : index
    %c0_15 = arith.constant 0 : index
    %9 = vector.load %arg11[%c0_13, %c0_14, %c0_15] : memref<18x18x8xf32, #tpu.memory_space<vmem>>, vector<1x18x8xf32>
    tpu.vector_store %arg11[%c0_13, %c0_14, %c0_15], %8 {strides = array<i32>} : memref<18x18x8xf32, #tpu.memory_space<vmem>>, vector<1x18x8xf32>,
    %cst_16 = arith.constant 0.000000e+00 : f32
    %10 = vector.broadcast %cst_16 : f32 to vector<1x18x8xf32>
    %c17_17 = arith.constant 17 : index
    %c0_18 = arith.constant 0 : index
    %c0_19 = arith.constant 0 : index
    %11 = vector.load %arg11[%c17_17, %c0_18, %c0_19] : memref<18x18x8xf32, #tpu.memory_space<vmem>>, vector<1x18x8xf32>
    tpu.vector_store %arg11[%c17_17, %c0_18, %c0_19], %10 {strides = array<i32>} : memref<18x18x8xf32, #tpu.memory_space<vmem>>, vector<1x18x8xf32>,
    %cst_20 = arith.constant 0.000000e+00 : f32
    %12 = vector.broadcast %cst_20 : f32 to vector<16x1x8xf32>
    %c1_21 = arith.constant 1 : index
    %c0_22 = arith.constant 0 : index
    %c0_23 = arith.constant 0 : index
    %13 = vector.load %arg11[%c1_21, %c0_22, %c0_23] : memref<18x18x8xf32, #tpu.memory_space<vmem>>, vector<16x1x8xf32>
    tpu.vector_store %arg11[%c1_21, %c0_22, %c0_23], %12 {strides = array<i32>} : memref<18x18x8xf32, #tpu.memory_space<vmem>>, vector<16x1x8xf32>,
    %cst_24 = arith.constant 0.000000e+00 : f32
    %14 = vector.broadcast %cst_24 : f32 to vector<16x1x8xf32>
    %c1_25 = arith.constant 1 : index
    %c17_26 = arith.constant 17 : index
    %c0_27 = arith.constant 0 : index
    %15 = vector.load %arg11[%c1_25, %c17_26, %c0_27] : memref<18x18x8xf32, #tpu.memory_space<vmem>>, vector<16x1x8xf32>
    tpu.vector_store %arg11[%c1_25, %c17_26, %c0_27], %14 {strides = array<i32>} : memref<18x18x8xf32, #tpu.memory_space<vmem>>, vector<16x1x8xf32>,
    %c0_28 = arith.constant 0 : index
    %c0_29 = arith.constant 0 : index
    %c0_30 = arith.constant 0 : index
    %c0_31 = arith.constant 0 : index
    %16 = vector.load %arg1[%c0_28, %c0_29, %c0_30, %c0_31] : memref<1x16x16x4xf32, #tpu.memory_space<vmem>>, vector<1x16x16x4xf32>
    %17 = vector.shape_cast %16 : vector<1x16x16x4xf32> to vector<16x16x4xf32>
    %c1_32 = arith.constant 1 : index
    %c1_33 = arith.constant 1 : index
    %c0_34 = arith.constant 0 : index
    %18 = vector.load %arg10[%c1_32, %c1_33, %c0_34] : memref<18x18x4xf32, #tpu.memory_space<vmem>>, vector<16x16x4xf32>
    tpu.vector_store %arg10[%c1_32, %c1_33, %c0_34], %17 {strides = array<i32>} : memref<18x18x4xf32, #tpu.memory_space<vmem>>, vector<16x16x4xf32>,
    %cst_35 = arith.constant 0.000000e+00 : f32
    %19 = vector.broadcast %cst_35 : f32 to vector<256x8xf32>
    %c0_36 = arith.constant 0 : index
    %c0_37 = arith.constant 0 : index
    %c0_38 = arith.constant 0 : index
    %20 = vector.load %arg10[%c0_36, %c0_37, %c0_38] : memref<18x18x4xf32, #tpu.memory_space<vmem>>, vector<16x16x4xf32>
    %21 = vector.shape_cast %20 : vector<16x16x4xf32> to vector<256x4xf32>
    %22 = arith.truncf %21 : vector<256x4xf32> to vector<256x4xbf16>
    %c0_39 = arith.constant 0 : index
    %c0_40 = arith.constant 0 : index
    %c0_41 = arith.constant 0 : index
    %23 = vector.load %arg2[%c0_39, %c0_40, %c0_41] : memref<9x4x8xbf16, #tpu.memory_space<vmem>>, vector<1x4x8xbf16>
    %24 = vector.shape_cast %23 : vector<1x4x8xbf16> to vector<4x8xbf16>
    %cst_42 = arith.constant dense<0.000000e+00> : vector<256x8xf32>
    %25 = tpu.matmul %22, %24, %cst_42 {dimension_numbers = #tpu.dot_dimension_numbers<[1], [0], [0], [1], [0, 0, 1, 1], [], []>} : vector<256x4xbf16>, vector<4x8xbf16>, vector<256x8xf32> -> vector<256x8xf32>
    %26 = arith.addf %19, %25 : vector<256x8xf32>
    %c0_43 = arith.constant 0 : index
    %c1_44 = arith.constant 1 : index
    %c0_45 = arith.constant 0 : index
    %27 = vector.load %arg10[%c0_43, %c1_44, %c0_45] : memref<18x18x4xf32, #tpu.memory_space<vmem>>, vector<16x16x4xf32>
    %28 = vector.shape_cast %27 : vector<16x16x4xf32> to vector<256x4xf32>
    %29 = arith.truncf %28 : vector<256x4xf32> to vector<256x4xbf16>
    %c1_46 = arith.constant 1 : index
    %c0_47 = arith.constant 0 : index
    %c0_48 = arith.constant 0 : index
    %30 = vector.load %arg2[%c1_46, %c0_47, %c0_48] : memref<9x4x8xbf16, #tpu.memory_space<vmem>>, vector<1x4x8xbf16>
    %31 = vector.shape_cast %30 : vector<1x4x8xbf16> to vector<4x8xbf16>
    %cst_49 = arith.constant dense<0.000000e+00> : vector<256x8xf32>
    %32 = tpu.matmul %29, %31, %cst_49 {dimension_numbers = #tpu.dot_dimension_numbers<[1], [0], [0], [1], [0, 0, 1, 1], [], []>} : vector<256x4xbf16>, vector<4x8xbf16>, vector<256x8xf32> -> vector<256x8xf32>
    %33 = arith.addf %26, %32 : vector<256x8xf32>
    %c0_50 = arith.constant 0 : index
    %c2 = arith.constant 2 : index
    %c0_51 = arith.constant 0 : index
    %34 = vector.load %arg10[%c0_50, %c2, %c0_51] : memref<18x18x4xf32, #tpu.memory_space<vmem>>, vector<16x16x4xf32>
    %35 = vector.shape_cast %34 : vector<16x16x4xf32> to vector<256x4xf32>
    %36 = arith.truncf %35 : vector<256x4xf32> to vector<256x4xbf16>
    %c2_52 = arith.constant 2 : index
    %c0_53 = arith.constant 0 : index
    %c0_54 = arith.constant 0 : index
    %37 = vector.load %arg2[%c2_52, %c0_53, %c0_54] : memref<9x4x8xbf16, #tpu.memory_space<vmem>>, vector<1x4x8xbf16>
    %38 = vector.shape_cast %37 : vector<1x4x8xbf16> to vector<4x8xbf16>
    %cst_55 = arith.constant dense<0.000000e+00> : vector<256x8xf32>
    %39 = tpu.matmul %36, %38, %cst_55 {dimension_numbers = #tpu.dot_dimension_numbers<[1], [0], [0], [1], [0, 0, 1, 1], [], []>} : vector<256x4xbf16>, vector<4x8xbf16>, vector<256x8xf32> -> vector<256x8xf32>
    %40 = arith.addf %33, %39 : vector<256x8xf32>
    %c1_56 = arith.constant 1 : index
    %c0_57 = arith.constant 0 : index
    %c0_58 = arith.constant 0 : index
    %41 = vector.load %arg10[%c1_56, %c0_57, %c0_58] : memref<18x18x4xf32, #tpu.memory_space<vmem>>, vector<16x16x4xf32>
    %42 = vector.shape_cast %41 : vector<16x16x4xf32> to vector<256x4xf32>
    %43 = arith.truncf %42 : vector<256x4xf32> to vector<256x4xbf16>
    %c3 = arith.constant 3 : index
    %c0_59 = arith.constant 0 : index
    %c0_60 = arith.constant 0 : index
    %44 = vector.load %arg2[%c3, %c0_59, %c0_60] : memref<9x4x8xbf16, #tpu.memory_space<vmem>>, vector<1x4x8xbf16>
    %45 = vector.shape_cast %44 : vector<1x4x8xbf16> to vector<4x8xbf16>
    %cst_61 = arith.constant dense<0.000000e+00> : vector<256x8xf32>
    %46 = tpu.matmul %43, %45, %cst_61 {dimension_numbers = #tpu.dot_dimension_numbers<[1], [0], [0], [1], [0, 0, 1, 1], [], []>} : vector<256x4xbf16>, vector<4x8xbf16>, vector<256x8xf32> -> vector<256x8xf32>
    %47 = arith.addf %40, %46 : vector<256x8xf32>
    %c1_62 = arith.constant 1 : index
    %c1_63 = arith.constant 1 : index
    %c0_64 = arith.constant 0 : index
    %48 = vector.load %arg10[%c1_62, %c1_63, %c0_64] : memref<18x18x4xf32, #tpu.memory_space<vmem>>, vector<16x16x4xf32>
    %49 = vector.shape_cast %48 : vector<16x16x4xf32> to vector<256x4xf32>
    %50 = arith.truncf %49 : vector<256x4xf32> to vector<256x4xbf16>
    %c4 = arith.constant 4 : index
    %c0_65 = arith.constant 0 : index
    %c0_66 = arith.constant 0 : index
    %51 = vector.load %arg2[%c4, %c0_65, %c0_66] : memref<9x4x8xbf16, #tpu.memory_space<vmem>>, vector<1x4x8xbf16>
    %52 = vector.shape_cast %51 : vector<1x4x8xbf16> to vector<4x8xbf16>
    %cst_67 = arith.constant dense<0.000000e+00> : vector<256x8xf32>
    %53 = tpu.matmul %50, %52, %cst_67 {dimension_numbers = #tpu.dot_dimension_numbers<[1], [0], [0], [1], [0, 0, 1, 1], [], []>} : vector<256x4xbf16>, vector<4x8xbf16>, vector<256x8xf32> -> vector<256x8xf32>
    %54 = arith.addf %47, %53 : vector<256x8xf32>
    %c1_68 = arith.constant 1 : index
    %c2_69 = arith.constant 2 : index
    %c0_70 = arith.constant 0 : index
    %55 = vector.load %arg10[%c1_68, %c2_69, %c0_70] : memref<18x18x4xf32, #tpu.memory_space<vmem>>, vector<16x16x4xf32>
    %56 = vector.shape_cast %55 : vector<16x16x4xf32> to vector<256x4xf32>
    %57 = arith.truncf %56 : vector<256x4xf32> to vector<256x4xbf16>
    %c5 = arith.constant 5 : index
    %c0_71 = arith.constant 0 : index
    %c0_72 = arith.constant 0 : index
    %58 = vector.load %arg2[%c5, %c0_71, %c0_72] : memref<9x4x8xbf16, #tpu.memory_space<vmem>>, vector<1x4x8xbf16>
    %59 = vector.shape_cast %58 : vector<1x4x8xbf16> to vector<4x8xbf16>
    %cst_73 = arith.constant dense<0.000000e+00> : vector<256x8xf32>
    %60 = tpu.matmul %57, %59, %cst_73 {dimension_numbers = #tpu.dot_dimension_numbers<[1], [0], [0], [1], [0, 0, 1, 1], [], []>} : vector<256x4xbf16>, vector<4x8xbf16>, vector<256x8xf32> -> vector<256x8xf32>
    %61 = arith.addf %54, %60 : vector<256x8xf32>
    %c2_74 = arith.constant 2 : index
    %c0_75 = arith.constant 0 : index
    %c0_76 = arith.constant 0 : index
    %62 = vector.load %arg10[%c2_74, %c0_75, %c0_76] : memref<18x18x4xf32, #tpu.memory_space<vmem>>, vector<16x16x4xf32>
    %63 = vector.shape_cast %62 : vector<16x16x4xf32> to vector<256x4xf32>
    %64 = arith.truncf %63 : vector<256x4xf32> to vector<256x4xbf16>
    %c6 = arith.constant 6 : index
    %c0_77 = arith.constant 0 : index
    %c0_78 = arith.constant 0 : index
    %65 = vector.load %arg2[%c6, %c0_77, %c0_78] : memref<9x4x8xbf16, #tpu.memory_space<vmem>>, vector<1x4x8xbf16>
    %66 = vector.shape_cast %65 : vector<1x4x8xbf16> to vector<4x8xbf16>
    %cst_79 = arith.constant dense<0.000000e+00> : vector<256x8xf32>
    %67 = tpu.matmul %64, %66, %cst_79 {dimension_numbers = #tpu.dot_dimension_numbers<[1], [0], [0], [1], [0, 0, 1, 1], [], []>} : vector<256x4xbf16>, vector<4x8xbf16>, vector<256x8xf32> -> vector<256x8xf32>
    %68 = arith.addf %61, %67 : vector<256x8xf32>
    %c2_80 = arith.constant 2 : index
    %c1_81 = arith.constant 1 : index
    %c0_82 = arith.constant 0 : index
    %69 = vector.load %arg10[%c2_80, %c1_81, %c0_82] : memref<18x18x4xf32, #tpu.memory_space<vmem>>, vector<16x16x4xf32>
    %70 = vector.shape_cast %69 : vector<16x16x4xf32> to vector<256x4xf32>
    %71 = arith.truncf %70 : vector<256x4xf32> to vector<256x4xbf16>
    %c7 = arith.constant 7 : index
    %c0_83 = arith.constant 0 : index
    %c0_84 = arith.constant 0 : index
    %72 = vector.load %arg2[%c7, %c0_83, %c0_84] : memref<9x4x8xbf16, #tpu.memory_space<vmem>>, vector<1x4x8xbf16>
    %73 = vector.shape_cast %72 : vector<1x4x8xbf16> to vector<4x8xbf16>
    %cst_85 = arith.constant dense<0.000000e+00> : vector<256x8xf32>
    %74 = tpu.matmul %71, %73, %cst_85 {dimension_numbers = #tpu.dot_dimension_numbers<[1], [0], [0], [1], [0, 0, 1, 1], [], []>} : vector<256x4xbf16>, vector<4x8xbf16>, vector<256x8xf32> -> vector<256x8xf32>
    %75 = arith.addf %68, %74 : vector<256x8xf32>
    %c2_86 = arith.constant 2 : index
    %c2_87 = arith.constant 2 : index
    %c0_88 = arith.constant 0 : index
    %76 = vector.load %arg10[%c2_86, %c2_87, %c0_88] : memref<18x18x4xf32, #tpu.memory_space<vmem>>, vector<16x16x4xf32>
    %77 = vector.shape_cast %76 : vector<16x16x4xf32> to vector<256x4xf32>
    %78 = arith.truncf %77 : vector<256x4xf32> to vector<256x4xbf16>
    %c8 = arith.constant 8 : index
    %c0_89 = arith.constant 0 : index
    %c0_90 = arith.constant 0 : index
    %79 = vector.load %arg2[%c8, %c0_89, %c0_90] : memref<9x4x8xbf16, #tpu.memory_space<vmem>>, vector<1x4x8xbf16>
    %80 = vector.shape_cast %79 : vector<1x4x8xbf16> to vector<4x8xbf16>
    %cst_91 = arith.constant dense<0.000000e+00> : vector<256x8xf32>
    %81 = tpu.matmul %78, %80, %cst_91 {dimension_numbers = #tpu.dot_dimension_numbers<[1], [0], [0], [1], [0, 0, 1, 1], [], []>} : vector<256x4xbf16>, vector<4x8xbf16>, vector<256x8xf32> -> vector<256x8xf32>
    %82 = arith.addf %75, %81 : vector<256x8xf32>
    %c0_92 = arith.constant 0 : index
    %c0_93 = arith.constant 0 : index
    %83 = vector.load %arg3[%c0_92, %c0_93] : memref<1x8xf32, #tpu.memory_space<vmem>>, vector<1x8xf32>
    %84 = vector.broadcast %83 : vector<1x8xf32> to vector<256x8xf32>
    %85 = arith.addf %82, %84 : vector<256x8xf32>
    %cst_94 = arith.constant 0.000000e+00 : f32
    %86 = vector.broadcast %cst_94 : f32 to vector<256x8xf32>
    %87 = arith.maximumf %85, %86 : vector<256x8xf32>
    %88 = vector.shape_cast %87 : vector<256x8xf32> to vector<16x16x8xf32>
    %c1_95 = arith.constant 1 : index
    %c1_96 = arith.constant 1 : index
    %c0_97 = arith.constant 0 : index
    %89 = vector.load %arg11[%c1_95, %c1_96, %c0_97] : memref<18x18x8xf32, #tpu.memory_space<vmem>>, vector<16x16x8xf32>
    tpu.vector_store %arg11[%c1_95, %c1_96, %c0_97], %88 {strides = array<i32>} : memref<18x18x8xf32, #tpu.memory_space<vmem>>, vector<16x16x8xf32>,
    %cst_98 = arith.constant 0.000000e+00 : f32
    %90 = vector.broadcast %cst_98 : f32 to vector<256x8xf32>
    %c0_99 = arith.constant 0 : index
    %c0_100 = arith.constant 0 : index
    %c0_101 = arith.constant 0 : index
    %91 = vector.load %arg11[%c0_99, %c0_100, %c0_101] : memref<18x18x8xf32, #tpu.memory_space<vmem>>, vector<16x16x8xf32>
    %92 = vector.shape_cast %91 : vector<16x16x8xf32> to vector<256x8xf32>
    %93 = arith.truncf %92 : vector<256x8xf32> to vector<256x8xbf16>
    %c0_102 = arith.constant 0 : index
    %c0_103 = arith.constant 0 : index
    %c0_104 = arith.constant 0 : index
    %94 = vector.load %arg4[%c0_102, %c0_103, %c0_104] : memref<9x8x8xbf16, #tpu.memory_space<vmem>>, vector<1x8x8xbf16>
    %95 = vector.shape_cast %94 : vector<1x8x8xbf16> to vector<8x8xbf16>
    %cst_105 = arith.constant dense<0.000000e+00> : vector<256x8xf32>
    %96 = tpu.matmul %93, %95, %cst_105 {dimension_numbers = #tpu.dot_dimension_numbers<[1], [0], [0], [1], [0, 0, 1, 1], [], []>} : vector<256x8xbf16>, vector<8x8xbf16>, vector<256x8xf32> -> vector<256x8xf32>
    %97 = arith.addf %90, %96 : vector<256x8xf32>
    %c0_106 = arith.constant 0 : index
    %c1_107 = arith.constant 1 : index
    %c0_108 = arith.constant 0 : index
    %98 = vector.load %arg11[%c0_106, %c1_107, %c0_108] : memref<18x18x8xf32, #tpu.memory_space<vmem>>, vector<16x16x8xf32>
    %99 = vector.shape_cast %98 : vector<16x16x8xf32> to vector<256x8xf32>
    %100 = arith.truncf %99 : vector<256x8xf32> to vector<256x8xbf16>
    %c1_109 = arith.constant 1 : index
    %c0_110 = arith.constant 0 : index
    %c0_111 = arith.constant 0 : index
    %101 = vector.load %arg4[%c1_109, %c0_110, %c0_111] : memref<9x8x8xbf16, #tpu.memory_space<vmem>>, vector<1x8x8xbf16>
    %102 = vector.shape_cast %101 : vector<1x8x8xbf16> to vector<8x8xbf16>
    %cst_112 = arith.constant dense<0.000000e+00> : vector<256x8xf32>
    %103 = tpu.matmul %100, %102, %cst_112 {dimension_numbers = #tpu.dot_dimension_numbers<[1], [0], [0], [1], [0, 0, 1, 1], [], []>} : vector<256x8xbf16>, vector<8x8xbf16>, vector<256x8xf32> -> vector<256x8xf32>
    %104 = arith.addf %97, %103 : vector<256x8xf32>
    %c0_113 = arith.constant 0 : index
    %c2_114 = arith.constant 2 : index
    %c0_115 = arith.constant 0 : index
    %105 = vector.load %arg11[%c0_113, %c2_114, %c0_115] : memref<18x18x8xf32, #tpu.memory_space<vmem>>, vector<16x16x8xf32>
    %106 = vector.shape_cast %105 : vector<16x16x8xf32> to vector<256x8xf32>
    %107 = arith.truncf %106 : vector<256x8xf32> to vector<256x8xbf16>
    %c2_116 = arith.constant 2 : index
    %c0_117 = arith.constant 0 : index
    %c0_118 = arith.constant 0 : index
    %108 = vector.load %arg4[%c2_116, %c0_117, %c0_118] : memref<9x8x8xbf16, #tpu.memory_space<vmem>>, vector<1x8x8xbf16>
    %109 = vector.shape_cast %108 : vector<1x8x8xbf16> to vector<8x8xbf16>
    %cst_119 = arith.constant dense<0.000000e+00> : vector<256x8xf32>
    %110 = tpu.matmul %107, %109, %cst_119 {dimension_numbers = #tpu.dot_dimension_numbers<[1], [0], [0], [1], [0, 0, 1, 1], [], []>} : vector<256x8xbf16>, vector<8x8xbf16>, vector<256x8xf32> -> vector<256x8xf32>
    %111 = arith.addf %104, %110 : vector<256x8xf32>
    %c1_120 = arith.constant 1 : index
    %c0_121 = arith.constant 0 : index
    %c0_122 = arith.constant 0 : index
    %112 = vector.load %arg11[%c1_120, %c0_121, %c0_122] : memref<18x18x8xf32, #tpu.memory_space<vmem>>, vector<16x16x8xf32>
    %113 = vector.shape_cast %112 : vector<16x16x8xf32> to vector<256x8xf32>
    %114 = arith.truncf %113 : vector<256x8xf32> to vector<256x8xbf16>
    %c3_123 = arith.constant 3 : index
    %c0_124 = arith.constant 0 : index
    %c0_125 = arith.constant 0 : index
    %115 = vector.load %arg4[%c3_123, %c0_124, %c0_125] : memref<9x8x8xbf16, #tpu.memory_space<vmem>>, vector<1x8x8xbf16>
    %116 = vector.shape_cast %115 : vector<1x8x8xbf16> to vector<8x8xbf16>
    %cst_126 = arith.constant dense<0.000000e+00> : vector<256x8xf32>
    %117 = tpu.matmul %114, %116, %cst_126 {dimension_numbers = #tpu.dot_dimension_numbers<[1], [0], [0], [1], [0, 0, 1, 1], [], []>} : vector<256x8xbf16>, vector<8x8xbf16>, vector<256x8xf32> -> vector<256x8xf32>
    %118 = arith.addf %111, %117 : vector<256x8xf32>
    %c1_127 = arith.constant 1 : index
    %c1_128 = arith.constant 1 : index
    %c0_129 = arith.constant 0 : index
    %119 = vector.load %arg11[%c1_127, %c1_128, %c0_129] : memref<18x18x8xf32, #tpu.memory_space<vmem>>, vector<16x16x8xf32>
    %120 = vector.shape_cast %119 : vector<16x16x8xf32> to vector<256x8xf32>
    %121 = arith.truncf %120 : vector<256x8xf32> to vector<256x8xbf16>
    %c4_130 = arith.constant 4 : index
    %c0_131 = arith.constant 0 : index
    %c0_132 = arith.constant 0 : index
    %122 = vector.load %arg4[%c4_130, %c0_131, %c0_132] : memref<9x8x8xbf16, #tpu.memory_space<vmem>>, vector<1x8x8xbf16>
    %123 = vector.shape_cast %122 : vector<1x8x8xbf16> to vector<8x8xbf16>
    %cst_133 = arith.constant dense<0.000000e+00> : vector<256x8xf32>
    %124 = tpu.matmul %121, %123, %cst_133 {dimension_numbers = #tpu.dot_dimension_numbers<[1], [0], [0], [1], [0, 0, 1, 1], [], []>} : vector<256x8xbf16>, vector<8x8xbf16>, vector<256x8xf32> -> vector<256x8xf32>
    %125 = arith.addf %118, %124 : vector<256x8xf32>
    %c1_134 = arith.constant 1 : index
    %c2_135 = arith.constant 2 : index
    %c0_136 = arith.constant 0 : index
    %126 = vector.load %arg11[%c1_134, %c2_135, %c0_136] : memref<18x18x8xf32, #tpu.memory_space<vmem>>, vector<16x16x8xf32>
    %127 = vector.shape_cast %126 : vector<16x16x8xf32> to vector<256x8xf32>
    %128 = arith.truncf %127 : vector<256x8xf32> to vector<256x8xbf16>
    %c5_137 = arith.constant 5 : index
    %c0_138 = arith.constant 0 : index
    %c0_139 = arith.constant 0 : index
    %129 = vector.load %arg4[%c5_137, %c0_138, %c0_139] : memref<9x8x8xbf16, #tpu.memory_space<vmem>>, vector<1x8x8xbf16>
    %130 = vector.shape_cast %129 : vector<1x8x8xbf16> to vector<8x8xbf16>
    %cst_140 = arith.constant dense<0.000000e+00> : vector<256x8xf32>
    %131 = tpu.matmul %128, %130, %cst_140 {dimension_numbers = #tpu.dot_dimension_numbers<[1], [0], [0], [1], [0, 0, 1, 1], [], []>} : vector<256x8xbf16>, vector<8x8xbf16>, vector<256x8xf32> -> vector<256x8xf32>
    %132 = arith.addf %125, %131 : vector<256x8xf32>
    %c2_141 = arith.constant 2 : index
    %c0_142 = arith.constant 0 : index
    %c0_143 = arith.constant 0 : index
    %133 = vector.load %arg11[%c2_141, %c0_142, %c0_143] : memref<18x18x8xf32, #tpu.memory_space<vmem>>, vector<16x16x8xf32>
    %134 = vector.shape_cast %133 : vector<16x16x8xf32> to vector<256x8xf32>
    %135 = arith.truncf %134 : vector<256x8xf32> to vector<256x8xbf16>
    %c6_144 = arith.constant 6 : index
    %c0_145 = arith.constant 0 : index
    %c0_146 = arith.constant 0 : index
    %136 = vector.load %arg4[%c6_144, %c0_145, %c0_146] : memref<9x8x8xbf16, #tpu.memory_space<vmem>>, vector<1x8x8xbf16>
    %137 = vector.shape_cast %136 : vector<1x8x8xbf16> to vector<8x8xbf16>
    %cst_147 = arith.constant dense<0.000000e+00> : vector<256x8xf32>
    %138 = tpu.matmul %135, %137, %cst_147 {dimension_numbers = #tpu.dot_dimension_numbers<[1], [0], [0], [1], [0, 0, 1, 1], [], []>} : vector<256x8xbf16>, vector<8x8xbf16>, vector<256x8xf32> -> vector<256x8xf32>
    %139 = arith.addf %132, %138 : vector<256x8xf32>
    %c2_148 = arith.constant 2 : index
    %c1_149 = arith.constant 1 : index
    %c0_150 = arith.constant 0 : index
    %140 = vector.load %arg11[%c2_148, %c1_149, %c0_150] : memref<18x18x8xf32, #tpu.memory_space<vmem>>, vector<16x16x8xf32>
    %141 = vector.shape_cast %140 : vector<16x16x8xf32> to vector<256x8xf32>
    %142 = arith.truncf %141 : vector<256x8xf32> to vector<256x8xbf16>
    %c7_151 = arith.constant 7 : index
    %c0_152 = arith.constant 0 : index
    %c0_153 = arith.constant 0 : index
    %143 = vector.load %arg4[%c7_151, %c0_152, %c0_153] : memref<9x8x8xbf16, #tpu.memory_space<vmem>>, vector<1x8x8xbf16>
    %144 = vector.shape_cast %143 : vector<1x8x8xbf16> to vector<8x8xbf16>
    %cst_154 = arith.constant dense<0.000000e+00> : vector<256x8xf32>
    %145 = tpu.matmul %142, %144, %cst_154 {dimension_numbers = #tpu.dot_dimension_numbers<[1], [0], [0], [1], [0, 0, 1, 1], [], []>} : vector<256x8xbf16>, vector<8x8xbf16>, vector<256x8xf32> -> vector<256x8xf32>
    %146 = arith.addf %139, %145 : vector<256x8xf32>
    %c2_155 = arith.constant 2 : index
    %c2_156 = arith.constant 2 : index
    %c0_157 = arith.constant 0 : index
    %147 = vector.load %arg11[%c2_155, %c2_156, %c0_157] : memref<18x18x8xf32, #tpu.memory_space<vmem>>, vector<16x16x8xf32>
    %148 = vector.shape_cast %147 : vector<16x16x8xf32> to vector<256x8xf32>
    %149 = arith.truncf %148 : vector<256x8xf32> to vector<256x8xbf16>
    %c8_158 = arith.constant 8 : index
    %c0_159 = arith.constant 0 : index
    %c0_160 = arith.constant 0 : index
    %150 = vector.load %arg4[%c8_158, %c0_159, %c0_160] : memref<9x8x8xbf16, #tpu.memory_space<vmem>>, vector<1x8x8xbf16>
    %151 = vector.shape_cast %150 : vector<1x8x8xbf16> to vector<8x8xbf16>
    %cst_161 = arith.constant dense<0.000000e+00> : vector<256x8xf32>
    %152 = tpu.matmul %149, %151, %cst_161 {dimension_numbers = #tpu.dot_dimension_numbers<[1], [0], [0], [1], [0, 0, 1, 1], [], []>} : vector<256x8xbf16>, vector<8x8xbf16>, vector<256x8xf32> -> vector<256x8xf32>
    %153 = arith.addf %146, %152 : vector<256x8xf32>
    %c0_162 = arith.constant 0 : index
    %c0_163 = arith.constant 0 : index
    %154 = vector.load %arg5[%c0_162, %c0_163] : memref<1x8xf32, #tpu.memory_space<vmem>>, vector<1x8xf32>
    %155 = vector.broadcast %154 : vector<1x8xf32> to vector<256x8xf32>
    %156 = arith.addf %153, %155 : vector<256x8xf32>
    %cst_164 = arith.constant 0.000000e+00 : f32
    %157 = vector.broadcast %cst_164 : f32 to vector<256x8xf32>
    %158 = arith.maximumf %156, %157 : vector<256x8xf32>
    %159 = vector.shape_cast %158 : vector<256x8xf32> to vector<16x16x8xf32>
    %c0_165 = arith.constant 0 : index
    %c0_166 = arith.constant 0 : index
    %c0_167 = arith.constant 0 : index
    %c0_168 = arith.constant 0 : index
    %160 = vector.load %arg6[%c0_165, %c0_166, %c0_167, %c0_168] : memref<1x16x16x8xf32, #tpu.memory_space<vmem>>, vector<1x16x16x8xf32>
    %161 = vector.shape_cast %160 : vector<1x16x16x8xf32> to vector<16x16x8xf32>
    %162 = vector.shape_cast %159 : vector<16x16x8xf32> to vector<1x16x16x8xf32>
    tpu.vector_store %arg6[%c0_165, %c0_166, %c0_167, %c0_168], %162 {strides = array<i32>} : memref<1x16x16x8xf32, #tpu.memory_space<vmem>>, vector<1x16x16x8xf32>,
    %cst_169 = arith.constant dense<0.000000e+00> : vector<8xf32>
    %163 = vector.multi_reduction <add>, %158, %cst_169 [0] : vector<256x8xf32> to vector<8xf32>
    %164 = vector.shape_cast %163 : vector<8xf32> to vector<1x8xf32>
    %c0_170 = arith.constant 0 : index
    %c0_171 = arith.constant 0 : index
    %c0_172 = arith.constant 0 : index
    %165 = vector.load %arg8[%c0_170, %c0_171, %c0_172] : memref<1x1x8xf32, #tpu.memory_space<vmem>>, vector<1x1x8xf32>
    %166 = vector.shape_cast %165 : vector<1x1x8xf32> to vector<1x8xf32>
    %167 = vector.shape_cast %164 : vector<1x8xf32> to vector<1x1x8xf32>
    tpu.vector_store %arg8[%c0_170, %c0_171, %c0_172], %167 {strides = array<i32>} : memref<1x1x8xf32, #tpu.memory_space<vmem>>, vector<1x1x8xf32>,
    %168 = arith.mulf %158, %158 : vector<256x8xf32>
    %cst_173 = arith.constant dense<0.000000e+00> : vector<8xf32>
    %169 = vector.multi_reduction <add>, %168, %cst_173 [0] : vector<256x8xf32> to vector<8xf32>
    %170 = vector.shape_cast %169 : vector<8xf32> to vector<1x8xf32>
    %c0_174 = arith.constant 0 : index
    %c0_175 = arith.constant 0 : index
    %c0_176 = arith.constant 0 : index
    %171 = vector.load %arg9[%c0_174, %c0_175, %c0_176] : memref<1x1x8xf32, #tpu.memory_space<vmem>>, vector<1x1x8xf32>
    %172 = vector.shape_cast %171 : vector<1x1x8xf32> to vector<1x8xf32>
    %173 = vector.shape_cast %170 : vector<1x8xf32> to vector<1x1x8xf32>
    tpu.vector_store %arg9[%c0_174, %c0_175, %c0_176], %173 {strides = array<i32>} : memref<1x1x8xf32, #tpu.memory_space<vmem>>, vector<1x1x8xf32>,
    %174 = vector.shape_cast %158 : vector<256x8xf32> to vector<8x2x16x8xf32>
    %175 = vector.extract_strided_slice %174 {offsets = [0, 0, 0, 0], sizes = [8, 1, 16, 8], strides = [1, 1, 1, 1]} : vector<8x2x16x8xf32> to vector<8x1x16x8xf32>
    %176 = vector.shape_cast %175 : vector<8x1x16x8xf32> to vector<8x16x8xf32>
    %177 = vector.extract_strided_slice %174 {offsets = [0, 1, 0, 0], sizes = [8, 1, 16, 8], strides = [1, 1, 1, 1]} : vector<8x2x16x8xf32> to vector<8x1x16x8xf32>
    %178 = vector.shape_cast %177 : vector<8x1x16x8xf32> to vector<8x16x8xf32>
    %179 = arith.maximumf %176, %178 : vector<8x16x8xf32>
    %180 = vector.shape_cast %179 : vector<8x16x8xf32> to vector<8x8x2x8xf32>
    %181 = vector.extract_strided_slice %180 {offsets = [0, 0, 0, 0], sizes = [8, 8, 1, 8], strides = [1, 1, 1, 1]} : vector<8x8x2x8xf32> to vector<8x8x1x8xf32>
    %182 = vector.shape_cast %181 : vector<8x8x1x8xf32> to vector<8x8x8xf32>
    %183 = vector.extract_strided_slice %180 {offsets = [0, 0, 1, 0], sizes = [8, 8, 1, 8], strides = [1, 1, 1, 1]} : vector<8x8x2x8xf32> to vector<8x8x1x8xf32>
    %184 = vector.shape_cast %183 : vector<8x8x1x8xf32> to vector<8x8x8xf32>
    %185 = arith.maximumf %182, %184 : vector<8x8x8xf32>
    %c0_177 = arith.constant 0 : index
    %c0_178 = arith.constant 0 : index
    %c0_179 = arith.constant 0 : index
    %c0_180 = arith.constant 0 : index
    %186 = vector.load %arg7[%c0_177, %c0_178, %c0_179, %c0_180] : memref<1x8x8x8xf32, #tpu.memory_space<vmem>>, vector<1x8x8x8xf32>
    %187 = vector.shape_cast %186 : vector<1x8x8x8xf32> to vector<8x8x8xf32>
    %188 = vector.shape_cast %185 : vector<8x8x8xf32> to vector<1x8x8x8xf32>
    tpu.vector_store %arg7[%c0_177, %c0_178, %c0_179, %c0_180], %188 {strides = array<i32>} : memref<1x8x8x8xf32, #tpu.memory_space<vmem>>, vector<1x8x8x8xf32>,
    return
  }
  func.func @transform_0(%arg0: i32) -> (i32, i32, i32, i32) {
    %c0_i32 = arith.constant 0 : i32
    %c0_i32_0 = arith.constant 0 : i32
    %c0_i32_1 = arith.constant 0 : i32
    %c0_i32_2 = arith.constant 0 : i32
    return %arg0, %c0_i32, %c0_i32_0, %c0_i32_1 : i32, i32, i32, i32
  }
  func.func @transform_1(%arg0: i32) -> (i32, i32, i32) {
    %c0_i32 = arith.constant 0 : i32
    %c0_i32_0 = arith.constant 0 : i32
    %c0_i32_1 = arith.constant 0 : i32
    %c0_i32_2 = arith.constant 0 : i32
    return %c0_i32, %c0_i32_0, %c0_i32_1 : i32, i32, i32
  }
  func.func @transform_2(%arg0: i32) -> (i32, i32) {
    %c0_i32 = arith.constant 0 : i32
    %c0_i32_0 = arith.constant 0 : i32
    %c0_i32_1 = arith.constant 0 : i32
    return %c0_i32, %c0_i32_0 : i32, i32
  }
  func.func @transform_3(%arg0: i32) -> (i32, i32, i32) {
    %c0_i32 = arith.constant 0 : i32
    %c0_i32_0 = arith.constant 0 : i32
    %c0_i32_1 = arith.constant 0 : i32
    %c0_i32_2 = arith.constant 0 : i32
    return %c0_i32, %c0_i32_0, %c0_i32_1 : i32, i32, i32
  }
  func.func @transform_4(%arg0: i32) -> (i32, i32) {
    %c0_i32 = arith.constant 0 : i32
    %c0_i32_0 = arith.constant 0 : i32
    %c0_i32_1 = arith.constant 0 : i32
    return %c0_i32, %c0_i32_0 : i32, i32
  }
  func.func @transform_5(%arg0: i32) -> (i32, i32, i32, i32) {
    %c0_i32 = arith.constant 0 : i32
    %c0_i32_0 = arith.constant 0 : i32
    %c0_i32_1 = arith.constant 0 : i32
    %c0_i32_2 = arith.constant 0 : i32
    return %arg0, %c0_i32, %c0_i32_0, %c0_i32_1 : i32, i32, i32, i32
  }
  func.func @transform_6(%arg0: i32) -> (i32, i32, i32, i32) {
    %c0_i32 = arith.constant 0 : i32
    %c0_i32_0 = arith.constant 0 : i32
    %c0_i32_1 = arith.constant 0 : i32
    %c0_i32_2 = arith.constant 0 : i32
    return %arg0, %c0_i32, %c0_i32_0, %c0_i32_1 : i32, i32, i32, i32
  }
  func.func @transform_7(%arg0: i32) -> (i32, i32, i32) {
    %c0_i32 = arith.constant 0 : i32
    %c0_i32_0 = arith.constant 0 : i32
    %c0_i32_1 = arith.constant 0 : i32
    return %arg0, %c0_i32, %c0_i32_0 : i32, i32, i32
  }
  func.func @transform_8(%arg0: i32) -> (i32, i32, i32) {
    %c0_i32 = arith.constant 0 : i32
    %c0_i32_0 = arith.constant 0 : i32
    %c0_i32_1 = arith.constant 0 : i32
    return %arg0, %c0_i32, %c0_i32_0 : i32, i32, i32
  }
}

</mosaic_0001>

<bundles_post_ra>
// kernel: downconv_forward.3
= control target key start
LH: loop header
LB: loop body
LE: loop exit
PB: predicated region body
PF: predicated region fallthrough
CT: control target
= control target key end

     0   :  { %s600_s18 = smov 0   ;;  %s839_s0 = inlined_call_operand.vmem [shape: f32[1,8], index: 0, kind: input, shape index: {}]   ;;  %s840_s1 = inlined_call_operand.vmem [shape: f32[1,8], index: 1, kind: input, shape index: {}]   ;;  %s841_s2 = inlined_call_operand.vmem [shape: f32[2,16,16,8], index: 2, kind: input, shape index: {}]   ;;  %s842_s3 = inlined_call_operand.vmem [shape: f32[2,8,8,8], index: 3, kind: input, shape index: {}]   ;;  %s843_s4 = inlined_call_operand.vmem [shape: f32[2,16,16,8], index: 4, kind: output, shape index: {0}]   ;;  %s844_s5 = inlined_call_operand.vmem [shape: f32[2,8,8,8], index: 5, kind: output, shape index: {1}]  }
   0x1 LB: > { %s533_s19 = sadd.s32 4294967295, %s568_s18   ;;  %p537_p0 = scmp.ge.s32.totalorder %s568_s18, 1  ;;  %s568_s18 = sphi %s600_s18, %s16_s18  }
   0x2   : > { %p200_p1 = scmp.lt.s32.totalorder %s568_s18, 3 }
   0x4   : > { %p201_p2 = pnand %p537_p0, %p200_p1 }
   0x5   : > { %p238_p3 = scmp.lt.s32.totalorder (!%p201_p2), %s533_s19, 1  ;;  %v614_v0 = vld [vmem:[%s839_s0] ss:$0 sm:$0xff] (!%p201_p2)  ;;  %vm368_vm0 = vcmask (!%p201_p2), 64512  }
   0x6   : > { %204 = sbr.rel (%p201_p2) target bundleno = 44 (0x2c), region = 36  ;;  %v624_v1 = vld [vmem:[%s840_s1] ss:$0 sm:$0xff] (!%p201_p2) }
   0xd   : > { %s846_s19 = smov (!%p238_p3, %s533_s19), 1 }
   0xe   : > { %s550_s20 = sshll.u32 %s846_s19, 8  ;;  %s551_s6 = sshll.u32 %s846_s19, 6 }
   0xf   : > { %s619_s25 = scalar_lea.vmem %s841_s2, %s550_s20  ;;  %s638_s30 = scalar_lea.vmem %s843_s4, %s550_s20 }
  0x10   : > { %v260_v2 = vld [vmem:[%s619_s25] sm:$0xff]  ;;  %v261_v3 = vld [vmem:[%s619_s25 + $0x8] sm:$0xff]  ;;  %v262_v4 = vld [vmem:[%s619_s25 + $0x10] sm:$0xff]  ;;  %s739_s9 = scalar_lea.vmem %s842_s3, %s551_s6  ;;  %s257_s12 = scalar_lea.vmem %s844_s5, %s551_s6 }
  0x11   : > { %v298_v5 = vsub.f32 %v260_v2, %v614_v0  ;;  %v299_v6 = vsub.f32 %v261_v3, %v614_v0  ;;  %v300_v7 = vsub.f32 %v262_v4, %v614_v0  ;;  %v263_v8 = vld [vmem:[%s619_s25 + $0x18] sm:$0xff]  ;;  %v264_v9 = vld [vmem:[%s619_s25 + $0x20] sm:$0xff]  ;;  %v265_v10 = vld [vmem:[%s619_s25 + $0x28] sm:$0xff] }
  0x12   : > { %v301_v11 = vsub.f32 %v263_v8, %v614_v0  ;;  %v302_v12 = vsub.f32 %v264_v9, %v614_v0  ;;  %v303_v13 = vsub.f32 %v265_v10, %v614_v0  ;;  %v266_v14 = vld [vmem:[%s619_s25 + $0x30] sm:$0xff]  ;;  %v267_v15 = vld [vmem:[%s619_s25 + $0x38] sm:$0xff]  ;;  %v268_v16 = vld [vmem:[%s619_s25 + $0x40] sm:$0xff] }
  0x13   : > { %v336_v17 = vmul.f32 %v624_v1, %v298_v5  ;;  %v337_v18 = vmul.f32 %v624_v1, %v299_v6  ;;  %v338_v19 = vmul.f32 %v624_v1, %v300_v7  ;;  %v304_v20 = vsub.f32 %v266_v14, %v614_v0  ;;  %v269_v21 = vld [vmem:[%s619_s25 + $0x48] sm:$0xff]  ;;  %v270_v22 = vld [vmem:[%s619_s25 + $0x50] sm:$0xff]  ;;  %v271_v23 = vld [vmem:[%s619_s25 + $0x58] sm:$0xff] }
  0x14   : > { %v339_v24 = vmul.f32 %v624_v1, %v301_v11  ;;  %v340_v25 = vmul.f32 %v624_v1, %v302_v12  ;;  %v341_v26 = vmul.f32 %v624_v1, %v303_v13  ;;  %v305_v27 = vsub.f32 %v267_v15, %v614_v0  ;;  %v272_v28 = vld [vmem:[%s619_s25 + $0x60] sm:$0xff]  ;;  %v273_v29 = vld [vmem:[%s619_s25 + $0x68] sm:$0xff]  ;;  %v274_v30 = vld [vmem:[%s619_s25 + $0x70] sm:$0xff] }
  0x15   : > { %369 = vst.msk [vmem:[%s638_s30] sm:$0xff] %vm368_vm0, %v336_v17  ;;  %370 = vst.msk [vmem:[%s638_s30 + $0x8] sm:$0xff] %vm368_vm0, %v337_v18  ;;  %v342_v31 = vmul.f32 %v624_v1, %v304_v20  ;;  %v306_v32 = vsub.f32 %v268_v16, %v614_v0  ;;  %v307_v33 = vsub.f32 %v269_v21, %v614_v0  ;;  %v275_v35 = vld [vmem:[%s619_s25 + $0x78] sm:$0xff]  ;;  %v276_v40 = vld [vmem:[%s619_s25 + $0x80] sm:$0xff] }
  0x16   : > { %371 = vst.msk [vmem:[%s638_s30 + $0x10] sm:$0xff] %vm368_vm0, %v338_v19  ;;  %v308_v34 = vsub.f32 %v270_v22, %v614_v0  ;;  %372 = vst.msk [vmem:[%s638_s30 + $0x18] sm:$0xff] %vm368_vm0, %v339_v24  ;;  %v343_v36 = vmul.f32 %v624_v1, %v305_v27  ;;  %v309_v37 = vsub.f32 %v271_v23, %v614_v0  ;;  %v277_v41 = vld [vmem:[%s619_s25 + $0x88] sm:$0xff]  ;;  %v278_v42 = vld [vmem:[%s619_s25 + $0x90] sm:$0xff] }
  0x17   : > { %373 = vst.msk [vmem:[%s638_s30 + $0x20] sm:$0xff] %vm368_vm0, %v340_v25  ;;  %374 = vst.msk [vmem:[%s638_s30 + $0x28] sm:$0xff] %vm368_vm0, %v341_v26  ;;  %v310_v38 = vsub.f32 %v272_v28, %v614_v0  ;;  %v311_v39 = vsub.f32 %v273_v29, %v614_v0  ;;  %v344_v43 = vmul.f32 %v624_v1, %v306_v32  ;;  %v279_v47 = vld [vmem:[%s619_s25 + $0x98] sm:$0xff]  ;;  %v280_v48 = vld [vmem:[%s619_s25 + $0xa0] sm:$0xff] }
  0x18   : > { %375 = vst.msk [vmem:[%s638_s30 + $0x30] sm:$0xff] %vm368_vm0, %v342_v31  ;;  %v345_v44 = vmul.f32 %v624_v1, %v307_v33  ;;  %v346_v45 = vmul.f32 %v624_v1, %v308_v34  ;;  %v312_v46 = vsub.f32 %v274_v30, %v614_v0  ;;  %v281_v49 = vld [vmem:[%s619_s25 + $0xa8] sm:$0xff]  ;;  %376 = vst.msk [vmem:[%s638_s30 + $0x38] sm:$0xff] %vm368_vm0, %v343_v36  ;;  %v282_v54 = vld [vmem:[%s619_s25 + $0xb0] sm:$0xff] }
  0x19   : > { %v347_v50 = vmul.f32 %v624_v1, %v309_v37  ;;  %v348_v51 = vmul.f32 %v624_v1, %v310_v38  ;;  %v349_v52 = vmul.f32 %v624_v1, %v311_v39  ;;  %v313_v53 = vsub.f32 %v275_v35, %v614_v0  ;;  %377 = vst.msk [vmem:[%s638_s30 + $0x40] sm:$0xff] %vm368_vm0, %v344_v43  ;;  %v283_v59 = vld [vmem:[%s619_s25 + $0xb8] sm:$0xff]  ;;  %v284_v2 = vld [vmem:[%s619_s25 + $0xc0] sm:$0xff]  ;;  %v285_v3 = vld [vmem:[%s619_s25 + $0xc8] sm:$0xff] }
  0x1a   : > { %378 = vst.msk [vmem:[%s638_s30 + $0x48] sm:$0xff] %vm368_vm0, %v345_v44  ;;  %379 = vst.msk [vmem:[%s638_s30 + $0x50] sm:$0xff] %vm368_vm0, %v346_v45  ;;  %v350_v55 = vmul.f32 %v624_v1, %v312_v46  ;;  %v314_v56 = vsub.f32 %v276_v40, %v614_v0  ;;  %v315_v57 = vsub.f32 %v277_v41, %v614_v0  ;;  %v286_v4 = vld [vmem:[%s619_s25 + $0xd0] sm:$0xff]  ;;  %v287_v9 = vld [vmem:[%s619_s25 + $0xd8] sm:$0xff] }
  0x1b   : > { %v316_v58 = vsub.f32 %v278_v42, %v614_v0  ;;  %380 = vst.msk [vmem:[%s638_s30 + $0x58] sm:$0xff] %vm368_vm0, %v347_v50  ;;  %381 = vst.msk [vmem:[%s638_s30 + $0x60] sm:$0xff] %vm368_vm0, %v348_v51  ;;  %v351_v60 = vmul.f32 %v624_v1, %v313_v53  ;;  %v317_v61 = vsub.f32 %v279_v47, %v614_v0  ;;  %v288_v10 = vld [vmem:[%s619_s25 + $0xe0] sm:$0xff]  ;;  %v289_v11 = vld [vmem:[%s619_s25 + $0xe8] sm:$0xff] }
  0x1c   : > { %382 = vst.msk [vmem:[%s638_s30 + $0x68] sm:$0xff] %vm368_vm0, %v349_v52  ;;  %v318_v62 = vsub.f32 %v280_v48, %v614_v0  ;;  %v319_v63 = vsub.f32 %v281_v49, %v614_v0  ;;  %383 = vst.msk [vmem:[%s638_s30 + $0x70] sm:$0xff] %vm368_vm0, %v350_v55  ;;  %v352_v5 = vmul.f32 %v624_v1, %v314_v56  ;;  %v290_v16 = vld [vmem:[%s619_s25 + $0xf0] sm:$0xff]  ;;  %v291_v21 = vld [vmem:[%s619_s25 + $0xf8] sm:$0xff] }
  0x1d   : > { %v353_v6 = vmul.f32 %v624_v1, %v315_v57  ;;  %v354_v7 = vmul.f32 %v624_v1, %v316_v58  ;;  %v320_v8 = vsub.f32 %v282_v54, %v614_v0  ;;  %384 = vst.msk [vmem:[%s638_s30 + $0x78] sm:$0xff] %vm368_vm0, %v351_v60  ;;  %v355_v12 = vmul.f32 %v624_v1, %v317_v61  ;;  %v401_v26 = vld [vmem:[%s739_s9] sm:$0xff]  ;;  %v402_v27 = vld [vmem:[%s739_s9 + $0x8] sm:$0xff]  ;;  %v403_v28 = vld [vmem:[%s739_s9 + $0x10] sm:$0xff] }
  0x1e   : > { %v356_v13 = vmul.f32 %v624_v1, %v318_v62  ;;  %v357_v14 = vmul.f32 %v624_v1, %v319_v63  ;;  %v321_v15 = vsub.f32 %v283_v59, %v614_v0  ;;  %385 = vst.msk [vmem:[%s638_s30 + $0x80] sm:$0xff] %vm368_vm0, %v352_v5  ;;  %v322_v18 = vsub.f32 %v284_v2, %v614_v0  ;;  %v404_v33 = vld [vmem:[%s739_s9 + $0x18] sm:$0xff]  ;;  %v405_v34 = vld [vmem:[%s739_s9 + $0x20] sm:$0xff]  ;;  %v406_v35 = vld [vmem:[%s739_s9 + $0x28] sm:$0xff] }
  0x1f   : > { %386 = vst.msk [vmem:[%s638_s30 + $0x88] sm:$0xff] %vm368_vm0, %v353_v6  ;;  %387 = vst.msk [vmem:[%s638_s30 + $0x90] sm:$0xff] %vm368_vm0, %v354_v7  ;;  %v358_v17 = vmul.f32 %v624_v1, %v320_v8  ;;  %v323_v19 = vsub.f32 %v285_v3, %v614_v0  ;;  %v324_v20 = vsub.f32 %v286_v4, %v614_v0  ;;  %v407_v40 = vld [vmem:[%s739_s9 + $0x30] sm:$0xff]  ;;  %v408_v45 = vld [vmem:[%s739_s9 + $0x38] sm:$0xff] }
  0x20   : > { %388 = vst.msk [vmem:[%s638_s30 + $0x98] sm:$0xff] %vm368_vm0, %v355_v12  ;;  %389 = vst.msk [vmem:[%s638_s30 + $0xa0] sm:$0xff] %vm368_vm0, %v356_v13  ;;  %v359_v22 = vmul.f32 %v624_v1, %v321_v15  ;;  %v325_v23 = vsub.f32 %v287_v9, %v614_v0  ;;  %v326_v24 = vsub.f32 %v288_v10, %v614_v0 }
  0x21   : > { %390 = vst.msk [vmem:[%s638_s30 + $0xa8] sm:$0xff] %vm368_vm0, %v357_v14  ;;  %v327_v25 = vsub.f32 %v289_v11, %v614_v0  ;;  %391 = vst.msk [vmem:[%s638_s30 + $0xb0] sm:$0xff] %vm368_vm0, %v358_v17  ;;  %v360_v29 = vmul.f32 %v624_v1, %v322_v18  ;;  %v361_v30 = vmul.f32 %v624_v1, %v323_v19 }
  0x22   : > { %v362_v31 = vmul.f32 %v624_v1, %v324_v20  ;;  %v328_v32 = vsub.f32 %v290_v16, %v614_v0  ;;  %392 = vst.msk [vmem:[%s638_s30 + $0xb8] sm:$0xff] %vm368_vm0, %v359_v22  ;;  %v363_v36 = vmul.f32 %v624_v1, %v325_v23  ;;  %v364_v37 = vmul.f32 %v624_v1, %v326_v24 }
  0x23   : > { %v365_v38 = vmul.f32 %v624_v1, %v327_v25  ;;  %v329_v39 = vsub.f32 %v291_v21, %v614_v0  ;;  %393 = vst.msk [vmem:[%s638_s30 + $0xc0] sm:$0xff] %vm368_vm0, %v360_v29  ;;  %394 = vst.msk [vmem:[%s638_s30 + $0xc8] sm:$0xff] %vm368_vm0, %v361_v30  ;;  %v409_v42 = vsub.f32 %v401_v26, %v614_v0 }
  0x24   : > { %395 = vst.msk [vmem:[%s638_s30 + $0xd0] sm:$0xff] %vm368_vm0, %v362_v31  ;;  %v366_v41 = vmul.f32 %v624_v1, %v328_v32  ;;  %v410_v43 = vsub.f32 %v402_v27, %v614_v0  ;;  %v411_v44 = vsub.f32 %v403_v28, %v614_v0  ;;  %396 = vst.msk [vmem:[%s638_s30 + $0xd8] sm:$0xff] %vm368_vm0, %v363_v36 }
  0x25   : > { %397 = vst.msk [vmem:[%s638_s30 + $0xe0] sm:$0xff] %vm368_vm0, %v364_v37  ;;  %398 = vst.msk [vmem:[%s638_s30 + $0xe8] sm:$0xff] %vm368_vm0, %v365_v38  ;;  %v367_v46 = vmul.f32 %v624_v1, %v329_v39  ;;  %v412_v47 = vsub.f32 %v404_v33, %v614_v0  ;;  %v413_v48 = vsub.f32 %v405_v34, %v614_v0 }
  0x26   : > { %v414_v49 = vsub.f32 %v406_v35, %v614_v0  ;;  %399 = vst.msk [vmem:[%s638_s30 + $0xf0] sm:$0xff] %vm368_vm0, %v366_v41  ;;  %v417_v50 = vmul.f32 %v624_v1, %v409_v42  ;;  %v418_v51 = vmul.f32 %v624_v1, %v410_v43  ;;  %v419_v52 = vmul.f32 %v624_v1, %v411_v44 }
  0x27   : > { %v415_v53 = vsub.f32 %v407_v40, %v614_v0  ;;  %400 = vst.msk [vmem:[%s638_s30 + $0xf8] sm:$0xff] %vm368_vm0, %v367_v46  ;;  %v420_v54 = vmul.f32 %v624_v1, %v412_v47  ;;  %v421_v55 = vmul.f32 %v624_v1, %v413_v48  ;;  %v416_v57 = vsub.f32 %v408_v45, %v614_v0 }
  0x28   : > { %v422_v56 = vmul.f32 %v624_v1, %v414_v49  ;;  %425 = vst.msk [vmem:[%s257_s12] sm:$0xff] %vm368_vm0, %v417_v50  ;;  %426 = vst.msk [vmem:[%s257_s12 + $0x8] sm:$0xff] %vm368_vm0, %v418_v51 }
  0x29   : > { %427 = vst.msk [vmem:[%s257_s12 + $0x10] sm:$0xff] %vm368_vm0, %v419_v52  ;;  %v423_v58 = vmul.f32 %v624_v1, %v415_v53  ;;  %428 = vst.msk [vmem:[%s257_s12 + $0x18] sm:$0xff] %vm368_vm0, %v420_v54  ;;  %v424_v59 = vmul.f32 %v624_v1, %v416_v57 }
  0x2a   : > { %429 = vst.msk [vmem:[%s257_s12 + $0x20] sm:$0xff] %vm368_vm0, %v421_v55  ;;  %430 = vst.msk [vmem:[%s257_s12 + $0x28] sm:$0xff] %vm368_vm0, %v422_v56 }
  0x2b   : > { %431 = vst.msk [vmem:[%s257_s12 + $0x30] sm:$0xff] %vm368_vm0, %v423_v58  ;;  %432 = vst.msk [vmem:[%s257_s12 + $0x38] sm:$0xff] %vm368_vm0, %v424_v59 }
  0x2c PF: > { %s16_s18 = sadd.s32 1, %s568_s18  }
  0x2d   : > { %p13_p4 = scmp.ge.s32.totalorder %s16_s18, 4  }
  0x2f   :  { %15 = sbr.rel (!%p13_p4) target bundleno = 1 (0x1), region = 81 }

// kernel: downconv_forward.2
= control target key start
LH: loop header
LB: loop body
LE: loop exit
PB: predicated region body
PF: predicated region fallthrough
CT: control target
= control target key end

     0   :  { %s9091_s27 = smov 0   ;;  %s10704_s0 = inlined_call_operand.vmem [shape: f32[2,16,16,4], index: 0, kind: input, shape index: {}]   ;;  %s10705_s1 = inlined_call_operand.vmem [shape: bf16[9,4,8], index: 1, kind: input, shape index: {}]   ;;  %s10706_s2 = inlined_call_operand.vmem [shape: f32[1,8], index: 2, kind: input, shape index: {}]   ;;  %s10707_s3 = inlined_call_operand.vmem [shape: bf16[9,8,8], index: 3, kind: input, shape index: {}]   ;;  %s10708_s4 = inlined_call_operand.vmem [shape: f32[1,8], index: 4, kind: input, shape index: {}]   ;;  %s10709_s5 = inlined_call_operand.vmem [shape: f32[2,16,16,8], index: 5, kind: output, shape index: {0}]   ;;  %s10710_s6 = inlined_call_operand.vmem [shape: f32[2,8,8,8], index: 6, kind: output, shape index: {1}]   ;;  %s10711_s7 = inlined_call_operand.vmem [shape: f32[2,1,8], index: 7, kind: output, shape index: {2}]   ;;  %s10712_s8 = inlined_call_operand.vmem [shape: f32[2,1,8], index: 8, kind: output, shape index: {3}]  }
   0x1 LB: > { %s7191_s28 = sadd.s32 4294967295, %s9042_s27   ;;  %p7195_p0 = scmp.ge.s32.totalorder %s9042_s27, 1  ;;  %s9042_s27 = sphi %s9091_s27, %s19_s27  }
   0x2   : > { %p269_p1 = scmp.lt.s32.totalorder %s9042_s27, 3 }
   0x4   : > { %p270_p2 = pnand %p7195_p0, %p269_p1 }
   0x5   : > { %v7202_v0 = vld [vmem:[%s10705_s1 + $0x2] sm:$0x3] (!%p270_p2)  ;;  %vm633_vm0 = vcmask (!%p270_p2), 1041408   ;;  %vm336_vm1 = vcmask (!%p270_p2), 31744   ;;  %vm339_vm2 = vcmask (!%p270_p2), 25600   ;;  %v9044_v2 = vmov (!%p270_p2), 0.0  }
   0x6   : > { %273 = sbr.rel (%p270_p2) target bundleno = 1654 (0x676), region = 40  ;;  %9007 = vmatprep.subr.msk.bf16.mxu0 (!%p270_p2), %vm633_vm0, %v7202_v0  ;;  %v635_v1 = vsel (!%p270_p2), %vm633_vm0, %v7202_v0, 0  ;;  %337 = vst.msk [vmem:[#allocation2] sm:$0xff] (!%p270_p2), %vm336_vm1, %v9044_v2  ;;  %338 = vst.msk [vmem:[#allocation2 + $0x8] sm:$0xff] (!%p270_p2), %vm336_vm1, %v9044_v2  ;;  %v9117_v3 = vld [vmem:[%s10705_s1] sm:$0x3] (!%p270_p2) }
   0x7   : > { %340 = vst.msk [vmem:[#allocation2 + $0x10] sm:$0x3] (!%p270_p2), %vm339_vm2, %v9044_v2  ;;  %344 = vst.msk [vmem:[#allocation2 + $0x1a8] sm:$0x3] (!%p270_p2), %vm339_vm2, %v9044_v2  ;;  %p314_p3 = scmp.lt.s32.totalorder (!%p270_p2), %s7191_s28, 1  ;;  %7884 = vmatpush3.bf16.msra.mxu0 (!%p270_p2), %v635_v1  ;;  %vm346_vm3 = vcmask (!%p270_p2), 24576  }
   0x8   : > { %342 = vst.msk [vmem:[#allocation2 + $0x198] sm:$0xff] (!%p270_p2), %vm336_vm1, %v9044_v2  ;;  %343 = vst.msk [vmem:[#allocation2 + $0x1a0] sm:$0xff] (!%p270_p2), %vm336_vm1, %v9044_v2  ;;  %9008 = vmatprep.subr.msk.bf16.mxu0 (!%p270_p2), %vm633_vm0, %v9117_v3  ;;  %v847_v33 = vsel (!%p270_p2), %vm633_vm0, %v9117_v3, 0  ;;  %v9253_v38 = vld [vmem:[%s10705_s1 + $0x4] sm:$0x3] (!%p270_p2)  ;;  %vm379_vm4 = vcmask (!%p270_p2), 64512  }
   0x9   : > { %347 = vst.msk [vmem:[#allocation2 + $0x18] sm:$0x1] (!%p270_p2), %vm346_vm3, %v9044_v2  ;;  %348 = vst.msk [vmem:[#allocation2 + $0x30] sm:$0x1] (!%p270_p2), %vm346_vm3, %v9044_v2  ;;  %vm389_vm5 = vcmask (!%p270_p2), 57344   ;;  %vm382_vm6 = vcmask (!%p270_p2), 58368  }
   0xa   : > { %349 = vst.msk [vmem:[#allocation2 + $0x48] sm:$0x1] (!%p270_p2), %vm346_vm3, %v9044_v2  ;;  %350 = vst.msk [vmem:[#allocation2 + $0x60] sm:$0x1] (!%p270_p2), %vm346_vm3, %v9044_v2  ;;  %vm3319_vm7 = vcmask (!%p270_p2), 1043456   ;;  %vm6974_vm8 = vcmask (!%p270_p2), 1041409  }
   0xb   : > { %351 = vst.msk [vmem:[#allocation2 + $0x78] sm:$0x1] (!%p270_p2), %vm346_vm3, %v9044_v2  ;;  %352 = vst.msk [vmem:[#allocation2 + $0x90] sm:$0x1] (!%p270_p2), %vm346_vm3, %v9044_v2  ;;  %vm6976_vm9 = vcmask (!%p270_p2), 1042434   ;;  %vm6978_vm10 = vcmask (!%p270_p2), 1043459  }
   0xc   : > { %353 = vst.msk [vmem:[#allocation2 + $0xa8] sm:$0x1] (!%p270_p2), %vm346_vm3, %v9044_v2  ;;  %354 = vst.msk [vmem:[#allocation2 + $0xc0] sm:$0x1] (!%p270_p2), %vm346_vm3, %v9044_v2  ;;  %vm6980_vm11 = vcmask (!%p270_p2), 1044484   ;;  %vm6982_vm12 = vcmask (!%p270_p2), 1045509  }
   0xd   : > { %s10714_s28 = smov (!%p314_p3, %s7191_s28), 1  ;;  %355 = vst.msk [vmem:[#allocation2 + $0xd8] sm:$0x1] %vm346_vm3, %v9044_v2  ;;  %356 = vst.msk [vmem:[#allocation2 + $0xf0] sm:$0x1] %vm346_vm3, %v9044_v2  ;;  %v535_v7 = vld [vmem:[#allocation2 + $0x1] sm:$0xff] }
   0xe   : > { %357 = vst.msk [vmem:[#allocation2 + $0x108] sm:$0x1] %vm346_vm3, %v9044_v2  ;;  %358 = vst.msk [vmem:[#allocation2 + $0x120] sm:$0x1] %vm346_vm3, %v9044_v2  ;;  %s7574_s11 = sshll.u32 %s10714_s28, 8  ;;  %v536_v8 = vld [vmem:[#allocation2 + $0x9] sm:$0xff]  ;;  %s331_s23 = scalar_lea.vmem %s10711_s7, %s10714_s28 }
   0xf   : > { %359 = vst.msk [vmem:[#allocation2 + $0x138] sm:$0x1] %vm346_vm3, %v9044_v2  ;;  %360 = vst.msk [vmem:[#allocation2 + $0x150] sm:$0x1] %vm346_vm3, %v9044_v2  ;;  %s9193_s14 = scalar_lea.vmem %s10704_s0, %s7574_s11  ;;  %v567_v10 = vpack.c.bf16 %v536_v8, %v535_v7  ;;  %s10246_s15 = scalar_lea.vmem %s10709_s5, %s7574_s11  ;;  %vm6984_vm13 = vcmask 1046534   ;;  %vm6986_vm14 = vcmask 1047559  }
  0x10   : > { %361 = vst.msk [vmem:[#allocation2 + $0x168] sm:$0x1] %vm346_vm3, %v9044_v2  ;;  %362 = vst.msk [vmem:[#allocation2 + $0x180] sm:$0x1] %vm346_vm3, %v9044_v2  ;;  %v422_v4 = vld [vmem:[%s9193_s14] sm:$0xff]  ;;  %v423_v5 = vld [vmem:[%s9193_s14 + $0x8] sm:$0xff]  ;;  %s334_s26 = scalar_lea.vmem %s10712_s8, %s10714_s28 }
  0x11   : > { %363 = vst.msk [vmem:[#allocation2 + $0x29] sm:$0x1] %vm346_vm3, %v9044_v2  ;;  %364 = vst.msk [vmem:[#allocation2 + $0x41] sm:$0x1] %vm346_vm3, %v9044_v2  ;;  %v424_v6 = vld [vmem:[%s9193_s14 + $0x10] sm:$0xff]  ;;  %v425_v9 = vld [vmem:[%s9193_s14 + $0x18] sm:$0xff]  ;;  %7885 = vmatprep.mubr.msk.bf16.mxu0 %vm336_vm1, %v567_v10 }
  0x12   : > { %365 = vst.msk [vmem:[#allocation2 + $0x59] sm:$0x1] %vm346_vm3, %v9044_v2  ;;  %366 = vst.msk [vmem:[#allocation2 + $0x71] sm:$0x1] %vm346_vm3, %v9044_v2  ;;  %v426_v11 = vld [vmem:[%s9193_s14 + $0x20] sm:$0xff]  ;;  %v427_v12 = vld [vmem:[%s9193_s14 + $0x28] sm:$0xff] }
  0x13   : > { %367 = vst.msk [vmem:[#allocation2 + $0x89] sm:$0x1] %vm346_vm3, %v9044_v2  ;;  %368 = vst.msk [vmem:[#allocation2 + $0xa1] sm:$0x1] %vm346_vm3, %v9044_v2  ;;  %v428_v13 = vld [vmem:[%s9193_s14 + $0x30] sm:$0xff]  ;;  %v429_v14 = vld [vmem:[%s9193_s14 + $0x38] sm:$0xff] }
  0x14   : > { %369 = vst.msk [vmem:[#allocation2 + $0xb9] sm:$0x1] %vm346_vm3, %v9044_v2  ;;  %370 = vst.msk [vmem:[#allocation2 + $0xd1] sm:$0x1] %vm346_vm3, %v9044_v2  ;;  %v430_v15 = vld [vmem:[%s9193_s14 + $0x40] sm:$0xff]  ;;  %v431_v16 = vld [vmem:[%s9193_s14 + $0x48] sm:$0xff] }
  0x15   : > { %371 = vst.msk [vmem:[#allocation2 + $0xe9] sm:$0x1] %vm346_vm3, %v9044_v2  ;;  %372 = vst.msk [vmem:[#allocation2 + $0x101] sm:$0x1] %vm346_vm3, %v9044_v2  ;;  %v432_v17 = vld [vmem:[%s9193_s14 + $0x50] sm:$0xff]  ;;  %v433_v18 = vld [vmem:[%s9193_s14 + $0x58] sm:$0xff] }
  0x16   : > { %373 = vst.msk [vmem:[#allocation2 + $0x119] sm:$0x1] %vm346_vm3, %v9044_v2  ;;  %374 = vst.msk [vmem:[#allocation2 + $0x131] sm:$0x1] %vm346_vm3, %v9044_v2  ;;  %v434_v19 = vld [vmem:[%s9193_s14 + $0x60] sm:$0xff]  ;;  %v435_v20 = vld [vmem:[%s9193_s14 + $0x68] sm:$0xff] }
  0x17   : > { %375 = vst.msk [vmem:[#allocation2 + $0x149] sm:$0x1] %vm346_vm3, %v9044_v2  ;;  %376 = vst.msk [vmem:[#allocation2 + $0x161] sm:$0x1] %vm346_vm3, %v9044_v2  ;;  %v436_v21 = vld [vmem:[%s9193_s14 + $0x70] sm:$0xff]  ;;  %v437_v22 = vld [vmem:[%s9193_s14 + $0x78] sm:$0xff] }
  0x18   : > { %377 = vst.msk [vmem:[#allocation2 + $0x179] sm:$0x1] %vm346_vm3, %v9044_v2  ;;  %378 = vst.msk [vmem:[#allocation2 + $0x191] sm:$0x1] %vm346_vm3, %v9044_v2  ;;  %v438_v23 = vld [vmem:[%s9193_s14 + $0x80] sm:$0xff]  ;;  %v439_v24 = vld [vmem:[%s9193_s14 + $0x88] sm:$0xff] }
  0x19   : > { %454 = vst.msk [vmem:[#allocation2 + $0x19] sm:$0xff] %vm336_vm1, %v422_v4  ;;  %455 = vst.msk [vmem:[#allocation2 + $0x21] sm:$0xff] %vm336_vm1, %v423_v5  ;;  %v440_v25 = vld [vmem:[%s9193_s14 + $0x90] sm:$0xff]  ;;  %v441_v26 = vld [vmem:[%s9193_s14 + $0x98] sm:$0xff]  ;;  %s7576_s11 = sshll.u32 %s10714_s28, 6 }
  0x1a   : > { %456 = vst.msk [vmem:[#allocation2 + $0x31] sm:$0xff] %vm336_vm1, %v424_v6  ;;  %457 = vst.msk [vmem:[#allocation2 + $0x39] sm:$0xff] %vm336_vm1, %v425_v9  ;;  %v442_v27 = vld [vmem:[%s9193_s14 + $0xa0] sm:$0xff]  ;;  %v443_v28 = vld [vmem:[%s9193_s14 + $0xa8] sm:$0xff]  ;;  %s10305_s18 = scalar_lea.vmem %s10710_s6, %s7576_s11 }
  0x1b   : > { %458 = vst.msk [vmem:[#allocation2 + $0x49] sm:$0xff] %vm336_vm1, %v426_v11  ;;  %459 = vst.msk [vmem:[#allocation2 + $0x51] sm:$0xff] %vm336_vm1, %v427_v12  ;;  %v444_v35 = vld [vmem:[%s9193_s14 + $0xb0] sm:$0xff]  ;;  %v445_v36 = vld [vmem:[%s9193_s14 + $0xb8] sm:$0xff] }
  0x1c   : > { %460 = vst.msk [vmem:[#allocation2 + $0x61] sm:$0xff] %vm336_vm1, %v428_v13  ;;  %461 = vst.msk [vmem:[#allocation2 + $0x69] sm:$0xff] %vm336_vm1, %v429_v14  ;;  %v446_v45 = vld [vmem:[%s9193_s14 + $0xc0] sm:$0xff]  ;;  %v447_v46 = vld [vmem:[%s9193_s14 + $0xc8] sm:$0xff] }
  0x1d   : > { %462 = vst.msk [vmem:[#allocation2 + $0x79] sm:$0xff] %vm336_vm1, %v430_v15  ;;  %463 = vst.msk [vmem:[#allocation2 + $0x81] sm:$0xff] %vm336_vm1, %v431_v16  ;;  %v448_v47 = vld [vmem:[%s9193_s14 + $0xd0] sm:$0xff]  ;;  %v449_v48 = vld [vmem:[%s9193_s14 + $0xd8] sm:$0xff] }
  0x1e   : > { %464 = vst.msk [vmem:[#allocation2 + $0x91] sm:$0xff] %vm336_vm1, %v432_v17  ;;  %465 = vst.msk [vmem:[#allocation2 + $0x99] sm:$0xff] %vm336_vm1, %v433_v18  ;;  %v450_v49 = vld [vmem:[%s9193_s14 + $0xe0] sm:$0xff]  ;;  %v451_v50 = vld [vmem:[%s9193_s14 + $0xe8] sm:$0xff] }
  0x1f   : > { %466 = vst.msk [vmem:[#allocation2 + $0xa9] sm:$0xff] %vm336_vm1, %v434_v19  ;;  %467 = vst.msk [vmem:[#allocation2 + $0xb1] sm:$0xff] %vm336_vm1, %v435_v20  ;;  %v486_v20 = vld [vmem:[#allocation2] sm:$0xff] }
  0x20   : > { %468 = vst.msk [vmem:[#allocation2 + $0xc1] sm:$0xff] %vm336_vm1, %v436_v21  ;;  %469 = vst.msk [vmem:[#allocation2 + $0xc9] sm:$0xff] %vm336_vm1, %v437_v22  ;;  %v537_v29 = vld [vmem:[#allocation2 + $0x19] sm:$0xff]  ;;  %v538_v30 = vld [vmem:[#allocation2 + $0x21] sm:$0xff] }
  0x21   : > { %470 = vst.msk [vmem:[#allocation2 + $0xd9] sm:$0xff] %vm336_vm1, %v438_v23  ;;  %471 = vst.msk [vmem:[#allocation2 + $0xe1] sm:$0xff] %vm336_vm1, %v439_v24  ;;  %v539_v31 = vld [vmem:[#allocation2 + $0x31] sm:$0xff]  ;;  %v9240_v32 = vpack.c.bf16 %v538_v30, %v537_v29  ;;  %v540_v34 = vld [vmem:[#allocation2 + $0x39] sm:$0xff]  ;;  %v1109_v30 = vsel %vm633_vm0, %v9253_v38, 0 }
  0x22   : > { %472 = vst.msk [vmem:[#allocation2 + $0xf1] sm:$0xff] %vm336_vm1, %v440_v25  ;;  %473 = vst.msk [vmem:[#allocation2 + $0xf9] sm:$0xff] %vm336_vm1, %v441_v26  ;;  %v9246_v37 = vpack.c.bf16 %v540_v34, %v539_v31  ;;  %v541_v39 = vld [vmem:[#allocation2 + $0x49] sm:$0xff]  ;;  %v542_v40 = vld [vmem:[#allocation2 + $0x51] sm:$0xff] }
  0x23   : > { %474 = vst.msk [vmem:[#allocation2 + $0x109] sm:$0xff] %vm336_vm1, %v442_v27  ;;  %475 = vst.msk [vmem:[#allocation2 + $0x111] sm:$0xff] %vm336_vm1, %v443_v28  ;;  %7886 = vmatmul.mubr.msk.bf16.vlgmr.msra.gmra.mrb[0].mxu0 %vm336_vm1, %v9240_v32  ;;  %v543_v41 = vld [vmem:[#allocation2 + $0x61] sm:$0xff]  ;;  %v544_v42 = vld [vmem:[#allocation2 + $0x69] sm:$0xff]  ;;  %v9261_v43 = vpack.c.bf16 %v542_v40, %v541_v39 }
  0x24   : > { %476 = vst.msk [vmem:[#allocation2 + $0x121] sm:$0xff] %vm336_vm1, %v444_v35  ;;  %477 = vst.msk [vmem:[#allocation2 + $0x129] sm:$0xff] %vm336_vm1, %v445_v36  ;;  %7918 = vmatpush3.bf16.msra.mxu0 %v847_v33  ;;  %7889 = vmatprep.mubr.msk.bf16.mxu0 %vm336_vm1, %v9246_v37  ;;  %v9263_v44 = vpack.c.bf16 %v544_v42, %v543_v41  ;;  %v545_v51 = vld [vmem:[#allocation2 + $0x79] sm:$0xff]  ;;  %v546_v52 = vld [vmem:[#allocation2 + $0x81] sm:$0xff] }
  0x25   : > { %9009 = vmatprep.subr.msk.bf16.mxu0 %vm633_vm0, %v9253_v38  ;;  %478 = vst.msk [vmem:[#allocation2 + $0x139] sm:$0xff] %vm336_vm1, %v446_v45  ;;  %479 = vst.msk [vmem:[#allocation2 + $0x141] sm:$0xff] %vm336_vm1, %v447_v46  ;;  %v547_v53 = vld [vmem:[#allocation2 + $0x91] sm:$0xff]  ;;  %v548_v54 = vld [vmem:[#allocation2 + $0x99] sm:$0xff]  ;;  %v9281_v55 = vpack.c.bf16 %v546_v52, %v545_v51 }
  0x26   : > { %480 = vst.msk [vmem:[#allocation2 + $0x151] sm:$0xff] %vm336_vm1, %v448_v47  ;;  %481 = vst.msk [vmem:[#allocation2 + $0x159] sm:$0xff] %vm336_vm1, %v449_v48  ;;  %v9283_v56 = vpack.c.bf16 %v548_v54, %v547_v53  ;;  %v549_v57 = vld [vmem:[#allocation2 + $0xa9] sm:$0xff]  ;;  %v550_v58 = vld [vmem:[#allocation2 + $0xb1] sm:$0xff] }
  0x27   : > { %482 = vst.msk [vmem:[#allocation2 + $0x169] sm:$0xff] %vm336_vm1, %v450_v49  ;;  %483 = vst.msk [vmem:[#allocation2 + $0x171] sm:$0xff] %vm336_vm1, %v451_v50  ;;  %v551_v59 = vld [vmem:[#allocation2 + $0xc1] sm:$0xff]  ;;  %v552_v60 = vld [vmem:[#allocation2 + $0xc9] sm:$0xff]  ;;  %v9289_v61 = vpack.c.bf16 %v550_v58, %v549_v57 }
  0x28   : > { %v9291_v62 = vpack.c.bf16 %v552_v60, %v551_v59  ;;  %v553_v63 = vld [vmem:[#allocation2 + $0xd9] sm:$0xff]  ;;  %v554_v0 = vld [vmem:[#allocation2 + $0xe1] sm:$0xff]  ;;  %v490_v26 = vld [vmem:[#allocation2 + $0x30] sm:$0xff]  ;;  %380 = vst.msk [vmem:[#allocation3] sm:$0xff] %vm379_vm4, %v9044_v2 }
  0x29   : > { %v555_v1 = vld [vmem:[#allocation2 + $0xf1] sm:$0xff]  ;;  %v556_v3 = vld [vmem:[#allocation2 + $0xf9] sm:$0xff]  ;;  %v9297_v4 = vpack.c.bf16 %v554_v0, %v553_v63  ;;  %v487_v21 = vld [vmem:[#allocation2 + $0x8] sm:$0xff]  ;;  %381 = vst.msk [vmem:[#allocation3 + $0x8] sm:$0xff] %vm379_vm4, %v9044_v2 }
  0x2a   : > { %v9299_v5 = vpack.c.bf16 %v556_v3, %v555_v1  ;;  %v557_v6 = vld [vmem:[#allocation2 + $0x109] sm:$0xff]  ;;  %v558_v7 = vld [vmem:[#allocation2 + $0x111] sm:$0xff]  ;;  %v518_v23 = vpack.c.bf16 %v487_v21, %v486_v20  ;;  %v489_v25 = vld [vmem:[#allocation2 + $0x20] sm:$0xff]  ;;  %385 = vst.msk [vmem:[#allocation3 + $0x198] sm:$0xff] %vm379_vm4, %v9044_v2 }
  0x2b   : > { %7890 = vmatmul.mubr.msk.bf16.gmra.mrb[4].mxu0 %vm336_vm1, %v9261_v43  ;;  %v559_v8 = vld [vmem:[#allocation2 + $0x121] sm:$0xff]  ;;  %v560_v9 = vld [vmem:[#allocation2 + $0x129] sm:$0xff]  ;;  %v9305_v10 = vpack.c.bf16 %v558_v7, %v557_v6  ;;  %v488_v24 = vld [vmem:[#allocation2 + $0x18] sm:$0xff]  ;;  %386 = vst.msk [vmem:[#allocation3 + $0x1a0] sm:$0xff] %vm379_vm4, %v9044_v2 }
  0x2c   : > { %7893 = vmatprep.mubr.msk.bf16.mxu0 %vm336_vm1, %v9263_v44  ;;  %v9307_v11 = vpack.c.bf16 %v560_v9, %v559_v8  ;;  %v561_v12 = vld [vmem:[#allocation2 + $0x139] sm:$0xff]  ;;  %v562_v13 = vld [vmem:[#allocation2 + $0x141] sm:$0xff]  ;;  %v9326_v28 = vpack.c.bf16 %v489_v25, %v488_v24  ;;  %v493_v34 = vld [vmem:[#allocation2 + $0x50] sm:$0xff]  ;;  %390 = vst.msk [vmem:[#allocation3 + $0x18] sm:$0x1] %vm389_vm5, %v9044_v2 }
  0x2d   : > { %v563_v14 = vld [vmem:[#allocation2 + $0x151] sm:$0xff]  ;;  %v564_v15 = vld [vmem:[#allocation2 + $0x159] sm:$0xff]  ;;  %v9313_v16 = vpack.c.bf16 %v562_v13, %v561_v12  ;;  %v9335_v31 = vld [vmem:[%s10705_s1 + $0x6] sm:$0x3]  ;;  %391 = vst.msk [vmem:[#allocation3 + $0x30] sm:$0x1] %vm389_vm5, %v9044_v2 }
  0x2e   : > { %v9315_v17 = vpack.c.bf16 %v564_v15, %v563_v14  ;;  %v565_v18 = vld [vmem:[#allocation2 + $0x169] sm:$0xff]  ;;  %v566_v19 = vld [vmem:[#allocation2 + $0x171] sm:$0xff]  ;;  %v494_v35 = vld [vmem:[#allocation2 + $0x60] sm:$0xff]  ;;  %392 = vst.msk [vmem:[#allocation3 + $0x48] sm:$0x1] %vm389_vm5, %v9044_v2 }
  0x2f   : > { %v9321_v22 = vpack.c.bf16 %v566_v19, %v565_v18  ;;  %v491_v27 = vld [vmem:[#allocation2 + $0x38] sm:$0xff]  ;;  %v492_v33 = vld [vmem:[#allocation2 + $0x48] sm:$0xff]  ;;  %v497_v41 = vld [vmem:[#allocation2 + $0x80] sm:$0xff]  ;;  %393 = vst.msk [vmem:[#allocation3 + $0x60] sm:$0x1] %vm389_vm5, %v9044_v2 }
  0x30   : > { %v9328_v29 = vpack.c.bf16 %v491_v27, %v490_v26  ;;  %v495_v36 = vld [vmem:[#allocation2 + $0x68] sm:$0xff]  ;;  %v9343_v38 = vpack.c.bf16 %v493_v34, %v492_v33  ;;  %v496_v40 = vld [vmem:[#allocation2 + $0x78] sm:$0xff]  ;;  %v498_v42 = vld [vmem:[#allocation2 + $0x90] sm:$0xff]  ;;  %394 = vst.msk [vmem:[#allocation3 + $0x78] sm:$0x1] %vm389_vm5, %v9044_v2 }
  0x31   : > { %v9345_v39 = vpack.c.bf16 %v495_v36, %v494_v35  ;;  %v499_v45 = vld [vmem:[#allocation2 + $0x98] sm:$0xff]  ;;  %v9351_v46 = vpack.c.bf16 %v497_v41, %v496_v40  ;;  %v500_v48 = vld [vmem:[#allocation2 + $0xa8] sm:$0xff]  ;;  %v501_v49 = vld [vmem:[#allocation2 + $0xb0] sm:$0xff]  ;;  %v1403_v41 = vsel %vm633_vm0, %v9335_v31, 0  ;;  %395 = vst.msk [vmem:[#allocation3 + $0x90] sm:$0x1] %vm389_vm5, %v9044_v2 }
  0x32   : > { %v9353_v47 = vpack.c.bf16 %v499_v45, %v498_v42  ;;  %v502_v50 = vld [vmem:[#allocation2 + $0xc0] sm:$0xff]  ;;  %v503_v51 = vld [vmem:[#allocation2 + $0xc8] sm:$0xff]  ;;  %v9359_v52 = vpack.c.bf16 %v501_v49, %v500_v48  ;;  %v504_v54 = vld [vmem:[#allocation2 + $0xd8] sm:$0xff]  ;;  %396 = vst.msk [vmem:[#allocation3 + $0xa8] sm:$0x1] %vm389_vm5, %v9044_v2 }
  0x33   : > { %7894 = vmatmul.mubr.msk.bf16.gmra.mrb[8].mxu0 %vm336_vm1, %v9281_v55  ;;  %v9361_v53 = vpack.c.bf16 %v503_v51, %v502_v50  ;;  %v505_v57 = vld [vmem:[#allocation2 + $0xe0] sm:$0xff]  ;;  %v506_v58 = vld [vmem:[#allocation2 + $0xf0] sm:$0xff]  ;;  %v507_v59 = vld [vmem:[#allocation2 + $0xf8] sm:$0xff]  ;;  %397 = vst.msk [vmem:[#allocation3 + $0xc0] sm:$0x1] %vm389_vm5, %v9044_v2 }
  0x34   : > { %7897 = vmatprep.mubr.msk.bf16.mxu0 %vm336_vm1, %v9283_v56  ;;  %v9367_v60 = vpack.c.bf16 %v505_v57, %v504_v54  ;;  %v9369_v63 = vpack.c.bf16 %v507_v59, %v506_v58  ;;  %v508_v0 = vld [vmem:[#allocation2 + $0x108] sm:$0xff]  ;;  %v509_v1 = vld [vmem:[#allocation2 + $0x110] sm:$0xff]  ;;  %v510_v3 = vld [vmem:[#allocation2 + $0x120] sm:$0xff]  ;;  %398 = vst.msk [vmem:[#allocation3 + $0xd8] sm:$0x1] %vm389_vm5, %v9044_v2 }
  0x35   : > { %v511_v6 = vld [vmem:[#allocation2 + $0x128] sm:$0xff]  ;;  %v9375_v7 = vpack.c.bf16 %v509_v1, %v508_v0  ;;  %v512_v9 = vld [vmem:[#allocation2 + $0x138] sm:$0xff]  ;;  %v513_v12 = vld [vmem:[#allocation2 + $0x140] sm:$0xff]  ;;  %399 = vst.msk [vmem:[#allocation3 + $0xf0] sm:$0x1] %vm389_vm5, %v9044_v2 }
  0x36   : > { %v9377_v8 = vpack.c.bf16 %v511_v6, %v510_v3  ;;  %v514_v13 = vld [vmem:[#allocation2 + $0x150] sm:$0xff]  ;;  %v515_v14 = vld [vmem:[#allocation2 + $0x158] sm:$0xff]  ;;  %v9383_v15 = vpack.c.bf16 %v513_v12, %v512_v9  ;;  %v516_v21 = vld [vmem:[#allocation2 + $0x168] sm:$0xff]  ;;  %400 = vst.msk [vmem:[#allocation3 + $0x108] sm:$0x1] %vm389_vm5, %v9044_v2 }
  0x37   : > { %v9385_v18 = vpack.c.bf16 %v515_v14, %v514_v13  ;;  %v452_v19 = vld [vmem:[%s9193_s14 + $0xf0] sm:$0xff]  ;;  %v453_v20 = vld [vmem:[%s9193_s14 + $0xf8] sm:$0xff]  ;;  %v1010_v24 = vld [vmem:[#allocation2 + $0x2] sm:$0xff]  ;;  %401 = vst.msk [vmem:[#allocation3 + $0x120] sm:$0x1] %vm389_vm5, %v9044_v2 }
  0x38   : > { %484 = vst.msk [vmem:[#allocation2 + $0x181] sm:$0xff] %vm336_vm1, %v452_v19  ;;  %485 = vst.msk [vmem:[#allocation2 + $0x189] sm:$0xff] %vm336_vm1, %v453_v20  ;;  %v1011_v25 = vld [vmem:[#allocation2 + $0xa] sm:$0xff]  ;;  %v1013_v33 = vld [vmem:[#allocation2 + $0x22] sm:$0xff] }
  0x39   : > { %v1042_v27 = vpack.c.bf16 %v1011_v25, %v1010_v24  ;;  %v1014_v34 = vld [vmem:[#allocation2 + $0x32] sm:$0xff]  ;;  %v1015_v35 = vld [vmem:[#allocation2 + $0x3a] sm:$0xff]  ;;  %v7269_v42 = vld [vmem:[%s10705_s1 + $0x8] sm:$0x3]  ;;  %402 = vst.msk [vmem:[#allocation3 + $0x138] sm:$0x1] %vm389_vm5, %v9044_v2 }
  0x3a   : > { %v9402_v40 = vpack.c.bf16 %v1015_v35, %v1014_v34  ;;  %v1016_v45 = vld [vmem:[#allocation2 + $0x4a] sm:$0xff]  ;;  %v1017_v48 = vld [vmem:[#allocation2 + $0x52] sm:$0xff]  ;;  %v1018_v49 = vld [vmem:[#allocation2 + $0x62] sm:$0xff]  ;;  %403 = vst.msk [vmem:[#allocation3 + $0x150] sm:$0x1] %vm389_vm5, %v9044_v2 }
  0x3b   : > { %7898 = vmatmul.mubr.msk.bf16.gmra.mrb[12].mxu0 %vm336_vm1, %v9289_v61  ;;  %v1019_v50 = vld [vmem:[#allocation2 + $0x6a] sm:$0xff]  ;;  %v9414_v51 = vpack.c.bf16 %v1017_v48, %v1016_v45  ;;  %v1020_v54 = vld [vmem:[#allocation2 + $0x7a] sm:$0xff]  ;;  %v1021_v57 = vld [vmem:[#allocation2 + $0x82] sm:$0xff]  ;;  %404 = vst.msk [vmem:[#allocation3 + $0x168] sm:$0x1] %vm389_vm5, %v9044_v2 }
  0x3c   : > { %7901 = vmatprep.mubr.msk.bf16.mxu0 %vm336_vm1, %v9291_v62  ;;  %v1022_v58 = vld [vmem:[#allocation2 + $0x92] sm:$0xff]  ;;  %v1023_v59 = vld [vmem:[#allocation2 + $0x9a] sm:$0xff]  ;;  %v9422_v0 = vpack.c.bf16 %v1021_v57, %v1020_v54  ;;  %v1024_v3 = vld [vmem:[#allocation2 + $0xaa] sm:$0xff]  ;;  %405 = vst.msk [vmem:[#allocation3 + $0x180] sm:$0x1] %vm389_vm5, %v9044_v2 }
  0x3d   : > { %v9424_v1 = vpack.c.bf16 %v1023_v59, %v1022_v58  ;;  %v1025_v6 = vld [vmem:[#allocation2 + $0xb2] sm:$0xff]  ;;  %v1026_v9 = vld [vmem:[#allocation2 + $0xc2] sm:$0xff]  ;;  %v1027_v12 = vld [vmem:[#allocation2 + $0xca] sm:$0xff]  ;;  %406 = vst.msk [vmem:[#allocation3 + $0x29] sm:$0x1] %vm389_vm5, %v9044_v2 }
  0x3e   : > { %v9430_v13 = vpack.c.bf16 %v1025_v6, %v1024_v3  ;;  %v9432_v14 = vpack.c.bf16 %v1027_v12, %v1026_v9  ;;  %v1028_v19 = vld [vmem:[#allocation2 + $0xda] sm:$0xff]  ;;  %v1029_v20 = vld [vmem:[#allocation2 + $0xe2] sm:$0xff]  ;;  %v1035_v34 = vld [vmem:[#allocation2 + $0x12a] sm:$0xff]  ;;  %v1697_v6 = vsel %vm633_vm0, %v7269_v42, 0  ;;  %407 = vst.msk [vmem:[#allocation3 + $0x41] sm:$0x1] %vm389_vm5, %v9044_v2 }
  0x3f   : > { %v9438_v24 = vpack.c.bf16 %v1029_v20, %v1028_v19  ;;  %v1036_v45 = vld [vmem:[#allocation2 + $0x13a] sm:$0xff]  ;;  %v1037_v48 = vld [vmem:[#allocation2 + $0x142] sm:$0xff]  ;;  %v1040_v58 = vld [vmem:[#allocation2 + $0x16a] sm:$0xff]  ;;  %408 = vst.msk [vmem:[#allocation3 + $0x59] sm:$0x1] %vm389_vm5, %v9044_v2 }
  0x40   : > { %v9454_v54 = vpack.c.bf16 %v1037_v48, %v1036_v45  ;;  %v1041_v59 = vld [vmem:[#allocation2 + $0x172] sm:$0xff]  ;;  %v7286_v9 = vld [vmem:[%s10705_s1 + $0xa] sm:$0x3]  ;;  %v7303_v20 = vld [vmem:[%s10705_s1 + $0xc] sm:$0x3] }
  0x41   : > { %v9462_v3 = vpack.c.bf16 %v1041_v59, %v1040_v58  ;;  %v1991_v19 = vsel %vm633_vm0, %v7286_v9, 0  ;;  %v2495_v48 = vld [vmem:[#allocation2 + $0xd9] sm:$0xff]  ;;  %409 = vst.msk [vmem:[#allocation3 + $0x71] sm:$0x1] %vm389_vm5, %v9044_v2  ;;  %410 = vst.msk [vmem:[#allocation3 + $0x89] sm:$0x1] %vm389_vm5, %v9044_v2 }
  0x42   : > { %v2498_v58 = vld [vmem:[#allocation2 + $0xf9] sm:$0xff]  ;;  %411 = vst.msk [vmem:[#allocation3 + $0xa1] sm:$0x1] %vm389_vm5, %v9044_v2  ;;  %412 = vst.msk [vmem:[#allocation3 + $0xb9] sm:$0x1] %vm389_vm5, %v9044_v2 }
  0x43   : > { %7902 = vmatmul.mubr.msk.bf16.gmra.mrb[16].mxu0 %vm336_vm1, %v9297_v4  ;;  %413 = vst.msk [vmem:[#allocation3 + $0xd1] sm:$0x1] %vm389_vm5, %v9044_v2  ;;  %414 = vst.msk [vmem:[#allocation3 + $0xe9] sm:$0x1] %vm389_vm5, %v9044_v2 }
  0x44   : > { %7905 = vmatprep.mubr.msk.bf16.mxu0 %vm336_vm1, %v9299_v5  ;;  %415 = vst.msk [vmem:[#allocation3 + $0x101] sm:$0x1] %vm389_vm5, %v9044_v2  ;;  %416 = vst.msk [vmem:[#allocation3 + $0x119] sm:$0x1] %vm389_vm5, %v9044_v2 }
  0x45   : > { %417 = vst.msk [vmem:[#allocation3 + $0x131] sm:$0x1] %vm389_vm5, %v9044_v2  ;;  %418 = vst.msk [vmem:[#allocation3 + $0x149] sm:$0x1] %vm389_vm5, %v9044_v2 }
  0x46   : > { %419 = vst.msk [vmem:[#allocation3 + $0x161] sm:$0x1] %vm389_vm5, %v9044_v2  ;;  %420 = vst.msk [vmem:[#allocation3 + $0x179] sm:$0x1] %vm389_vm5, %v9044_v2 }
  0x47   : > { %421 = vst.msk [vmem:[#allocation3 + $0x191] sm:$0x1] %vm389_vm5, %v9044_v2 }
  0x48   : > { %383 = vst.msk [vmem:[#allocation3 + $0x10] sm:$0x3] %vm382_vm6, %v9044_v2  ;;  %387 = vst.msk [vmem:[#allocation3 + $0x1a8] sm:$0x3] %vm382_vm6, %v9044_v2  ;;  %v9757_v2 = vld [vmem:[%s10706_s2] ss:$0 sm:$0xff] }
  0x4b   : > { %7906 = vmatmul.mubr.msk.bf16.gmra.mrb[20].mxu0 %vm336_vm1, %v9305_v10 }
  0x4c   : > { %7909 = vmatprep.mubr.msk.bf16.mxu0 %vm336_vm1, %v9307_v11 }
  0x53   : > { %7910 = vmatmul.mubr.msk.bf16.gmra.mrb[24].mxu0 %vm336_vm1, %v9313_v16 }
  0x54   : > { %7913 = vmatprep.mubr.msk.bf16.mxu0 %vm336_vm1, %v9315_v17 }
  0x5b   : > { %7914 = vmatmul.mubr.msk.bf16.gmra.mrb[28].mxu0 %vm336_vm1, %v9321_v22 }
  0x5c   : > { %7919 = vmatprep.mubr.msk.bf16.mxu0 %vm336_vm1, %v518_v23  ;;  %v517_v23 = vld [vmem:[#allocation2 + $0x170] sm:$0xff] }
  0x5d   : > { %v9395_v26 = vpack.c.bf16 %v517_v23, %v516_v21  ;;  %v1030_v21 = vld [vmem:[#allocation2 + $0xf2] sm:$0xff]  ;;  %v1031_v23 = vld [vmem:[#allocation2 + $0xfa] sm:$0xff] }
  0x5e   : > { %v9440_v25 = vpack.c.bf16 %v1031_v23, %v1030_v21  ;;  %v2491_v23 = vld [vmem:[#allocation2 + $0xa9] sm:$0xff] }
  0x63   : > { %7920 = vmatmul.mubr.msk.bf16.vlgmr.msra.gmra.mrb[0].mxu0 %vm336_vm1, %v9326_v28 }
  0x64   : > { %7952 = vmatpush3.bf16.msra.mxu0 %v1109_v30  ;;  %7923 = vmatprep.mubr.msk.bf16.mxu0 %vm336_vm1, %v9328_v29  ;;  %v1012_v30 = vld [vmem:[#allocation2 + $0x1a] sm:$0xff] }
  0x65   : > { %9010 = vmatprep.subr.msk.bf16.mxu0 %vm633_vm0, %v9335_v31  ;;  %v9400_v36 = vpack.c.bf16 %v1013_v33, %v1012_v30  ;;  %v9416_v31 = vpack.c.bf16 %v1019_v50, %v1018_v49  ;;  %v1033_v30 = vld [vmem:[#allocation2 + $0x112] sm:$0xff]  ;;  %v1034_v33 = vld [vmem:[#allocation2 + $0x122] sm:$0xff]  ;;  %v1039_v50 = vld [vmem:[#allocation2 + $0x15a] sm:$0xff] }
  0x66   : > { %v1038_v49 = vld [vmem:[#allocation2 + $0x152] sm:$0xff] }
  0x67   : > { %v9456_v57 = vpack.c.bf16 %v1039_v50, %v1038_v49  ;;  %v2496_v49 = vld [vmem:[#allocation2 + $0xe1] sm:$0xff]  ;;  %v2497_v50 = vld [vmem:[#allocation2 + $0xf1] sm:$0xff] }
  0x68   : > { %v2520_v59 = vpack.c.bf16 %v2496_v49, %v2495_v48 }
  0x6b   : > { %7924 = vmatmul.mubr.msk.bf16.gmra.mrb[4].mxu0 %vm336_vm1, %v9343_v38 }
  0x6c   : > { %7927 = vmatprep.mubr.msk.bf16.mxu0 %vm336_vm1, %v9345_v39 }
  0x73   : > { %7928 = vmatmul.mubr.msk.bf16.gmra.mrb[8].mxu0 %vm336_vm1, %v9351_v46 }
  0x74   : > { %7931 = vmatprep.mubr.msk.bf16.mxu0 %vm336_vm1, %v9353_v47 }
  0x7b   : > { %7932 = vmatmul.mubr.msk.bf16.gmra.mrb[12].mxu0 %vm336_vm1, %v9359_v52 }
  0x7c   : > { %7935 = vmatprep.mubr.msk.bf16.mxu0 %vm336_vm1, %v9361_v53 }
  0x83   : > { %7936 = vmatmul.mubr.msk.bf16.gmra.mrb[16].mxu0 %vm336_vm1, %v9367_v60 }
  0x84   : > { %7939 = vmatprep.mubr.msk.bf16.mxu0 %vm336_vm1, %v9369_v63 }
  0x8b   : > { %7940 = vmatmul.mubr.msk.bf16.gmra.mrb[20].mxu0 %vm336_vm1, %v9375_v7 }
  0x8c   : > { %7943 = vmatprep.mubr.msk.bf16.mxu0 %vm336_vm1, %v9377_v8 }
  0x93   : > { %7944 = vmatmul.mubr.msk.bf16.gmra.mrb[24].mxu0 %vm336_vm1, %v9383_v15 }
  0x94   : > { %7947 = vmatprep.mubr.msk.bf16.mxu0 %vm336_vm1, %v9385_v18 }
  0x9b   : > { %7948 = vmatmul.mubr.msk.bf16.gmra.mrb[28].mxu0 %vm336_vm1, %v9395_v26 }
  0x9c   : > { %7953 = vmatprep.mubr.msk.bf16.mxu0 %vm336_vm1, %v1042_v27  ;;  %v1032_v27 = vld [vmem:[#allocation2 + $0x10a] sm:$0xff] }
  0x9d   : > { %v9446_v35 = vpack.c.bf16 %v1033_v30, %v1032_v27  ;;  %v2492_v27 = vld [vmem:[#allocation2 + $0xb1] sm:$0xff]  ;;  %v2493_v30 = vld [vmem:[#allocation2 + $0xc1] sm:$0xff] }
  0xa3   : > { %7954 = vmatmul.mubr.msk.bf16.vlgmr.msra.gmra.mrb[0].mxu0 %vm336_vm1, %v9400_v36 }
  0xa4   : > { %7986 = vmatpush3.bf16.msra.mxu0 %v1403_v41  ;;  %7957 = vmatprep.mubr.msk.bf16.mxu0 %vm336_vm1, %v9402_v40  ;;  %v9448_v41 = vpack.c.bf16 %v1035_v34, %v1034_v33  ;;  %v2494_v33 = vld [vmem:[#allocation2 + $0xc9] sm:$0xff]  ;;  %v2518_v34 = vpack.c.bf16 %v2492_v27, %v2491_v23 }
  0xa5   : > { %9011 = vmatprep.subr.msk.bf16.mxu0 %vm633_vm0, %v7269_v42  ;;  %v1335_v42 = vld [vmem:[#allocation2 + $0x188] sm:$0xff]  ;;  %v2519_v45 = vpack.c.bf16 %v2494_v33, %v2493_v30 }
  0xab   : > { %7958 = vmatmul.mubr.msk.bf16.gmra.mrb[4].mxu0 %vm336_vm1, %v9414_v51 }
  0xac   : > { %7961 = vmatprep.mubr.msk.bf16.mxu0 %vm336_vm1, %v9416_v31 }
  0xb3   : > { %7962 = vmatmul.mubr.msk.bf16.gmra.mrb[8].mxu0 %vm336_vm1, %v9422_v0 }
  0xb4   : > { %7965 = vmatprep.mubr.msk.bf16.mxu0 %vm336_vm1, %v9424_v1 }
  0xbb   : > { %7966 = vmatmul.mubr.msk.bf16.gmra.mrb[12].mxu0 %vm336_vm1, %v9430_v13 }
  0xbc   : > { %7969 = vmatprep.mubr.msk.bf16.mxu0 %vm336_vm1, %v9432_v14 }
  0xc3   : > { %7970 = vmatmul.mubr.msk.bf16.gmra.mrb[16].mxu0 %vm336_vm1, %v9438_v24 }
  0xc4   : > { %7973 = vmatprep.mubr.msk.bf16.mxu0 %vm336_vm1, %v9440_v25 }
  0xcb   : > { %7974 = vmatmul.mubr.msk.bf16.gmra.mrb[20].mxu0 %vm336_vm1, %v9446_v35 }
  0xcc   : > { %7977 = vmatprep.mubr.msk.bf16.mxu0 %vm336_vm1, %v9448_v41 }
  0xd3   : > { %7978 = vmatmul.mubr.msk.bf16.gmra.mrb[24].mxu0 %vm336_vm1, %v9454_v54 }
  0xd4   : > { %7981 = vmatprep.mubr.msk.bf16.mxu0 %vm336_vm1, %v9456_v57 }
  0xdb   : > { %7982 = vmatmul.mubr.msk.bf16.gmra.mrb[28].mxu0 %vm336_vm1, %v9462_v3 }
  0xdc   : > { %7987 = vmatprep.mubr.msk.bf16.mxu0 %vm336_vm1, %v9326_v28  ;;  %v1334_v28 = vld [vmem:[#allocation2 + $0x180] sm:$0xff] }
  0xdd   : > { %v9501_v12 = vpack.c.bf16 %v1335_v42, %v1334_v28  ;;  %v2500_v28 = vld [vmem:[#allocation2 + $0x111] sm:$0xff]  ;;  %v2501_v42 = vld [vmem:[#allocation2 + $0x121] sm:$0xff] }
  0xe3   : > { %7988 = vmatmul.mubr.msk.bf16.vlgmr.msra.gmra.mrb[0].mxu0 %vm336_vm1, %v9328_v29 }
  0xe4   : > { %8020 = vmatpush3.bf16.msra.mxu0 %v1697_v6  ;;  %7991 = vmatprep.mubr.msk.bf16.mxu0 %vm336_vm1, %v9343_v38  ;;  %v2521_v6 = vpack.c.bf16 %v2498_v58, %v2497_v50 }
  0xe5   : > { %9012 = vmatprep.subr.msk.bf16.mxu0 %vm633_vm0, %v7286_v9  ;;  %v2499_v9 = vld [vmem:[#allocation2 + $0x109] sm:$0xff] }
  0xeb   : > { %7992 = vmatmul.mubr.msk.bf16.gmra.mrb[4].mxu0 %vm336_vm1, %v9345_v39 }
  0xec   : > { %7995 = vmatprep.mubr.msk.bf16.mxu0 %vm336_vm1, %v9351_v46 }
  0xf3   : > { %7996 = vmatmul.mubr.msk.bf16.gmra.mrb[8].mxu0 %vm336_vm1, %v9353_v47 }
  0xf4   : > { %7999 = vmatprep.mubr.msk.bf16.mxu0 %vm336_vm1, %v9359_v52 }
  0xfb   : > { %8000 = vmatmul.mubr.msk.bf16.gmra.mrb[12].mxu0 %vm336_vm1, %v9361_v53 }
  0xfc   : > { %8003 = vmatprep.mubr.msk.bf16.mxu0 %vm336_vm1, %v9367_v60 }
 0x103   : > { %8004 = vmatmul.mubr.msk.bf16.gmra.mrb[16].mxu0 %vm336_vm1, %v9369_v63 }
 0x104   : > { %8007 = vmatprep.mubr.msk.bf16.mxu0 %vm336_vm1, %v9375_v7 }
 0x10b   : > { %8008 = vmatmul.mubr.msk.bf16.gmra.mrb[20].mxu0 %vm336_vm1, %v9377_v8 }
 0x10c   : > { %8011 = vmatprep.mubr.msk.bf16.mxu0 %vm336_vm1, %v9383_v15 }
 0x113   : > { %8012 = vmatmul.mubr.msk.bf16.gmra.mrb[24].mxu0 %vm336_vm1, %v9385_v18 }
 0x114   : > { %8015 = vmatprep.mubr.msk.bf16.mxu0 %vm336_vm1, %v9395_v26 }
 0x11b   : > { %8016 = vmatmul.mubr.msk.bf16.gmra.mrb[28].mxu0 %vm336_vm1, %v9501_v12 }
 0x11c   : > { %8021 = vmatprep.mubr.msk.bf16.mxu0 %vm336_vm1, %v9240_v32  ;;  %v1628_v32 = vld [vmem:[#allocation2 + $0x181] sm:$0xff] }
 0x123   : > { %8022 = vmatmul.mubr.msk.bf16.vlgmr.msra.gmra.mrb[0].mxu0 %vm336_vm1, %v9246_v37  ;;  %v1629_v37 = vld [vmem:[#allocation2 + $0x189] sm:$0xff] }
 0x124   : > { %8054 = vmatpush3.bf16.msra.mxu0 %v1991_v19  ;;  %8025 = vmatprep.mubr.msk.bf16.mxu0 %vm336_vm1, %v9261_v43  ;;  %v9540_v43 = vpack.c.bf16 %v1629_v37, %v1628_v32  ;;  %v2522_v19 = vpack.c.bf16 %v2500_v28, %v2499_v9  ;;  %v2503_v32 = vld [vmem:[#allocation2 + $0x139] sm:$0xff]  ;;  %v2504_v37 = vld [vmem:[#allocation2 + $0x141] sm:$0xff] }
 0x125   : > { %9013 = vmatprep.subr.msk.bf16.mxu0 %vm633_vm0, %v7303_v20 }
 0x12b   : > { %8026 = vmatmul.mubr.msk.bf16.gmra.mrb[4].mxu0 %vm336_vm1, %v9263_v44  ;;  %v2286_v44 = vsel %vm633_vm0, %v7303_v20, 0 }
 0x12c   : > { %8029 = vmatprep.mubr.msk.bf16.mxu0 %vm336_vm1, %v9281_v55  ;;  %v7320_v55 = vld [vmem:[%s10705_s1 + $0xe] sm:$0x3] }
 0x133   : > { %8030 = vmatmul.mubr.msk.bf16.gmra.mrb[8].mxu0 %vm336_vm1, %v9283_v56  ;;  %v1922_v56 = vld [vmem:[#allocation2 + $0x182] sm:$0xff] }
 0x134   : > { %8033 = vmatprep.mubr.msk.bf16.mxu0 %vm336_vm1, %v9289_v61  ;;  %v1923_v61 = vld [vmem:[#allocation2 + $0x18a] sm:$0xff] }
 0x13b   : > { %8034 = vmatmul.mubr.msk.bf16.gmra.mrb[12].mxu0 %vm336_vm1, %v9291_v62  ;;  %v9579_v62 = vpack.c.bf16 %v1923_v61, %v1922_v56  ;;  %v2512_v56 = vld [vmem:[#allocation2 + $0x1a1] sm:$0xff] }
 0x13c   : > { %8037 = vmatprep.mubr.msk.bf16.mxu0 %vm336_vm1, %v9297_v4  ;;  %v2580_v4 = vsel %vm633_vm0, %v7320_v55, 0 }
 0x143   : > { %8038 = vmatmul.mubr.msk.bf16.gmra.mrb[16].mxu0 %vm336_vm1, %v9299_v5  ;;  %v7337_v5 = vld [vmem:[%s10705_s1 + $0x10] sm:$0x3] }
 0x144   : > { %8041 = vmatprep.mubr.msk.bf16.mxu0 %vm336_vm1, %v9305_v10  ;;  %v2217_v10 = vld [vmem:[#allocation2 + $0x198] sm:$0xff] }
 0x14b   : > { %8042 = vmatmul.mubr.msk.bf16.gmra.mrb[20].mxu0 %vm336_vm1, %v9307_v11  ;;  %v2218_v11 = vld [vmem:[#allocation2 + $0x1a0] sm:$0xff] }
 0x14c   : > { %8045 = vmatprep.mubr.msk.bf16.mxu0 %vm336_vm1, %v9313_v16  ;;  %v2481_v16 = vld [vmem:[#allocation2 + $0x31] sm:$0xff] }
 0x153   : > { %8046 = vmatmul.mubr.msk.bf16.gmra.mrb[24].mxu0 %vm336_vm1, %v9315_v17 }
 0x154   : > { %8049 = vmatprep.mubr.msk.bf16.mxu0 %vm336_vm1, %v9321_v22 }
 0x15b   : > { %8050 = vmatmul.mubr.msk.bf16.gmra.mrb[28].mxu0 %vm336_vm1, %v9540_v43 }
 0x15c   : > { %8055 = vmatprep.mubr.msk.bf16.mxu0 %vm336_vm1, %v9400_v36 }
 0x163   : > { %8056 = vmatmul.mubr.msk.bf16.vlgmr.msra.gmra.mrb[0].mxu0 %vm336_vm1, %v9402_v40 }
 0x164   : > { %8088 = vmatpush3.bf16.msra.mxu0 %v2286_v44  ;;  %8059 = vmatprep.mubr.msk.bf16.mxu0 %vm336_vm1, %v9414_v51  ;;  %v2524_v44 = vpack.c.bf16 %v2504_v37, %v2503_v32 }
 0x165   : > { %9014 = vmatprep.subr.msk.bf16.mxu0 %vm633_vm0, %v7320_v55  ;;  %v2511_v55 = vld [vmem:[#allocation2 + $0x199] sm:$0xff] }
 0x166   : > { %v2528_v61 = vpack.c.bf16 %v2512_v56, %v2511_v55 }
 0x16b   : > { %8060 = vmatmul.mubr.msk.bf16.gmra.mrb[4].mxu0 %vm336_vm1, %v9416_v31 }
 0x16c   : > { %8063 = vmatprep.mubr.msk.bf16.mxu0 %vm336_vm1, %v9422_v0 }
 0x173   : > { %8064 = vmatmul.mubr.msk.bf16.gmra.mrb[8].mxu0 %vm336_vm1, %v9424_v1 }
 0x174   : > { %8067 = vmatprep.mubr.msk.bf16.mxu0 %vm336_vm1, %v9430_v13 }
 0x17b   : > { %8068 = vmatmul.mubr.msk.bf16.gmra.mrb[12].mxu0 %vm336_vm1, %v9432_v14 }
 0x17c   : > { %8071 = vmatprep.mubr.msk.bf16.mxu0 %vm336_vm1, %v9438_v24 }
 0x183   : > { %8072 = vmatmul.mubr.msk.bf16.gmra.mrb[16].mxu0 %vm336_vm1, %v9440_v25 }
 0x184   : > { %8075 = vmatprep.mubr.msk.bf16.mxu0 %vm336_vm1, %v9446_v35 }
 0x18b   : > { %8076 = vmatmul.mubr.msk.bf16.gmra.mrb[20].mxu0 %vm336_vm1, %v9448_v41 }
 0x18c   : > { %8079 = vmatprep.mubr.msk.bf16.mxu0 %vm336_vm1, %v9454_v54 }
 0x193   : > { %8080 = vmatmul.mubr.msk.bf16.gmra.mrb[24].mxu0 %vm336_vm1, %v9456_v57 }
 0x194   : > { %8083 = vmatprep.mubr.msk.bf16.mxu0 %vm336_vm1, %v9462_v3 }
 0x19b   : > { %8084 = vmatmul.mubr.msk.bf16.gmra.mrb[28].mxu0 %vm336_vm1, %v9579_v62 }
 0x19c   : > { %8089 = vmatprep.mubr.msk.bf16.mxu0 %vm336_vm1, %v9328_v29  ;;  %v2482_v29 = vld [vmem:[#allocation2 + $0x39] sm:$0xff] }
 0x1a3   : > { %8090 = vmatmul.mubr.msk.bf16.vlgmr.msra.gmra.mrb[0].mxu0 %vm336_vm1, %v9343_v38  ;;  %v2234_v38 = vpack.c.bf16 %v2218_v11, %v2217_v10 }
 0x1a4   : > { %8122 = vmatpush3.bf16.msra.mxu0 %v2580_v4  ;;  %8093 = vmatprep.mubr.msk.bf16.mxu0 %vm336_vm1, %v9345_v39  ;;  %v2513_v39 = vpack.c.bf16 %v2482_v29, %v2481_v16 }
 0x1a5   : > { %9015 = vmatprep.subr.msk.bf16.mxu0 %vm633_vm0, %v7337_v5 }
 0x1ab   : > { %8094 = vmatmul.mubr.msk.bf16.gmra.mrb[4].mxu0 %vm336_vm1, %v9351_v46  ;;  %v2483_v46 = vld [vmem:[#allocation2 + $0x49] sm:$0xff] }
 0x1ac   : > { %8097 = vmatprep.mubr.msk.bf16.mxu0 %vm336_vm1, %v9353_v47  ;;  %v2484_v47 = vld [vmem:[#allocation2 + $0x51] sm:$0xff] }
 0x1b3   : > { %8098 = vmatmul.mubr.msk.bf16.gmra.mrb[8].mxu0 %vm336_vm1, %v9359_v52  ;;  %v2485_v52 = vld [vmem:[#allocation2 + $0x61] sm:$0xff] }
 0x1b4   : > { %8101 = vmatprep.mubr.msk.bf16.mxu0 %vm336_vm1, %v9361_v53  ;;  %v2486_v53 = vld [vmem:[#allocation2 + $0x69] sm:$0xff] }
 0x1bb   : > { %8102 = vmatmul.mubr.msk.bf16.gmra.mrb[12].mxu0 %vm336_vm1, %v9367_v60  ;;  %v2514_v60 = vpack.c.bf16 %v2484_v47, %v2483_v46 }
 0x1bc   : > { %8105 = vmatprep.mubr.msk.bf16.mxu0 %vm336_vm1, %v9369_v63  ;;  %v2515_v63 = vpack.c.bf16 %v2486_v53, %v2485_v52 }
 0x1c3   : > { %8106 = vmatmul.mubr.msk.bf16.gmra.mrb[16].mxu0 %vm336_vm1, %v9375_v7  ;;  %v2874_v7 = vsel %vm633_vm0, %v7337_v5, 0 }
 0x1c4   : > { %8109 = vmatprep.mubr.msk.bf16.mxu0 %vm336_vm1, %v9377_v8  ;;  %v2487_v8 = vld [vmem:[#allocation2 + $0x79] sm:$0xff] }
 0x1cb   : > { %8110 = vmatmul.mubr.msk.bf16.gmra.mrb[20].mxu0 %vm336_vm1, %v9383_v15  ;;  %v2488_v15 = vld [vmem:[#allocation2 + $0x81] sm:$0xff] }
 0x1cc   : > { %8113 = vmatprep.mubr.msk.bf16.mxu0 %vm336_vm1, %v9385_v18  ;;  %v2489_v18 = vld [vmem:[#allocation2 + $0x91] sm:$0xff]  ;;  %v2516_v36 = vpack.c.bf16 %v2488_v15, %v2487_v8 }
 0x1d3   : > { %8114 = vmatmul.mubr.msk.bf16.gmra.mrb[24].mxu0 %vm336_vm1, %v9395_v26  ;;  %v2490_v26 = vld [vmem:[#allocation2 + $0x99] sm:$0xff] }
 0x1d4   : > { %8117 = vmatprep.mubr.msk.bf16.mxu0 %vm336_vm1, %v9501_v12  ;;  %v2517_v21 = vpack.c.bf16 %v2490_v26, %v2489_v18  ;;  %v2502_v12 = vld [vmem:[#allocation2 + $0x129] sm:$0xff] }
 0x1d5   : > { %v2523_v20 = vpack.c.bf16 %v2502_v12, %v2501_v42 }
 0x1db   : > { %8118 = vmatmul.mubr.msk.bf16.gmra.mrb[28].mxu0 %vm336_vm1, %v2234_v38 }
 0x1dc   : > { %8123 = vmatprep.mubr.msk.bf16.mxu0 %vm336_vm1, %v2513_v39 }
 0x1e3   : > { %8124 = vmatmul.mubr.msk.bf16.vlgmr.msra.gmra.mrb[0].mxu0 %vm336_vm1, %v2514_v60 }
 0x1e4   : > { %8156 = vmatpush3.bf16.msra.mxu0 %v2874_v7  ;;  %8127 = vmatprep.mubr.msk.bf16.mxu0 %vm336_vm1, %v2515_v63 }
 0x1eb   : > { %8128 = vmatmul.mubr.msk.bf16.gmra.mrb[4].mxu0 %vm336_vm1, %v2516_v36 }
 0x1ec   : > { %8131 = vmatprep.mubr.msk.bf16.mxu0 %vm336_vm1, %v2517_v21 }
 0x1f3   : > { %8132 = vmatmul.mubr.msk.bf16.gmra.mrb[8].mxu0 %vm336_vm1, %v2518_v34  ;;  %v9784_v34 = vld [vmem:[%s10707_s3 + $0x8] sm:$0xf] }
 0x1f4   : > { %8135 = vmatprep.mubr.msk.bf16.mxu0 %vm336_vm1, %v2519_v45 }
 0x1fb   : > { %8136 = vmatmul.mubr.msk.bf16.gmra.mrb[12].mxu0 %vm336_vm1, %v2520_v59 }
 0x1fc   : > { %8139 = vmatprep.mubr.msk.bf16.mxu0 %vm336_vm1, %v2521_v6 }
 0x203   : > { %8140 = vmatmul.mubr.msk.bf16.gmra.mrb[16].mxu0 %vm336_vm1, %v2522_v19 }
 0x204   : > { %8143 = vmatprep.mubr.msk.bf16.mxu0 %vm336_vm1, %v2523_v20 }
 0x20b   : > { %8144 = vmatmul.mubr.msk.bf16.gmra.mrb[20].mxu0 %vm336_vm1, %v2524_v44 }
 0x20c   : > { %8147 = vmatprep.mubr.msk.bf16.mxu0 %vm336_vm1, %v9315_v17  ;;  %v2805_v17 = vld [vmem:[#allocation2 + $0x19a] sm:$0xff] }
 0x213   : > { %8148 = vmatmul.mubr.msk.bf16.gmra.mrb[24].mxu0 %vm336_vm1, %v9321_v22  ;;  %v2806_v22 = vld [vmem:[#allocation2 + $0x1a2] sm:$0xff] }
 0x214   : > { %8151 = vmatprep.mubr.msk.bf16.mxu0 %vm336_vm1, %v9540_v43 }
 0x21b   : > { %8152 = vmatmul.mubr.msk.bf16.gmra.mrb[28].mxu0 %vm336_vm1, %v2528_v61 }
 0x21c   : > { %8157 = vmatprep.mubr.msk.bf16.mxu0 %vm336_vm1, %v9402_v40  ;;  %v2822_v40 = vpack.c.bf16 %v2806_v22, %v2805_v17 }
 0x223   : > { %8158 = vmatmul.mubr.msk.bf16.vlgmr.msra.gmra.mrb[0].mxu0 %vm336_vm1, %v9414_v51  ;;  %v7355_v51 = vld [vmem:[%s10707_s3 + $0x4] sm:$0xf] }
 0x224   : > { %8161 = vmatprep.mubr.msk.bf16.mxu0 %vm336_vm1, %v9416_v31  ;;  %9016 = vmatprep.subr.msk.bf16.mxu1 %vm3319_vm7, %v7355_v51  ;;  %v3321_v31 = vsel %vm3319_vm7, %v7355_v51, 0 }
 0x225   : > { %8190 = vmatpush3.bf16.msra.mxu1 %v3321_v31 }
 0x22b   : > { %8162 = vmatmul.mubr.msk.bf16.gmra.mrb[4].mxu0 %vm336_vm1, %v9422_v0  ;;  %v3221_v0 = vld [vmem:[#allocation3 + $0x1] sm:$0xff] }
 0x22c   : > { %8165 = vmatprep.mubr.msk.bf16.mxu0 %vm336_vm1, %v9424_v1  ;;  %v3222_v1 = vld [vmem:[#allocation3 + $0x9] sm:$0xff] }
 0x233   : > { %8166 = vmatmul.mubr.msk.bf16.gmra.mrb[8].mxu0 %vm336_vm1, %v9430_v13  ;;  %v3253_v13 = vpack.c.bf16 %v3222_v1, %v3221_v0 }
 0x234   : > { %8169 = vmatprep.mubr.msk.bf16.mxu0 %vm336_vm1, %v9432_v14  ;;  %v3220_v14 = vld [vmem:[%s10707_s3] sm:$0xf] }
 0x235   : > { %8191 = vmatprep.mubr.msk.bf16.mxu1 %vm379_vm4, %v3253_v13  ;;  %9017 = vmatprep.subr.msk.bf16.mxu1 %vm3319_vm7, %v3220_v14  ;;  %v3533_v21 = vsel %vm3319_vm7, %v3220_v14, 0 }
 0x23b   : > { %8170 = vmatmul.mubr.msk.bf16.gmra.mrb[12].mxu0 %vm336_vm1, %v9438_v24 }
 0x23c   : > { %8173 = vmatprep.mubr.msk.bf16.mxu0 %vm336_vm1, %v9440_v25 }
 0x243   : > { %8174 = vmatmul.mubr.msk.bf16.gmra.mrb[16].mxu0 %vm336_vm1, %v9446_v35 }
 0x244   : > { %8177 = vmatprep.mubr.msk.bf16.mxu0 %vm336_vm1, %v9448_v41 }
 0x24b   : > { %8178 = vmatmul.mubr.msk.bf16.gmra.mrb[20].mxu0 %vm336_vm1, %v9454_v54 }
 0x24c   : > { %8181 = vmatprep.mubr.msk.bf16.mxu0 %vm336_vm1, %v9456_v57 }
 0x253   : > { %8182 = vmatmul.mubr.msk.bf16.gmra.mrb[24].mxu0 %vm336_vm1, %v9462_v3 }
 0x254   : > { %8185 = vmatprep.mubr.msk.bf16.mxu0 %vm336_vm1, %v9579_v62 }
 0x25b   : > { %8186 = vmatmul.mubr.msk.bf16.gmra.mrb[28].mxu0 %vm336_vm1, %v2822_v40 }
 0x2f6   : > { %v8159_v24 = vpop.f32.mrb[0].mxu0 }
 0x2f7   : > { %v3078_v25 = vadd.f32 %v8159_v24, %v9757_v2  ;;  %v2910_v35 = vpop.f32.mrb[1].mxu0 }
 0x2f8   : > { %v3076_v41 = vadd.f32 %v9757_v2, %v2910_v35  ;;  %v8160_v54 = vpop.f32.mrb[2].mxu0 }
 0x2f9   : > { %v3110_v57 = vmax.f32 %v3078_v25, 0.0  ;;  %v3079_v3 = vadd.f32 %v8160_v54, %v9757_v2  ;;  %v2913_v43 = vpop.f32.mrb[3].mxu0 }
 0x2fa   : > { %v3108_v62 = vmax.f32 %v3076_v41, 0.0  ;;  %v3077_v4 = vadd.f32 %v9757_v2, %v2913_v43 }
 0x2fb   : > { %3142 = vst.msk [vmem:[#allocation3 + $0x31] sm:$0xff] %vm379_vm4, %v3110_v57  ;;  %v3111_v5 = vmax.f32 %v3079_v3, 0.0 }
 0x2fc   : > { %3140 = vst.msk [vmem:[#allocation3 + $0x19] sm:$0xff] %vm379_vm4, %v3108_v62  ;;  %v3109_v10 = vmax.f32 %v3077_v4, 0.0 }
 0x2fd   : > { %3143 = vst.msk [vmem:[#allocation3 + $0x39] sm:$0xff] %vm379_vm4, %v3111_v5 }
 0x2fe   : > { %3141 = vst.msk [vmem:[#allocation3 + $0x21] sm:$0xff] %vm379_vm4, %v3109_v10  ;;  %v8163_v11 = vpop.f32.mrb[4].mxu0 }
 0x2ff   : > { %v3082_v16 = vadd.f32 %v8163_v11, %v9757_v2  ;;  %v2926_v29 = vpop.f32.mrb[5].mxu0 }
 0x300   : > { %v3080_v38 = vadd.f32 %v9757_v2, %v2926_v29  ;;  %v8164_v39 = vpop.f32.mrb[6].mxu0 }
 0x301   : > { %v3114_v46 = vmax.f32 %v3082_v16, 0.0  ;;  %v3083_v47 = vadd.f32 %v8164_v39, %v9757_v2  ;;  %v2929_v52 = vpop.f32.mrb[7].mxu0 }
 0x302   : > { %v3112_v53 = vmax.f32 %v3080_v38, 0.0  ;;  %v3081_v60 = vadd.f32 %v9757_v2, %v2929_v52  ;;  %v3225_v23 = vld [vmem:[#allocation3 + $0x31] sm:$0xff] }
 0x303   : > { %3146 = vst.msk [vmem:[#allocation3 + $0x61] sm:$0xff] %vm379_vm4, %v3114_v46  ;;  %v3115_v63 = vmax.f32 %v3083_v47, 0.0  ;;  %v3223_v15 = vld [vmem:[#allocation3 + $0x19] sm:$0xff] }
 0x304   : > { %3144 = vst.msk [vmem:[#allocation3 + $0x49] sm:$0xff] %vm379_vm4, %v3112_v53  ;;  %v3113_v7 = vmax.f32 %v3081_v60, 0.0  ;;  %v3226_v8 = vld [vmem:[#allocation3 + $0x39] sm:$0xff] }
 0x305   : > { %3147 = vst.msk [vmem:[#allocation3 + $0x69] sm:$0xff] %vm379_vm4, %v3115_v63  ;;  %v3224_v18 = vld [vmem:[#allocation3 + $0x21] sm:$0xff]  ;;  %v9779_v33 = vpack.c.bf16 %v3226_v8, %v3225_v23 }
 0x306   : > { %3145 = vst.msk [vmem:[#allocation3 + $0x51] sm:$0xff] %vm379_vm4, %v3113_v7  ;;  %v8167_v26 = vpop.f32.mrb[8].mxu0  ;;  %v9775_v36 = vpack.c.bf16 %v3224_v18, %v3223_v15 }
 0x307   : > { %v3086_v27 = vadd.f32 %v8167_v26, %v9757_v2  ;;  %v2942_v30 = vpop.f32.mrb[9].mxu0 }
 0x308   : > { %v3084_v45 = vadd.f32 %v9757_v2, %v2942_v30  ;;  %v8168_v48 = vpop.f32.mrb[10].mxu0  ;;  %8192 = vmatmul.mubr.msk.bf16.vlgmr.msra.gmra.mrb[0].mxu1 %vm379_vm4, %v9775_v36 }
 0x309   : > { %v3118_v49 = vmax.f32 %v3086_v27, 0.0  ;;  %v3087_v50 = vadd.f32 %v8168_v48, %v9757_v2  ;;  %8224 = vmatpush3.bf16.msra.mxu1 %v3533_v21  ;;  %v2945_v58 = vpop.f32.mrb[11].mxu0  ;;  %8195 = vmatprep.mubr.msk.bf16.mxu1 %vm379_vm4, %v9779_v33 }
 0x30a   : > { %v3116_v59 = vmax.f32 %v3084_v45, 0.0  ;;  %v3085_v6 = vadd.f32 %v9757_v2, %v2945_v58  ;;  %9018 = vmatprep.subr.msk.bf16.mxu1 %vm3319_vm7, %v9784_v34  ;;  %v3229_v37 = vld [vmem:[#allocation3 + $0x61] sm:$0xff] }
 0x30b   : > { %3150 = vst.msk [vmem:[#allocation3 + $0x91] sm:$0xff] %vm379_vm4, %v3118_v49  ;;  %v3119_v9 = vmax.f32 %v3087_v50, 0.0  ;;  %v3227_v12 = vld [vmem:[#allocation3 + $0x49] sm:$0xff] }
 0x30c   : > { %3148 = vst.msk [vmem:[#allocation3 + $0x79] sm:$0xff] %vm379_vm4, %v3116_v59  ;;  %v3117_v28 = vmax.f32 %v3085_v6, 0.0  ;;  %v3230_v42 = vld [vmem:[#allocation3 + $0x69] sm:$0xff] }
 0x30d   : > { %3151 = vst.msk [vmem:[#allocation3 + $0x99] sm:$0xff] %vm379_vm4, %v3119_v9  ;;  %v3228_v19 = vld [vmem:[#allocation3 + $0x51] sm:$0xff]  ;;  %v9802_v56 = vpack.c.bf16 %v3230_v42, %v3229_v37 }
 0x30e   : > { %3149 = vst.msk [vmem:[#allocation3 + $0x81] sm:$0xff] %vm379_vm4, %v3117_v28  ;;  %v8171_v20 = vpop.f32.mrb[12].mxu0  ;;  %v9799_v32 = vpack.c.bf16 %v3228_v19, %v3227_v12 }
 0x30f   : > { %v3090_v44 = vadd.f32 %v8171_v20, %v9757_v2  ;;  %v2958_v55 = vpop.f32.mrb[13].mxu0 }
 0x310   : > { %v3088_v61 = vadd.f32 %v9757_v2, %v2958_v55  ;;  %v8172_v17 = vpop.f32.mrb[14].mxu0  ;;  %8196 = vmatmul.mubr.msk.bf16.gmra.mrb[4].mxu1 %vm379_vm4, %v9799_v32 }
 0x311   : > { %v3122_v22 = vmax.f32 %v3090_v44, 0.0  ;;  %v3091_v40 = vadd.f32 %v8172_v17, %v9757_v2  ;;  %v2961_v51 = vpop.f32.mrb[15].mxu0  ;;  %8199 = vmatprep.mubr.msk.bf16.mxu1 %vm379_vm4, %v9802_v56 }
 0x312   : > { %v3120_v31 = vmax.f32 %v3088_v61, 0.0  ;;  %v3089_v0 = vadd.f32 %v9757_v2, %v2961_v51  ;;  %v3233_v54 = vld [vmem:[#allocation3 + $0x91] sm:$0xff] }
 0x313   : > { %3154 = vst.msk [vmem:[#allocation3 + $0xc1] sm:$0xff] %vm379_vm4, %v3122_v22  ;;  %v3123_v1 = vmax.f32 %v3091_v40, 0.0  ;;  %v3231_v24 = vld [vmem:[#allocation3 + $0x79] sm:$0xff] }
 0x314   : > { %3152 = vst.msk [vmem:[#allocation3 + $0xa9] sm:$0xff] %vm379_vm4, %v3120_v31  ;;  %v3121_v13 = vmax.f32 %v3089_v0, 0.0  ;;  %v3234_v14 = vld [vmem:[#allocation3 + $0x99] sm:$0xff] }
 0x315   : > { %3155 = vst.msk [vmem:[#allocation3 + $0xc9] sm:$0xff] %vm379_vm4, %v3123_v1  ;;  %v3232_v25 = vld [vmem:[#allocation3 + $0x81] sm:$0xff]  ;;  %v9818_v43 = vpack.c.bf16 %v3234_v14, %v3233_v54 }
 0x316   : > { %3153 = vst.msk [vmem:[#allocation3 + $0xb1] sm:$0xff] %vm379_vm4, %v3121_v13  ;;  %v8175_v35 = vpop.f32.mrb[16].mxu0  ;;  %v9815_v41 = vpack.c.bf16 %v3232_v25, %v3231_v24 }
 0x317   : > { %v3094_v57 = vadd.f32 %v8175_v35, %v9757_v2  ;;  %v2974_v3 = vpop.f32.mrb[17].mxu0 }
 0x318   : > { %v3092_v62 = vadd.f32 %v9757_v2, %v2974_v3  ;;  %v8176_v4 = vpop.f32.mrb[18].mxu0  ;;  %8200 = vmatmul.mubr.msk.bf16.gmra.mrb[8].mxu1 %vm379_vm4, %v9815_v41 }
 0x319   : > { %v3126_v5 = vmax.f32 %v3094_v57, 0.0  ;;  %v3095_v10 = vadd.f32 %v8176_v4, %v9757_v2  ;;  %v2977_v11 = vpop.f32.mrb[19].mxu0  ;;  %8203 = vmatprep.mubr.msk.bf16.mxu1 %vm379_vm4, %v9818_v43 }
 0x31a   : > { %v3124_v16 = vmax.f32 %v3092_v62, 0.0  ;;  %v3093_v29 = vadd.f32 %v9757_v2, %v2977_v11  ;;  %v3237_v63 = vld [vmem:[#allocation3 + $0xc1] sm:$0xff] }
 0x31b   : > { %3158 = vst.msk [vmem:[#allocation3 + $0xf1] sm:$0xff] %vm379_vm4, %v3126_v5  ;;  %v3127_v38 = vmax.f32 %v3095_v10, 0.0  ;;  %v3235_v47 = vld [vmem:[#allocation3 + $0xa9] sm:$0xff] }
 0x31c   : > { %3156 = vst.msk [vmem:[#allocation3 + $0xd9] sm:$0xff] %vm379_vm4, %v3124_v16  ;;  %v3125_v39 = vmax.f32 %v3093_v29, 0.0  ;;  %v3238_v46 = vld [vmem:[#allocation3 + $0xc9] sm:$0xff] }
 0x31d   : > { %3159 = vst.msk [vmem:[#allocation3 + $0xf9] sm:$0xff] %vm379_vm4, %v3127_v38  ;;  %v3236_v52 = vld [vmem:[#allocation3 + $0xb1] sm:$0xff]  ;;  %v9834_v15 = vpack.c.bf16 %v3238_v46, %v3237_v63  ;;  %v3173_v63 = vld [vmem:[#allocation3 + $0x8] sm:$0xff] }
 0x31e   : > { %3157 = vst.msk [vmem:[#allocation3 + $0xe1] sm:$0xff] %vm379_vm4, %v3125_v39  ;;  %v8179_v53 = vpop.f32.mrb[20].mxu0  ;;  %v9831_v60 = vpack.c.bf16 %v3236_v52, %v3235_v47 }
 0x31f   : > { %v3098_v7 = vadd.f32 %v8179_v53, %v9757_v2  ;;  %v2990_v8 = vpop.f32.mrb[21].mxu0 }
 0x320   : > { %v3096_v18 = vadd.f32 %v9757_v2, %v2990_v8  ;;  %v8180_v26 = vpop.f32.mrb[22].mxu0  ;;  %8204 = vmatmul.mubr.msk.bf16.gmra.mrb[12].mxu1 %vm379_vm4, %v9831_v60 }
 0x321   : > { %v3130_v21 = vmax.f32 %v3098_v7, 0.0  ;;  %v3099_v23 = vadd.f32 %v8180_v26, %v9757_v2  ;;  %v2993_v27 = vpop.f32.mrb[23].mxu0  ;;  %8207 = vmatprep.mubr.msk.bf16.mxu1 %vm379_vm4, %v9834_v15 }
 0x322   : > { %v3128_v30 = vmax.f32 %v3096_v18, 0.0  ;;  %v3097_v45 = vadd.f32 %v9757_v2, %v2993_v27  ;;  %v3241_v28 = vld [vmem:[#allocation3 + $0xf1] sm:$0xff] }
 0x323   : > { %3162 = vst.msk [vmem:[#allocation3 + $0x121] sm:$0xff] %vm379_vm4, %v3130_v21  ;;  %v3131_v48 = vmax.f32 %v3099_v23, 0.0  ;;  %v3239_v58 = vld [vmem:[#allocation3 + $0xd9] sm:$0xff] }
 0x324   : > { %3160 = vst.msk [vmem:[#allocation3 + $0x109] sm:$0xff] %vm379_vm4, %v3128_v30  ;;  %v3129_v49 = vmax.f32 %v3097_v45, 0.0  ;;  %v3242_v50 = vld [vmem:[#allocation3 + $0xf9] sm:$0xff]  ;;  %v3795_v45 = vsel %vm3319_vm7, %v9784_v34, 0  ;;  %v3181_v34 = vld [vmem:[#allocation3 + $0x68] sm:$0xff] }
 0x325   : > { %3163 = vst.msk [vmem:[#allocation3 + $0x129] sm:$0xff] %vm379_vm4, %v3131_v48  ;;  %v3240_v59 = vld [vmem:[#allocation3 + $0xe1] sm:$0xff]  ;;  %v9850_v19 = vpack.c.bf16 %v3242_v50, %v3241_v28  ;;  %v3177_v23 = vld [vmem:[#allocation3 + $0x38] sm:$0xff]  ;;  %v3176_v48 = vld [vmem:[#allocation3 + $0x30] sm:$0xff] }
 0x326   : > { %3161 = vst.msk [vmem:[#allocation3 + $0x111] sm:$0xff] %vm379_vm4, %v3129_v49  ;;  %v8183_v6 = vpop.f32.mrb[24].mxu0  ;;  %v9847_v9 = vpack.c.bf16 %v3240_v59, %v3239_v58  ;;  %v3175_v21 = vld [vmem:[#allocation3 + $0x20] sm:$0xff]  ;;  %v3174_v27 = vld [vmem:[#allocation3 + $0x18] sm:$0xff]  ;;  %v9896_v49 = vpack.c.bf16 %v3177_v23, %v3176_v48  ;;  %v3179_v58 = vld [vmem:[#allocation3 + $0x50] sm:$0xff] }
 0x327   : > { %v3102_v42 = vadd.f32 %v8183_v6, %v9757_v2  ;;  %v3006_v12 = vpop.f32.mrb[25].mxu0  ;;  %v9892_v30 = vpack.c.bf16 %v3175_v21, %v3174_v27  ;;  %v9901_v50 = vld [vmem:[%s10707_s3 + $0xc] sm:$0xf]  ;;  %v3178_v59 = vld [vmem:[#allocation3 + $0x48] sm:$0xff]  ;;  %v3180_v28 = vld [vmem:[#allocation3 + $0x60] sm:$0xff] }
 0x328   : > { %v3100_v20 = vadd.f32 %v9757_v2, %v3006_v12  ;;  %v8184_v37 = vpop.f32.mrb[26].mxu0  ;;  %8208 = vmatmul.mubr.msk.bf16.gmra.mrb[16].mxu1 %vm379_vm4, %v9847_v9  ;;  %v9909_v6 = vpack.c.bf16 %v3179_v58, %v3178_v59  ;;  %v3183_v12 = vld [vmem:[#allocation3 + $0x80] sm:$0xff] }
 0x329   : > { %v3134_v44 = vmax.f32 %v3102_v42, 0.0  ;;  %v3103_v55 = vadd.f32 %v8184_v37, %v9757_v2  ;;  %v3009_v61 = vpop.f32.mrb[27].mxu0  ;;  %8211 = vmatprep.mubr.msk.bf16.mxu1 %vm379_vm4, %v9850_v19  ;;  %v9911_v42 = vpack.c.bf16 %v3181_v34, %v3180_v28  ;;  %v3182_v37 = vld [vmem:[#allocation3 + $0x78] sm:$0xff]  ;;  %v3699_v27 = vld [vmem:[#allocation3 + $0x22] sm:$0xff]  ;;  %v4089_v34 = vsel %vm3319_vm7, %v9901_v50, 0 }
 0x32a   : > { %v3132_v17 = vmax.f32 %v3100_v20, 0.0  ;;  %v3101_v22 = vadd.f32 %v9757_v2, %v3009_v61  ;;  %v3245_v24 = vld [vmem:[#allocation3 + $0x121] sm:$0xff]  ;;  %v3185_v20 = vld [vmem:[#allocation3 + $0x98] sm:$0xff] }
 0x32b   : > { %3166 = vst.msk [vmem:[#allocation3 + $0x151] sm:$0xff] %vm379_vm4, %v3134_v44  ;;  %v3135_v40 = vmax.f32 %v3103_v55, 0.0  ;;  %v3243_v0 = vld [vmem:[#allocation3 + $0x109] sm:$0xff]  ;;  %v9917_v44 = vpack.c.bf16 %v3183_v12, %v3182_v37  ;;  %v3698_v23 = vld [vmem:[#allocation3 + $0x1a] sm:$0xff] }
 0x32c   : > { %3164 = vst.msk [vmem:[#allocation3 + $0x139] sm:$0xff] %vm379_vm4, %v3132_v17  ;;  %v3133_v51 = vmax.f32 %v3101_v22, 0.0  ;;  %v3246_v31 = vld [vmem:[#allocation3 + $0x129] sm:$0xff]  ;;  %v3701_v48 = vld [vmem:[#allocation3 + $0x3a] sm:$0xff]  ;;  %v9962_v58 = vpack.c.bf16 %v3699_v27, %v3698_v23 }
 0x32d   : > { %3167 = vst.msk [vmem:[#allocation3 + $0x159] sm:$0xff] %vm379_vm4, %v3135_v40  ;;  %v3244_v1 = vld [vmem:[#allocation3 + $0x111] sm:$0xff]  ;;  %v9866_v54 = vpack.c.bf16 %v3246_v31, %v3245_v24  ;;  %v3189_v22 = vld [vmem:[#allocation3 + $0xc8] sm:$0xff]  ;;  %v3188_v31 = vld [vmem:[#allocation3 + $0xc0] sm:$0xff] }
 0x32e   : > { %3165 = vst.msk [vmem:[#allocation3 + $0x141] sm:$0xff] %vm379_vm4, %v3133_v51  ;;  %v8187_v13 = vpop.f32.mrb[28].mxu0  ;;  %v9863_v14 = vpack.c.bf16 %v3244_v1, %v3243_v0  ;;  %v3184_v55 = vld [vmem:[#allocation3 + $0x90] sm:$0xff]  ;;  %v3186_v40 = vld [vmem:[#allocation3 + $0xa8] sm:$0xff]  ;;  %v9927_v0 = vpack.c.bf16 %v3189_v22, %v3188_v31  ;;  %v3191_v1 = vld [vmem:[#allocation3 + $0xe0] sm:$0xff] }
 0x32f   : > { %v3106_v25 = vadd.f32 %v8187_v13, %v9757_v2  ;;  %v3022_v35 = vpop.f32.mrb[29].mxu0  ;;  %v9919_v61 = vpack.c.bf16 %v3185_v20, %v3184_v55  ;;  %v3187_v17 = vld [vmem:[#allocation3 + $0xb0] sm:$0xff]  ;;  %v3193_v13 = vld [vmem:[#allocation3 + $0xf8] sm:$0xff]  ;;  %v7422_v28 = vld [vmem:[%s10707_s3 + $0x10] sm:$0xf] }
 0x330   : > { %v3104_v57 = vadd.f32 %v9757_v2, %v3022_v35  ;;  %v8188_v3 = vpop.f32.mrb[30].mxu0  ;;  %8212 = vmatmul.mubr.msk.bf16.gmra.mrb[20].mxu1 %vm379_vm4, %v9863_v14  ;;  %v9925_v51 = vpack.c.bf16 %v3187_v17, %v3186_v40  ;;  %v3190_v24 = vld [vmem:[#allocation3 + $0xd8] sm:$0xff]  ;;  %v3192_v35 = vld [vmem:[#allocation3 + $0xf0] sm:$0xff]  ;;  %v3704_v37 = vld [vmem:[#allocation3 + $0x62] sm:$0xff] }
 0x331   : > { %v3138_v62 = vmax.f32 %v3106_v25, 0.0  ;;  %v3107_v4 = vadd.f32 %v8188_v3, %v9757_v2  ;;  %v3025_v5 = vpop.f32.mrb[31].mxu0  ;;  %8215 = vmatprep.mubr.msk.bf16.mxu1 %vm379_vm4, %v9866_v54  ;;  %v9933_v25 = vpack.c.bf16 %v3191_v1, %v3190_v24  ;;  %v3195_v3 = vld [vmem:[#allocation3 + $0x110] sm:$0xff]  ;;  %v3706_v22 = vld [vmem:[#allocation3 + $0x7a] sm:$0xff]  ;;  %v3707_v40 = vld [vmem:[#allocation3 + $0x82] sm:$0xff] }
 0x332   : > { %v3136_v10 = vmax.f32 %v3104_v57, 0.0  ;;  %v3105_v11 = vadd.f32 %v9757_v2, %v3025_v5  ;;  %v3249_v52 = vld [vmem:[#allocation3 + $0x151] sm:$0xff]  ;;  %v3172_v2 = vld [vmem:[#allocation3] sm:$0xff]  ;;  %v9935_v57 = vpack.c.bf16 %v3193_v13, %v3192_v35  ;;  %v9984_v13 = vpack.c.bf16 %v3707_v40, %v3706_v22 }
 0x333   : > { %3170 = vst.msk [vmem:[#allocation3 + $0x181] sm:$0xff] %vm379_vm4, %v3138_v62  ;;  %v3139_v16 = vmax.f32 %v3107_v4, 0.0  ;;  %v3247_v39 = vld [vmem:[#allocation3 + $0x139] sm:$0xff]  ;;  %v3204_v18 = vpack.c.bf16 %v3173_v63, %v3172_v2  ;;  %v3197_v62 = vld [vmem:[#allocation3 + $0x128] sm:$0xff] }
 0x334   : > { %3168 = vst.msk [vmem:[#allocation3 + $0x169] sm:$0xff] %vm379_vm4, %v3136_v10  ;;  %v3137_v29 = vmax.f32 %v3105_v11, 0.0  ;;  %v3250_v38 = vld [vmem:[#allocation3 + $0x159] sm:$0xff]  ;;  %v3194_v4 = vld [vmem:[#allocation3 + $0x108] sm:$0xff] }
 0x335   : > { %3171 = vst.msk [vmem:[#allocation3 + $0x189] sm:$0xff] %vm379_vm4, %v3139_v16  ;;  %v3248_v46 = vld [vmem:[#allocation3 + $0x141] sm:$0xff]  ;;  %v9881_v53 = vpack.c.bf16 %v3250_v38, %v3249_v52  ;;  %v9941_v5 = vpack.c.bf16 %v3195_v3, %v3194_v4  ;;  %v3198_v38 = vld [vmem:[#allocation3 + $0x138] sm:$0xff]  ;;  %v3697_v63 = vld [vmem:[#allocation3 + $0xa] sm:$0xff] }
 0x336   : > { %3169 = vst.msk [vmem:[#allocation3 + $0x171] sm:$0xff] %vm379_vm4, %v3137_v29  ;;  %v9879_v47 = vpack.c.bf16 %v3248_v46, %v3247_v39  ;;  %v3196_v10 = vld [vmem:[#allocation3 + $0x120] sm:$0xff]  ;;  %v3201_v29 = vld [vmem:[#allocation3 + $0x158] sm:$0xff]  ;;  %v3200_v46 = vld [vmem:[#allocation3 + $0x150] sm:$0xff] }
 0x337   : > { %v9943_v11 = vpack.c.bf16 %v3197_v62, %v3196_v10  ;;  %v3199_v16 = vld [vmem:[#allocation3 + $0x140] sm:$0xff]  ;;  %v9951_v52 = vpack.c.bf16 %v3201_v29, %v3200_v46  ;;  %v3702_v12 = vld [vmem:[#allocation3 + $0x4a] sm:$0xff]  ;;  %v3703_v20 = vld [vmem:[#allocation3 + $0x52] sm:$0xff] }
 0x338   : > { %8216 = vmatmul.mubr.msk.bf16.gmra.mrb[24].mxu1 %vm379_vm4, %v9879_v47  ;;  %v9949_v39 = vpack.c.bf16 %v3199_v16, %v3198_v38  ;;  %v3696_v2 = vld [vmem:[#allocation3 + $0x2] sm:$0xff]  ;;  %v3705_v55 = vld [vmem:[#allocation3 + $0x6a] sm:$0xff]  ;;  %v3708_v31 = vld [vmem:[#allocation3 + $0x92] sm:$0xff] }
 0x339   : > { %8219 = vmatprep.mubr.msk.bf16.mxu1 %vm379_vm4, %v9881_v53  ;;  %v9978_v17 = vpack.c.bf16 %v3705_v55, %v3704_v37  ;;  %v3709_v1 = vld [vmem:[#allocation3 + $0x9a] sm:$0xff]  ;;  %v3710_v35 = vld [vmem:[#allocation3 + $0xaa] sm:$0xff]  ;;  %v3711_v3 = vld [vmem:[#allocation3 + $0xb2] sm:$0xff] }
 0x33a   : > { %v9986_v24 = vpack.c.bf16 %v3709_v1, %v3708_v31  ;;  %v3712_v62 = vld [vmem:[#allocation3 + $0xc2] sm:$0xff]  ;;  %v3713_v4 = vld [vmem:[#allocation3 + $0xca] sm:$0xff]  ;;  %v9992_v10 = vpack.c.bf16 %v3711_v3, %v3710_v35  ;;  %v3714_v29 = vld [vmem:[#allocation3 + $0xda] sm:$0xff]  ;;  %v4383_v35 = vsel %vm3319_vm7, %v7422_v28, 0 }
 0x33b   : > { %v3251_v7 = vld [vmem:[#allocation3 + $0x169] sm:$0xff]  ;;  %v9994_v16 = vpack.c.bf16 %v3713_v4, %v3712_v62  ;;  %v3716_v46 = vld [vmem:[#allocation3 + $0xf2] sm:$0xff]  ;;  %v3725_v37 = vld [vmem:[#allocation3 + $0x15a] sm:$0xff] }
 0x33c   : > { %v3715_v38 = vld [vmem:[#allocation3 + $0xe2] sm:$0xff]  ;;  %v3721_v27 = vld [vmem:[#allocation3 + $0x12a] sm:$0xff] }
 0x33d   : > { %v3252_v8 = vld [vmem:[#allocation3 + $0x171] sm:$0xff]  ;;  %v3720_v23 = vld [vmem:[#allocation3 + $0x122] sm:$0xff] }
 0x33e   : > { %v9887_v26 = vpack.c.bf16 %v3252_v8, %v3251_v7  ;;  %v3203_v7 = vld [vmem:[#allocation3 + $0x170] sm:$0xff]  ;;  %v3202_v8 = vld [vmem:[#allocation3 + $0x168] sm:$0xff]  ;;  %v7439_v3 = vld [vmem:[%s10707_s3 + $0x14] sm:$0xf] }
 0x33f   : > { %v9957_v21 = vpack.c.bf16 %v3203_v7, %v3202_v8  ;;  %v3718_v8 = vld [vmem:[#allocation3 + $0x10a] sm:$0xff]  ;;  %v3727_v31 = vld [vmem:[#allocation3 + $0x172] sm:$0xff]  ;;  %v4677_v4 = vsel %vm3319_vm7, %v7439_v3, 0 }
 0x340   : > { %8220 = vmatmul.mubr.msk.bf16.gmra.mrb[28].mxu1 %vm379_vm4, %v9887_v26  ;;  %v3726_v40 = vld [vmem:[#allocation3 + $0x16a] sm:$0xff] }
 0x341   : > { %8225 = vmatprep.mubr.msk.bf16.mxu1 %vm379_vm4, %v3204_v18  ;;  %v3728_v18 = vpack.c.bf16 %v3697_v63, %v3696_v2  ;;  %v3717_v2 = vld [vmem:[#allocation3 + $0xfa] sm:$0xff]  ;;  %v10000_v63 = vpack.c.bf16 %v3715_v38, %v3714_v29  ;;  %v10024_v1 = vpack.c.bf16 %v3727_v31, %v3726_v40  ;;  %v7456_v29 = vld [vmem:[%s10707_s3 + $0x18] sm:$0xf] }
 0x342   : > { %v10002_v7 = vpack.c.bf16 %v3717_v2, %v3716_v46  ;;  %v5173_v38 = vld [vmem:[#allocation3 + $0x79] sm:$0xff]  ;;  %v5175_v2 = vld [vmem:[#allocation3 + $0x91] sm:$0xff] }
 0x343   : > { %v5184_v40 = vld [vmem:[#allocation3 + $0xf9] sm:$0xff] }
 0x344   : > { %v5181_v31 = vld [vmem:[#allocation3 + $0xd9] sm:$0xff] }
 0x348   : > { %8226 = vmatmul.mubr.msk.bf16.vlgmr.msra.gmra.mrb[0].mxu1 %vm379_vm4, %v9892_v30 }
 0x349   : > { %8258 = vmatpush3.bf16.msra.mxu1 %v3795_v45  ;;  %8229 = vmatprep.mubr.msk.bf16.mxu1 %vm379_vm4, %v9896_v49  ;;  %v3700_v45 = vld [vmem:[#allocation3 + $0x32] sm:$0xff] }
 0x34a   : > { %9019 = vmatprep.subr.msk.bf16.mxu1 %vm3319_vm7, %v9901_v50  ;;  %v9966_v59 = vpack.c.bf16 %v3701_v48, %v3700_v45  ;;  %v9976_v50 = vpack.c.bf16 %v3703_v20, %v3702_v12  ;;  %v10010_v48 = vpack.c.bf16 %v3721_v27, %v3720_v23  ;;  %v3723_v12 = vld [vmem:[#allocation3 + $0x142] sm:$0xff]  ;;  %v3724_v20 = vld [vmem:[#allocation3 + $0x152] sm:$0xff] }
 0x34b   : > { %v10018_v22 = vpack.c.bf16 %v3725_v37, %v3724_v20  ;;  %v5180_v23 = vld [vmem:[#allocation3 + $0xc9] sm:$0xff]  ;;  %v5182_v37 = vld [vmem:[#allocation3 + $0xe1] sm:$0xff] }
 0x34c   : > { %v5177_v27 = vld [vmem:[#allocation3 + $0xa9] sm:$0xff] }
 0x350   : > { %8230 = vmatmul.mubr.msk.bf16.gmra.mrb[4].mxu1 %vm379_vm4, %v9909_v6 }
 0x351   : > { %8233 = vmatprep.mubr.msk.bf16.mxu1 %vm379_vm4, %v9911_v42 }
 0x358   : > { %8234 = vmatmul.mubr.msk.bf16.gmra.mrb[8].mxu1 %vm379_vm4, %v9917_v44 }
 0x359   : > { %8237 = vmatprep.mubr.msk.bf16.mxu1 %vm379_vm4, %v9919_v61 }
 0x360   : > { %8238 = vmatmul.mubr.msk.bf16.gmra.mrb[12].mxu1 %vm379_vm4, %v9925_v51 }
 0x361   : > { %8241 = vmatprep.mubr.msk.bf16.mxu1 %vm379_vm4, %v9927_v0 }
 0x368   : > { %8242 = vmatmul.mubr.msk.bf16.gmra.mrb[16].mxu1 %vm379_vm4, %v9933_v25 }
 0x369   : > { %8245 = vmatprep.mubr.msk.bf16.mxu1 %vm379_vm4, %v9935_v57 }
 0x370   : > { %8246 = vmatmul.mubr.msk.bf16.gmra.mrb[20].mxu1 %vm379_vm4, %v9941_v5 }
 0x371   : > { %8249 = vmatprep.mubr.msk.bf16.mxu1 %vm379_vm4, %v9943_v11 }
 0x378   : > { %8250 = vmatmul.mubr.msk.bf16.gmra.mrb[24].mxu1 %vm379_vm4, %v9949_v39 }
 0x379   : > { %8253 = vmatprep.mubr.msk.bf16.mxu1 %vm379_vm4, %v9951_v52 }
 0x380   : > { %8254 = vmatmul.mubr.msk.bf16.gmra.mrb[28].mxu1 %vm379_vm4, %v9957_v21 }
 0x381   : > { %8259 = vmatprep.mubr.msk.bf16.mxu1 %vm379_vm4, %v3728_v18  ;;  %v3719_v18 = vld [vmem:[#allocation3 + $0x112] sm:$0xff] }
 0x382   : > { %v10008_v45 = vpack.c.bf16 %v3719_v18, %v3718_v8  ;;  %v5178_v18 = vld [vmem:[#allocation3 + $0xb1] sm:$0xff] }
 0x388   : > { %8260 = vmatmul.mubr.msk.bf16.vlgmr.msra.gmra.mrb[0].mxu1 %vm379_vm4, %v9962_v58 }
 0x389   : > { %8292 = vmatpush3.bf16.msra.mxu1 %v4089_v34  ;;  %8263 = vmatprep.mubr.msk.bf16.mxu1 %vm379_vm4, %v9966_v59  ;;  %v3722_v34 = vld [vmem:[#allocation3 + $0x13a] sm:$0xff] }
 0x38a   : > { %9020 = vmatprep.subr.msk.bf16.mxu1 %vm3319_vm7, %v7422_v28  ;;  %v10016_v55 = vpack.c.bf16 %v3723_v12, %v3722_v34  ;;  %v4020_v28 = vld [vmem:[#allocation3 + $0x180] sm:$0xff]  ;;  %v5204_v34 = vpack.c.bf16 %v5178_v18, %v5177_v27 }
 0x38b   : > { %v5179_v12 = vld [vmem:[#allocation3 + $0xc1] sm:$0xff] }
 0x38c   : > { %v5205_v20 = vpack.c.bf16 %v5180_v23, %v5179_v12 }
 0x390   : > { %8264 = vmatmul.mubr.msk.bf16.gmra.mrb[4].mxu1 %vm379_vm4, %v9976_v50 }
 0x391   : > { %8267 = vmatprep.mubr.msk.bf16.mxu1 %vm379_vm4, %v9978_v17 }
 0x398   : > { %8268 = vmatmul.mubr.msk.bf16.gmra.mrb[8].mxu1 %vm379_vm4, %v9984_v13 }
 0x399   : > { %8271 = vmatprep.mubr.msk.bf16.mxu1 %vm379_vm4, %v9986_v24 }
 0x3a0   : > { %8272 = vmatmul.mubr.msk.bf16.gmra.mrb[12].mxu1 %vm379_vm4, %v9992_v10 }
 0x3a1   : > { %8275 = vmatprep.mubr.msk.bf16.mxu1 %vm379_vm4, %v9994_v16 }
 0x3a8   : > { %8276 = vmatmul.mubr.msk.bf16.gmra.mrb[16].mxu1 %vm379_vm4, %v10000_v63 }
 0x3a9   : > { %8279 = vmatprep.mubr.msk.bf16.mxu1 %vm379_vm4, %v10002_v7 }
 0x3b0   : > { %8280 = vmatmul.mubr.msk.bf16.gmra.mrb[20].mxu1 %vm379_vm4, %v10008_v45 }
 0x3b1   : > { %8283 = vmatprep.mubr.msk.bf16.mxu1 %vm379_vm4, %v10010_v48 }
 0x3b8   : > { %8284 = vmatmul.mubr.msk.bf16.gmra.mrb[24].mxu1 %vm379_vm4, %v10016_v55 }
 0x3b9   : > { %8287 = vmatprep.mubr.msk.bf16.mxu1 %vm379_vm4, %v10018_v22 }
 0x3c0   : > { %8288 = vmatmul.mubr.msk.bf16.gmra.mrb[28].mxu1 %vm379_vm4, %v10024_v1 }
 0x3c1   : > { %8293 = vmatprep.mubr.msk.bf16.mxu1 %vm379_vm4, %v9892_v30  ;;  %v4021_v30 = vld [vmem:[#allocation3 + $0x188] sm:$0xff] }
 0x3c2   : > { %v10063_v62 = vpack.c.bf16 %v4021_v30, %v4020_v28  ;;  %v5197_v28 = vld [vmem:[#allocation3 + $0x199] sm:$0xff] }
 0x3c8   : > { %8294 = vmatmul.mubr.msk.bf16.vlgmr.msra.gmra.mrb[0].mxu1 %vm379_vm4, %v9896_v49 }
 0x3c9   : > { %8326 = vmatpush3.bf16.msra.mxu1 %v4383_v35  ;;  %8297 = vmatprep.mubr.msk.bf16.mxu1 %vm379_vm4, %v9909_v6  ;;  %v5206_v35 = vpack.c.bf16 %v5182_v37, %v5181_v31 }
 0x3ca   : > { %9021 = vmatprep.subr.msk.bf16.mxu1 %vm3319_vm7, %v7439_v3  ;;  %v5183_v3 = vld [vmem:[#allocation3 + $0xf1] sm:$0xff] }
 0x3cb   : > { %v5207_v30 = vpack.c.bf16 %v5184_v40, %v5183_v3 }
 0x3d0   : > { %8298 = vmatmul.mubr.msk.bf16.gmra.mrb[4].mxu1 %vm379_vm4, %v9911_v42 }
 0x3d1   : > { %8301 = vmatprep.mubr.msk.bf16.mxu1 %vm379_vm4, %v9917_v44 }
 0x3d8   : > { %8302 = vmatmul.mubr.msk.bf16.gmra.mrb[8].mxu1 %vm379_vm4, %v9919_v61 }
 0x3d9   : > { %8305 = vmatprep.mubr.msk.bf16.mxu1 %vm379_vm4, %v9925_v51 }
 0x3e0   : > { %8306 = vmatmul.mubr.msk.bf16.gmra.mrb[12].mxu1 %vm379_vm4, %v9927_v0 }
 0x3e1   : > { %8309 = vmatprep.mubr.msk.bf16.mxu1 %vm379_vm4, %v9933_v25 }
 0x3e8   : > { %8310 = vmatmul.mubr.msk.bf16.gmra.mrb[16].mxu1 %vm379_vm4, %v9935_v57 }
 0x3e9   : > { %8313 = vmatprep.mubr.msk.bf16.mxu1 %vm379_vm4, %v9941_v5 }
 0x3f0   : > { %8314 = vmatmul.mubr.msk.bf16.gmra.mrb[20].mxu1 %vm379_vm4, %v9943_v11 }
 0x3f1   : > { %8317 = vmatprep.mubr.msk.bf16.mxu1 %vm379_vm4, %v9949_v39 }
 0x3f8   : > { %8318 = vmatmul.mubr.msk.bf16.gmra.mrb[24].mxu1 %vm379_vm4, %v9951_v52 }
 0x3f9   : > { %8321 = vmatprep.mubr.msk.bf16.mxu1 %vm379_vm4, %v9957_v21 }
 0x400   : > { %8322 = vmatmul.mubr.msk.bf16.gmra.mrb[28].mxu1 %vm379_vm4, %v10063_v62 }
 0x401   : > { %8327 = vmatprep.mubr.msk.bf16.mxu1 %vm379_vm4, %v9775_v36  ;;  %v4315_v36 = vld [vmem:[#allocation3 + $0x189] sm:$0xff] }
 0x408   : > { %8328 = vmatmul.mubr.msk.bf16.vlgmr.msra.gmra.mrb[0].mxu1 %vm379_vm4, %v9779_v33  ;;  %v4314_v33 = vld [vmem:[#allocation3 + $0x181] sm:$0xff] }
 0x409   : > { %8360 = vmatpush3.bf16.msra.mxu1 %v4677_v4  ;;  %8331 = vmatprep.mubr.msk.bf16.mxu1 %vm379_vm4, %v9799_v32  ;;  %v10102_v32 = vpack.c.bf16 %v4315_v36, %v4314_v33 }
 0x40a   : > { %9022 = vmatprep.subr.msk.bf16.mxu1 %vm3319_vm7, %v7456_v29 }
 0x410   : > { %8332 = vmatmul.mubr.msk.bf16.gmra.mrb[4].mxu1 %vm379_vm4, %v9802_v56  ;;  %v4972_v56 = vsel %vm3319_vm7, %v7456_v29, 0 }
 0x411   : > { %8335 = vmatprep.mubr.msk.bf16.mxu1 %vm379_vm4, %v9815_v41  ;;  %v7473_v41 = vld [vmem:[%s10707_s3 + $0x1c] sm:$0xf] }
 0x418   : > { %8336 = vmatmul.mubr.msk.bf16.gmra.mrb[8].mxu1 %vm379_vm4, %v9818_v43  ;;  %v4608_v43 = vld [vmem:[#allocation3 + $0x182] sm:$0xff] }
 0x419   : > { %8339 = vmatprep.mubr.msk.bf16.mxu1 %vm379_vm4, %v9831_v60  ;;  %v4609_v60 = vld [vmem:[#allocation3 + $0x18a] sm:$0xff] }
 0x420   : > { %8340 = vmatmul.mubr.msk.bf16.gmra.mrb[12].mxu1 %vm379_vm4, %v9834_v15  ;;  %v10141_v15 = vpack.c.bf16 %v4609_v60, %v4608_v43 }
 0x421   : > { %8343 = vmatprep.mubr.msk.bf16.mxu1 %vm379_vm4, %v9847_v9  ;;  %v5266_v9 = vsel %vm3319_vm7, %v7473_v41, 0 }
 0x428   : > { %8344 = vmatmul.mubr.msk.bf16.gmra.mrb[16].mxu1 %vm379_vm4, %v9850_v19  ;;  %v7490_v19 = vld [vmem:[%s10707_s3 + $0x20] sm:$0xf] }
 0x429   : > { %8347 = vmatprep.mubr.msk.bf16.mxu1 %vm379_vm4, %v9863_v14 }
 0x430   : > { %8348 = vmatmul.mubr.msk.bf16.gmra.mrb[20].mxu1 %vm379_vm4, %v9866_v54 }
 0x431   : > { %8351 = vmatprep.mubr.msk.bf16.mxu1 %vm379_vm4, %v9879_v47 }
 0x438   : > { %8352 = vmatmul.mubr.msk.bf16.gmra.mrb[24].mxu1 %vm379_vm4, %v9881_v53 }
 0x439   : > { %8355 = vmatprep.mubr.msk.bf16.mxu1 %vm379_vm4, %v9887_v26 }
 0x440   : > { %8356 = vmatmul.mubr.msk.bf16.gmra.mrb[28].mxu1 %vm379_vm4, %v10102_v32 }
 0x441   : > { %8361 = vmatprep.mubr.msk.bf16.mxu1 %vm379_vm4, %v9962_v58  ;;  %v5176_v58 = vld [vmem:[#allocation3 + $0x99] sm:$0xff] }
 0x442   : > { %v5203_v8 = vpack.c.bf16 %v5176_v58, %v5175_v2 }
 0x448   : > { %8362 = vmatmul.mubr.msk.bf16.vlgmr.msra.gmra.mrb[0].mxu1 %vm379_vm4, %v9966_v59 }
 0x449   : > { %8394 = vmatpush3.bf16.msra.mxu1 %v4972_v56  ;;  %8365 = vmatprep.mubr.msk.bf16.mxu1 %vm379_vm4, %v9976_v50 }
 0x44a   : > { %9023 = vmatprep.subr.msk.bf16.mxu1 %vm3319_vm7, %v7473_v41 }
 0x450   : > { %8366 = vmatmul.mubr.msk.bf16.gmra.mrb[4].mxu1 %vm379_vm4, %v9978_v17 }
 0x451   : > { %8369 = vmatprep.mubr.msk.bf16.mxu1 %vm379_vm4, %v9984_v13 }
 0x458   : > { %8370 = vmatmul.mubr.msk.bf16.gmra.mrb[8].mxu1 %vm379_vm4, %v9986_v24 }
 0x459   : > { %8373 = vmatprep.mubr.msk.bf16.mxu1 %vm379_vm4, %v9992_v10 }
 0x460   : > { %8374 = vmatmul.mubr.msk.bf16.gmra.mrb[12].mxu1 %vm379_vm4, %v9994_v16 }
 0x461   : > { %8377 = vmatprep.mubr.msk.bf16.mxu1 %vm379_vm4, %v10000_v63 }
 0x468   : > { %8378 = vmatmul.mubr.msk.bf16.gmra.mrb[16].mxu1 %vm379_vm4, %v10002_v7 }
 0x469   : > { %8381 = vmatprep.mubr.msk.bf16.mxu1 %vm379_vm4, %v10008_v45 }
 0x470   : > { %8382 = vmatmul.mubr.msk.bf16.gmra.mrb[20].mxu1 %vm379_vm4, %v10010_v48 }
 0x471   : > { %8385 = vmatprep.mubr.msk.bf16.mxu1 %vm379_vm4, %v10016_v55 }
 0x478   : > { %8386 = vmatmul.mubr.msk.bf16.gmra.mrb[24].mxu1 %vm379_vm4, %v10018_v22 }
 0x479   : > { %8389 = vmatprep.mubr.msk.bf16.mxu1 %vm379_vm4, %v10024_v1 }
 0x480   : > { %8390 = vmatmul.mubr.msk.bf16.gmra.mrb[28].mxu1 %vm379_vm4, %v10141_v15 }
 0x481   : > { %8395 = vmatprep.mubr.msk.bf16.mxu1 %vm379_vm4, %v9896_v49  ;;  %v4903_v49 = vld [vmem:[#allocation3 + $0x198] sm:$0xff] }
 0x488   : > { %8396 = vmatmul.mubr.msk.bf16.vlgmr.msra.gmra.mrb[0].mxu1 %vm379_vm4, %v9909_v6  ;;  %v4904_v6 = vld [vmem:[#allocation3 + $0x1a0] sm:$0xff] }
 0x489   : > { %8428 = vmatpush3.bf16.msra.mxu1 %v5266_v9  ;;  %8399 = vmatprep.mubr.msk.bf16.mxu1 %vm379_vm4, %v9911_v42  ;;  %v4920_v42 = vpack.c.bf16 %v4904_v6, %v4903_v49 }
 0x48a   : > { %9024 = vmatprep.subr.msk.bf16.mxu1 %vm3319_vm7, %v7490_v19 }
 0x490   : > { %8400 = vmatmul.mubr.msk.bf16.gmra.mrb[4].mxu1 %vm379_vm4, %v9917_v44  ;;  %v5168_v44 = vld [vmem:[#allocation3 + $0x39] sm:$0xff] }
 0x491   : > { %8403 = vmatprep.mubr.msk.bf16.mxu1 %vm379_vm4, %v9919_v61  ;;  %v5167_v61 = vld [vmem:[#allocation3 + $0x31] sm:$0xff] }
 0x498   : > { %8404 = vmatmul.mubr.msk.bf16.gmra.mrb[8].mxu1 %vm379_vm4, %v9925_v51  ;;  %v5199_v51 = vpack.c.bf16 %v5168_v44, %v5167_v61 }
 0x499   : > { %8407 = vmatprep.mubr.msk.bf16.mxu1 %vm379_vm4, %v9927_v0  ;;  %v5170_v0 = vld [vmem:[#allocation3 + $0x51] sm:$0xff] }
 0x4a0   : > { %8408 = vmatmul.mubr.msk.bf16.gmra.mrb[12].mxu1 %vm379_vm4, %v9933_v25  ;;  %v5172_v25 = vld [vmem:[#allocation3 + $0x69] sm:$0xff] }
 0x4a1   : > { %8411 = vmatprep.mubr.msk.bf16.mxu1 %vm379_vm4, %v9935_v57  ;;  %v5169_v57 = vld [vmem:[#allocation3 + $0x49] sm:$0xff] }
 0x4a8   : > { %8412 = vmatmul.mubr.msk.bf16.gmra.mrb[16].mxu1 %vm379_vm4, %v9941_v5  ;;  %v5200_v5 = vpack.c.bf16 %v5170_v0, %v5169_v57 }
 0x4a9   : > { %8415 = vmatprep.mubr.msk.bf16.mxu1 %vm379_vm4, %v9943_v11  ;;  %v5560_v11 = vsel %vm3319_vm7, %v7490_v19, 0 }
 0x4b0   : > { %8416 = vmatmul.mubr.msk.bf16.gmra.mrb[20].mxu1 %vm379_vm4, %v9949_v39  ;;  %v5171_v39 = vld [vmem:[#allocation3 + $0x61] sm:$0xff] }
 0x4b1   : > { %8419 = vmatprep.mubr.msk.bf16.mxu1 %vm379_vm4, %v9951_v52  ;;  %v5201_v52 = vpack.c.bf16 %v5172_v25, %v5171_v39 }
 0x4b8   : > { %8420 = vmatmul.mubr.msk.bf16.gmra.mrb[24].mxu1 %vm379_vm4, %v9957_v21  ;;  %v5174_v21 = vld [vmem:[#allocation3 + $0x81] sm:$0xff] }
 0x4b9   : > { %8423 = vmatprep.mubr.msk.bf16.mxu1 %vm379_vm4, %v10063_v62  ;;  %v5202_v46 = vpack.c.bf16 %v5174_v21, %v5173_v38  ;;  %v5198_v62 = vld [vmem:[#allocation3 + $0x1a1] sm:$0xff] }
 0x4ba   : > { %v5214_v4 = vpack.c.bf16 %v5198_v62, %v5197_v28 }
 0x4c0   : > { %8424 = vmatmul.mubr.msk.bf16.gmra.mrb[28].mxu1 %vm379_vm4, %v4920_v42 }
 0x4c1   : > { %8429 = vmatprep.mubr.msk.bf16.mxu1 %vm379_vm4, %v5199_v51 }
 0x4c8   : > { %8430 = vmatmul.mubr.msk.bf16.vlgmr.msra.gmra.mrb[0].mxu1 %vm379_vm4, %v5200_v5 }
 0x4c9   : > { %8462 = vmatpush3.bf16.msra.mxu1 %v5560_v11  ;;  %8433 = vmatprep.mubr.msk.bf16.mxu1 %vm379_vm4, %v5201_v52 }
 0x4d0   : > { %8434 = vmatmul.mubr.msk.bf16.gmra.mrb[4].mxu1 %vm379_vm4, %v5202_v46 }
 0x4d1   : > { %8437 = vmatprep.mubr.msk.bf16.mxu1 %vm379_vm4, %v5203_v8 }
 0x4d8   : > { %8438 = vmatmul.mubr.msk.bf16.gmra.mrb[8].mxu1 %vm379_vm4, %v5204_v34 }
 0x4d9   : > { %8441 = vmatprep.mubr.msk.bf16.mxu1 %vm379_vm4, %v5205_v20 }
 0x4e0   : > { %8442 = vmatmul.mubr.msk.bf16.gmra.mrb[12].mxu1 %vm379_vm4, %v5206_v35 }
 0x4e1   : > { %8445 = vmatprep.mubr.msk.bf16.mxu1 %vm379_vm4, %v5207_v30 }
 0x4e8   : > { %8446 = vmatmul.mubr.msk.bf16.gmra.mrb[16].mxu1 %vm379_vm4, %v9863_v14  ;;  %v5491_v14 = vld [vmem:[#allocation3 + $0x19a] sm:$0xff] }
 0x4e9   : > { %8449 = vmatprep.mubr.msk.bf16.mxu1 %vm379_vm4, %v9866_v54  ;;  %v5492_v54 = vld [vmem:[#allocation3 + $0x1a2] sm:$0xff] }
 0x4f0   : > { %8450 = vmatmul.mubr.msk.bf16.gmra.mrb[20].mxu1 %vm379_vm4, %v9879_v47  ;;  %v5508_v47 = vpack.c.bf16 %v5492_v54, %v5491_v14 }
 0x4f1   : > { %8453 = vmatprep.mubr.msk.bf16.mxu1 %vm379_vm4, %v9881_v53  ;;  %v9045_v53 = vmov 1983009808  }
 0x4f8   : > { %8454 = vmatmul.mubr.msk.bf16.gmra.mrb[24].mxu1 %vm379_vm4, %v9887_v26  ;;  %v6064_v26 = vunpack.c.l.s4 %v9045_v53 }
 0x4f9   : > { %8457 = vmatprep.mubr.msk.bf16.mxu1 %vm379_vm4, %v10102_v32 }
 0x500   : > { %8458 = vmatmul.mubr.msk.bf16.gmra.mrb[28].mxu1 %vm379_vm4, %v5214_v4 }
 0x501   : > { %8463 = vmatprep.mubr.msk.bf16.mxu1 %vm379_vm4, %v9966_v59  ;;  %v6066_v59 = vlaneseq }
 0x508   : > { %8464 = vmatmul.mubr.msk.bf16.vlgmr.msra.gmra.mrb[0].mxu1 %vm379_vm4, %v9976_v50  ;;  %v10238_v50 = vld [vmem:[%s10708_s4] ss:$0 sm:$0xff] }
 0x509   : > { %8467 = vmatprep.mubr.msk.bf16.mxu1 %vm379_vm4, %v9978_v17 }
 0x510   : > { %8468 = vmatmul.mubr.msk.bf16.gmra.mrb[4].mxu1 %vm379_vm4, %v9984_v13  ;;  %v6065_v13 = vunpack.c.0.s8 %v6064_v26 }
 0x511   : > { %8471 = vmatprep.mubr.msk.bf16.mxu1 %vm379_vm4, %v9986_v24  ;;  %v6067_v24 = vshrl.u32 %v6066_v59, 7 }
 0x513   : > { %v10259_v41 = vsub.s32 0, %v6067_v24 }
 0x518   : > { %8472 = vmatmul.mubr.msk.bf16.gmra.mrb[8].mxu1 %vm379_vm4, %v9992_v10 }
 0x519   : > { %8475 = vmatprep.mubr.msk.bf16.mxu1 %vm379_vm4, %v9994_v16 }
 0x520   : > { %8476 = vmatmul.mubr.msk.bf16.gmra.mrb[12].mxu1 %vm379_vm4, %v10000_v63 }
 0x521   : > { %8479 = vmatprep.mubr.msk.bf16.mxu1 %vm379_vm4, %v10002_v7 }
 0x528   : > { %8480 = vmatmul.mubr.msk.bf16.gmra.mrb[16].mxu1 %vm379_vm4, %v10008_v45 }
 0x529   : > { %8483 = vmatprep.mubr.msk.bf16.mxu1 %vm379_vm4, %v10010_v48 }
 0x530   : > { %8484 = vmatmul.mubr.msk.bf16.gmra.mrb[20].mxu1 %vm379_vm4, %v10016_v55 }
 0x531   : > { %8487 = vmatprep.mubr.msk.bf16.mxu1 %vm379_vm4, %v10018_v22 }
 0x538   : > { %8488 = vmatmul.mubr.msk.bf16.gmra.mrb[24].mxu1 %vm379_vm4, %v10024_v1  ;;  %v10250_v1 = vsub.s32 %v6065_v13, %v6067_v24 }
 0x539   : > { %8491 = vmatprep.mubr.msk.bf16.mxu1 %vm379_vm4, %v10141_v15 }
 0x540   : > { %8492 = vmatmul.mubr.msk.bf16.gmra.mrb[28].mxu1 %vm379_vm4, %v5508_v47 }
 0x5db   : > { %v8465_v17 = vpop.f32.mrb[0].mxu1 }
 0x5dc   : > { %v5764_v10 = vadd.f32 %v8465_v17, %v10238_v50  ;;  %v5596_v16 = vpop.f32.mrb[1].mxu1 }
 0x5dd   : > { %v5762_v63 = vadd.f32 %v10238_v50, %v5596_v16  ;;  %v8466_v7 = vpop.f32.mrb[2].mxu1 }
 0x5de   : > { %v5796_v45 = vmax.f32 %v5764_v10, 0.0  ;;  %v5765_v48 = vadd.f32 %v8466_v7, %v10238_v50  ;;  %v5599_v55 = vpop.f32.mrb[3].mxu1 }
 0x5df   : > { %v5794_v22 = vmax.f32 %v5762_v63, 0.0  ;;  %v5763_v29 = vadd.f32 %v10238_v50, %v5599_v55 }
 0x5e0   : > { %5828 = vst.msk [vmem:[%s10246_s15 + $0x10] sm:$0xff] %vm379_vm4, %v5796_v45  ;;  %v5930_v36 = vmul.f32 %v5796_v45, %v5796_v45  ;;  %v10255_v33 = vmax.f32 %v5765_v48, 0.0  ;;  %v5861_v60 = vsel %vm379_vm4, %v5796_v45, 0.0 }
 0x5e1   : > { %5826 = vst.msk [vmem:[%s10246_s15] sm:$0xff] %vm379_vm4, %v5794_v22  ;;  %v5928_v32 = vmul.f32 %v5794_v22, %v5794_v22  ;;  %v6030_v56 = vmax.f32 %v5794_v22, %v5796_v45  ;;  %v5795_v43 = vmax.f32 %v5763_v29, 0.0  ;;  %v5858_v9 = vsel %vm379_vm4, %v5794_v22, 0.0 }
 0x5e2   : > { %v5963_v15 = vsel %vm379_vm4, %v5930_v36, 0.0  ;;  %5829 = vst.msk [vmem:[%s10246_s15 + $0x18] sm:$0xff] %vm379_vm4, %v10255_v33  ;;  %v5931_v6 = vmul.f32 %v10255_v33, %v10255_v33  ;;  %v5863_v45 = vsel %vm379_vm4, %v10255_v33, 0.0 }
 0x5e3   : > { %v6062_v19 = vcombine.high %v6030_v56, %v6030_v56  ;;  %v6069_v49 = vrot.slane %v6030_v56, %v10250_v1  ;;  %5827 = vst.msk [vmem:[%s10246_s15 + $0x8] sm:$0xff] %vm379_vm4, %v5795_v43  ;;  %v5859_v42 = vsel %vm379_vm4, %v5795_v43, 0.0  ;;  %v8469_v44 = vpop.f32.mrb[4].mxu1  ;;  %v5960_v61 = vsel %vm379_vm4, %v5928_v32, 0.0 }
 0x5e4   : > { %v5860_v51 = vadd.f32 %v5859_v42, %v5858_v9  ;;  %v5929_v0 = vmul.f32 %v5795_v43, %v5795_v43  ;;  %v6031_v25 = vmax.f32 %v5795_v43, %v10255_v33  ;;  %v5612_v57 = vpop.f32.mrb[5].mxu1  ;;  %v5768_v52 = vadd.f32 %v8469_v44, %v10238_v50 }
 0x5e5   : > { %v6076_v5 = vrot.slane %v6062_v19, %v10250_v1  ;;  %v6077_v11 = vcombine.high %v6069_v49, %v6069_v49  ;;  %v7508_v39 = vrot.slane %v6069_v49, 9  ;;  %v10277_v21 = vpop.f32.mrb[6].mxu1  ;;  %v5766_v48 = vadd.f32 %v10238_v50, %v5612_v57 }
 0x5e6   : > { %v5862_v58 = vadd.f32 %v5861_v60, %v5860_v51  ;;  %v5961_v38 = vsel %vm379_vm4, %v5929_v0, 0.0  ;;  %v6079_v46 = vcombine.high %v6031_v25, %v6031_v25  ;;  %v6086_v2 = vrot.slane %v6031_v25, %v10250_v1  ;;  %v5615_v8 = vpop.f32.mrb[7].mxu1 }
 0x5e7   : > { %v6078_v18 = vcombine.high %v6076_v5, %v6076_v5  ;;  %v7509_v23 = vrot.slane %v6077_v11, 9  ;;  %v7510_v27 = vrot.slane %v6076_v5, 9  ;;  %v6590_v34 = vmax.f32 %v6069_v49, %v7508_v39 }
 0x5e8   : > { %v5962_v12 = vadd.f32 %v5961_v38, %v5960_v61  ;;  %v6093_v20 = vrot.slane %v6079_v46, %v10250_v1  ;;  %v6094_v37 = vcombine.high %v6086_v2, %v6086_v2  ;;  %v7512_v40 = vrot.slane %v6086_v2, 9 }
 0x5e9   : > { %v7511_v31 = vrot.slane %v6078_v18, 9  ;;  %v6591_v35 = vmax.f32 %v6077_v11, %v7509_v23  ;;  %v6592_v3 = vmax.f32 %v6076_v5, %v7510_v27  ;;  %v6721_v30 = vrot.slane %v6590_v34, %v10259_v41 }
 0x5ea   : > { %v5964_v28 = vadd.f32 %v5963_v15, %v5962_v12  ;;  %v6095_v62 = vcombine.high %v6093_v20, %v6093_v20  ;;  %v7513_v4 = vrot.slane %v6094_v37, 9  ;;  %v7514_v14 = vrot.slane %v6093_v20, 9 }
 0x5eb   : > { %v6593_v54 = vmax.f32 %v6078_v18, %v7511_v31  ;;  %v6725_v47 = vrot.slane %v6591_v35, %v10259_v41  ;;  %v6729_v53 = vrot.slane %v6592_v3, %v10259_v41  ;;  %v6594_v26 = vmax.f32 %v6086_v2, %v7512_v40  ;;  %v8473_v59 = vpop.f32.mrb[8].mxu1 }
 0x5ec   : > { %v7515_v17 = vrot.slane %v6095_v62, 9  ;;  %v6595_v13 = vmax.f32 %v6094_v37, %v7513_v4  ;;  %v6596_v24 = vmax.f32 %v6093_v20, %v7514_v14  ;;  %v5800_v10 = vmax.f32 %v5768_v52, 0.0  ;;  %v5628_v16 = vpop.f32.mrb[9].mxu1 }
 0x5ed   : > { %v6733_v63 = vrot.slane %v6593_v54, %v10259_v41  ;;  %v6975_v7 = vsel %vm6974_vm8, %v6725_v47, %v6721_v30  ;;  %v8474_v55 = vpop.f32.mrb[10].mxu1  ;;  %v5965_v29 = vsel %vm379_vm4, %v5931_v6, 0.0  ;;  %v6737_v32 = vrot.slane %v6594_v26, %v10259_v41 }
 0x5ee   : > { %v6977_v22 = vsel %vm6976_vm9, %v6729_v53, %v6975_v7  ;;  %v6597_v36 = vmax.f32 %v6095_v62, %v7515_v17  ;;  %5832 = vst.msk [vmem:[%s10246_s15 + $0x30] sm:$0xff] %vm379_vm4, %v5800_v10  ;;  %v10296_v56 = vpop.f32.mrb[11].mxu1  ;;  %v6741_v43 = vrot.slane %v6595_v13, %v10259_v41  ;;  %v6745_v33 = vrot.slane %v6596_v24, %v10259_v41 }
 0x5ef   : > { %v6979_v60 = vsel %vm6978_vm10, %v6733_v63, %v6977_v22  ;;  %v5798_v15 = vmax.f32 %v5766_v48, 0.0  ;;  %v5934_v19 = vmul.f32 %v5800_v10, %v5800_v10  ;;  %v5864_v49 = vadd.f32 %v5863_v45, %v5862_v58 }
 0x5f0   : > { %v6981_v9 = vsel %vm6980_vm11, %v6737_v32, %v6979_v60  ;;  %v5966_v6 = vadd.f32 %v5965_v29, %v5964_v28  ;;  %v6749_v42 = vrot.slane %v6597_v36, %v10259_v41  ;;  %v5769_v5 = vadd.f32 %v10277_v21, %v10238_v50 }
 0x5f1   : > { %v6983_v44 = vsel %vm6982_vm12, %v6741_v43, %v6981_v9  ;;  %5830 = vst.msk [vmem:[%s10246_s15 + $0x20] sm:$0xff] %vm379_vm4, %v5798_v15  ;;  %v5865_v61 = vsel %vm379_vm4, %v5798_v15, 0.0  ;;  %v5932_v51 = vmul.f32 %v5798_v15, %v5798_v15  ;;  %v6032_v57 = vmax.f32 %v5798_v15, %v5800_v10 }
 0x5f2   : > { %v6985_v0 = vsel %vm6984_vm13, %v6745_v33, %v6983_v44  ;;  %v5866_v25 = vadd.f32 %v5865_v61, %v5864_v49  ;;  %v5767_v52 = vadd.f32 %v10238_v50, %v5615_v8  ;;  %v5772_v58 = vadd.f32 %v8473_v59, %v10238_v50 }
 0x5f3   : > { %v6987_v11 = vsel %vm6986_vm14, %v6749_v42, %v6985_v0  ;;  %v5967_v39 = vsel %vm379_vm4, %v5932_v51, 0.0  ;;  %v10319_v38 = vpop.f32.mrb[12].mxu1  ;;  %v6096_v2 = vcombine.high %v6032_v57, %v6032_v57  ;;  %v6103_v18 = vrot.slane %v6032_v57, %v10250_v1 }
 0x5f4   : > { %7045 = vst.msk [vmem:[%s10305_s18] sm:$0xff] %vm379_vm4, %v6987_v11  ;;  %v5968_v46 = vadd.f32 %v5967_v39, %v5966_v6  ;;  %v5801_v23 = vmax.f32 %v5769_v5, 0.0  ;;  %v10324_v21 = vpop.f32.mrb[13].mxu1  ;;  %v5869_v27 = vsel %vm379_vm4, %v5800_v10, 0.0  ;;  %v5971_v8 = vsel %vm379_vm4, %v5934_v19, 0.0 }
 0x5f5   : > { %v5799_v34 = vmax.f32 %v5767_v52, 0.0  ;;  %v10328_v12 = vmax.f32 %v5772_v58, 0.0  ;;  %v10330_v20 = vpop.f32.mrb[14].mxu1  ;;  %v6110_v37 = vrot.slane %v6096_v2, %v10250_v1  ;;  %v6111_v40 = vcombine.high %v6103_v18, %v6103_v18 }
 0x5f6   : > { %v7516_v31 = vrot.slane %v6103_v18, 9  ;;  %5833 = vst.msk [vmem:[%s10246_s15 + $0x38] sm:$0xff] %vm379_vm4, %v5801_v23  ;;  %v5770_v35 = vadd.f32 %v10238_v50, %v5628_v16  ;;  %v10336_v3 = vpop.f32.mrb[15].mxu1  ;;  %v5773_v4 = vadd.f32 %v8474_v55, %v10238_v50  ;;  %v5871_v26 = vsel %vm379_vm4, %v5801_v23, 0.0 }
 0x5f7   : > { %5831 = vst.msk [vmem:[%s10246_s15 + $0x28] sm:$0xff] %vm379_vm4, %v5799_v34  ;;  %v5867_v30 = vsel %vm379_vm4, %v5799_v34, 0.0  ;;  %v5933_v28 = vmul.f32 %v5799_v34, %v5799_v34  ;;  %v6033_v62 = vmax.f32 %v5799_v34, %v5801_v23  ;;  %5836 = vst.msk [vmem:[%s10246_s15 + $0x50] sm:$0xff] %vm379_vm4, %v10328_v12  ;;  %v6112_v14 = vcombine.high %v6110_v37, %v6110_v37 }
 0x5f8   : > { %v7517_v54 = vrot.slane %v6111_v40, 9  ;;  %v7518_v47 = vrot.slane %v6110_v37, 9  ;;  %v6598_v53 = vmax.f32 %v6103_v18, %v7516_v31  ;;  %v5868_v59 = vadd.f32 %v5867_v30, %v5866_v25 }
 0x5f9   : > { %v5969_v17 = vsel %vm379_vm4, %v5933_v28, 0.0  ;;  %v6113_v13 = vcombine.high %v6033_v62, %v6033_v62  ;;  %v7519_v24 = vrot.slane %v6112_v14, 9  ;;  %v5935_v63 = vmul.f32 %v5801_v23, %v5801_v23 }
 0x5fa   : > { %v6599_v10 = vmax.f32 %v6111_v40, %v7517_v54  ;;  %v6600_v16 = vmax.f32 %v6110_v37, %v7518_v47  ;;  %v5870_v7 = vadd.f32 %v5869_v27, %v5868_v59  ;;  %v5970_v45 = vadd.f32 %v5969_v17, %v5968_v46 }
 0x5fb   : > { %v6120_v48 = vrot.slane %v6033_v62, %v10250_v1  ;;  %v6127_v55 = vrot.slane %v6113_v13, %v10250_v1  ;;  %v10349_v22 = vpop.f32.mrb[16].mxu1  ;;  %v6601_v29 = vmax.f32 %v6112_v14, %v7519_v24  ;;  %v6753_v36 = vrot.slane %v6598_v53, %v10259_v41 }
 0x5fc   : > { %v6757_v32 = vrot.slane %v6599_v10, %v10259_v41  ;;  %v6761_v43 = vrot.slane %v6600_v16, %v10259_v41  ;;  %v10354_v33 = vpop.f32.mrb[17].mxu1  ;;  %v5972_v60 = vadd.f32 %v5971_v8, %v5970_v45  ;;  %v5973_v44 = vsel %vm379_vm4, %v5935_v63, 0.0 }
 0x5fd   : > { %v6128_v15 = vcombine.high %v6120_v48, %v6120_v48  ;;  %v6129_v9 = vcombine.high %v6127_v55, %v6127_v55  ;;  %v7520_v19 = vrot.slane %v6120_v48, 9  ;;  %v10356_v49 = vpop.f32.mrb[18].mxu1  ;;  %v6765_v6 = vrot.slane %v6601_v29, %v10259_v41 }
 0x5fe   : > { %v6988_v42 = vsel %vm6974_vm8, %v6757_v32, %v6753_v36  ;;  %v7522_v61 = vrot.slane %v6127_v55, 9  ;;  %v10361_v51 = vpop.f32.mrb[19].mxu1  ;;  %v5938_v52 = vmul.f32 %v10328_v12, %v10328_v12  ;;  %v5802_v58 = vmax.f32 %v5770_v35, 0.0 }
 0x5ff   : > { %v6989_v0 = vsel %vm6976_vm9, %v6761_v43, %v6988_v42  ;;  %v7521_v25 = vrot.slane %v6128_v15, 9  ;;  %v7523_v57 = vrot.slane %v6129_v9, 9  ;;  %v6602_v5 = vmax.f32 %v6120_v48, %v7520_v19 }
 0x600   : > { %v6604_v11 = vmax.f32 %v6127_v55, %v7522_v61  ;;  %v6990_v39 = vsel %vm6978_vm10, %v6765_v6, %v6989_v0  ;;  %v5872_v23 = vadd.f32 %v5871_v26, %v5870_v7  ;;  %5834 = vst.msk [vmem:[%s10246_s15 + $0x40] sm:$0xff] %vm379_vm4, %v5802_v58  ;;  %v5873_v8 = vsel %vm379_vm4, %v5802_v58, 0.0 }
 0x601   : > { %v6603_v46 = vmax.f32 %v6128_v15, %v7521_v25  ;;  %v6605_v2 = vmax.f32 %v6129_v9, %v7523_v57  ;;  %v6769_v18 = vrot.slane %v6602_v5, %v10259_v41  ;;  %v5936_v34 = vmul.f32 %v5802_v58, %v5802_v58 }
 0x602   : > { %v6777_v27 = vrot.slane %v6604_v11, %v10259_v41  ;;  %v5974_v37 = vadd.f32 %v5973_v44, %v5972_v60  ;;  %v5874_v35 = vadd.f32 %v5873_v8, %v5872_v23  ;;  %v6034_v14 = vmax.f32 %v5802_v58, %v10328_v12 }
 0x603   : > { %v6773_v40 = vrot.slane %v6603_v46, %v10259_v41  ;;  %v6781_v31 = vrot.slane %v6605_v2, %v10259_v41  ;;  %v6991_v30 = vsel %vm6980_vm11, %v6769_v18, %v6990_v39  ;;  %v10375_v28 = vpop.f32.mrb[20].mxu1  ;;  %v5975_v62 = vsel %vm379_vm4, %v5936_v34, 0.0 }
 0x604   : > { %v5805_v54 = vmax.f32 %v5773_v4, 0.0  ;;  %v5771_v47 = vadd.f32 %v10238_v50, %v10296_v56  ;;  %v10381_v53 = vpop.f32.mrb[21].mxu1  ;;  %v5976_v59 = vadd.f32 %v5975_v62, %v5974_v37  ;;  %v5776_v17 = vadd.f32 %v10319_v38, %v10238_v50 }
 0x605   : > { %v6992_v26 = vsel %vm6982_vm12, %v6773_v40, %v6991_v30  ;;  %v5774_v13 = vadd.f32 %v10238_v50, %v10324_v21  ;;  %v10388_v24 = vpop.f32.mrb[22].mxu1  ;;  %v5877_v56 = vsel %vm379_vm4, %v10328_v12, 0.0  ;;  %v6130_v4 = vcombine.high %v6034_v14, %v6034_v14 }
 0x606   : > { %v6993_v10 = vsel %vm6984_vm13, %v6777_v27, %v6992_v26  ;;  %v6137_v16 = vrot.slane %v6034_v14, %v10250_v1  ;;  %5837 = vst.msk [vmem:[%s10246_s15 + $0x58] sm:$0xff] %vm379_vm4, %v5805_v54  ;;  %v10396_v63 = vpop.f32.mrb[23].mxu1  ;;  %v5979_v21 = vsel %vm379_vm4, %v5938_v52, 0.0  ;;  %v5803_v7 = vmax.f32 %v5771_v47, 0.0 }
 0x607   : > { %v6994_v38 = vsel %vm6986_vm14, %v6781_v31, %v6993_v10  ;;  %v10400_v45 = vmax.f32 %v5776_v17, 0.0  ;;  %v6144_v12 = vrot.slane %v6130_v4, %v10250_v1  ;;  %v5806_v29 = vmax.f32 %v5774_v13, 0.0 }
 0x608   : > { %7046 = vst.msk [vmem:[%s10305_s18 + $0x8] sm:$0xff] %vm379_vm4, %v6994_v38  ;;  %v6145_v48 = vcombine.high %v6137_v16, %v6137_v16  ;;  %v7524_v55 = vrot.slane %v6137_v16, 9  ;;  %v5939_v36 = vmul.f32 %v5805_v54, %v5805_v54  ;;  %5835 = vst.msk [vmem:[%s10246_s15 + $0x48] sm:$0xff] %vm379_vm4, %v5803_v7  ;;  %v5875_v32 = vsel %vm379_vm4, %v5803_v7, 0.0 }
 0x609   : > { %v5937_v43 = vmul.f32 %v5803_v7, %v5803_v7  ;;  %v6035_v60 = vmax.f32 %v5803_v7, %v5805_v54  ;;  %5840 = vst.msk [vmem:[%s10246_s15 + $0x70] sm:$0xff] %vm379_vm4, %v10400_v45  ;;  %v6146_v15 = vcombine.high %v6144_v12, %v6144_v12  ;;  %v7526_v19 = vrot.slane %v6144_v12, 9  ;;  %5838 = vst.msk [vmem:[%s10246_s15 + $0x60] sm:$0xff] %vm379_vm4, %v5806_v29 }
 0x60a   : > { %v7525_v9 = vrot.slane %v6145_v48, 9  ;;  %v6606_v6 = vmax.f32 %v6137_v16, %v7524_v55  ;;  %v5876_v42 = vadd.f32 %v5875_v32, %v5874_v35  ;;  %v5879_v26 = vsel %vm379_vm4, %v5805_v54, 0.0 }
 0x60b   : > { %v5977_v44 = vsel %vm379_vm4, %v5937_v43, 0.0  ;;  %v6147_v61 = vcombine.high %v6035_v60, %v6035_v60  ;;  %v6154_v0 = vrot.slane %v6035_v60, %v10250_v1  ;;  %v10415_v25 = vpop.f32.mrb[24].mxu1  ;;  %v7527_v57 = vrot.slane %v6146_v15, 9 }
 0x60c   : > { %v6607_v5 = vmax.f32 %v6145_v48, %v7525_v9  ;;  %v6608_v11 = vmax.f32 %v6144_v12, %v7526_v19  ;;  %v6785_v39 = vrot.slane %v6606_v6, %v10259_v41  ;;  %v10418_v52 = vpop.f32.mrb[25].mxu1  ;;  %v5878_v58 = vadd.f32 %v5877_v56, %v5876_v42 }
 0x60d   : > { %v5978_v46 = vadd.f32 %v5977_v44, %v5976_v59  ;;  %v6161_v2 = vrot.slane %v6147_v61, %v10250_v1  ;;  %v6162_v18 = vcombine.high %v6154_v0, %v6154_v0  ;;  %v10421_v23 = vpop.f32.mrb[26].mxu1  ;;  %v6609_v27 = vmax.f32 %v6146_v15, %v7527_v57 }
 0x60e   : > { %v6789_v8 = vrot.slane %v6607_v5, %v10259_v41  ;;  %v6793_v34 = vrot.slane %v6608_v11, %v10259_v41  ;;  %v7528_v37 = vrot.slane %v6154_v0, 9  ;;  %v10425_v40 = vpop.f32.mrb[27].mxu1  ;;  %v5981_v4 = vsel %vm379_vm4, %v5939_v36, 0.0 }
 0x60f   : > { %v5980_v31 = vadd.f32 %v5979_v21, %v5978_v46  ;;  %v6163_v30 = vcombine.high %v6161_v2, %v6161_v2  ;;  %v7529_v35 = vrot.slane %v6162_v18, 9  ;;  %v7530_v62 = vrot.slane %v6161_v2, 9 }
 0x610   : > { %v6797_v14 = vrot.slane %v6609_v27, %v10259_v41  ;;  %v6995_v47 = vsel %vm6974_vm8, %v6789_v8, %v6785_v39  ;;  %v6610_v59 = vmax.f32 %v6154_v0, %v7528_v37  ;;  %v5880_v21 = vadd.f32 %v5879_v26, %v5878_v58 }
 0x611   : > { %v6996_v17 = vsel %vm6976_vm9, %v6793_v34, %v6995_v47  ;;  %v7531_v13 = vrot.slane %v6163_v30, 9  ;;  %v6611_v10 = vmax.f32 %v6162_v18, %v7529_v35  ;;  %v6612_v56 = vmax.f32 %v6161_v2, %v7530_v62 }
 0x612   : > { %v6801_v16 = vrot.slane %v6610_v59, %v10259_v41  ;;  %v6997_v38 = vsel %vm6978_vm10, %v6797_v14, %v6996_v17  ;;  %v5942_v48 = vmul.f32 %v10400_v45, %v10400_v45  ;;  %v5881_v54 = vsel %vm379_vm4, %v5806_v29, 0.0 }
 0x613   : > { %v6613_v7 = vmax.f32 %v6163_v30, %v7531_v13  ;;  %v6805_v12 = vrot.slane %v6611_v10, %v10259_v41  ;;  %v10438_v55 = vpop.f32.mrb[28].mxu1  ;;  %v6809_v32 = vrot.slane %v6612_v56, %v10259_v41  ;;  %v5882_v36 = vadd.f32 %v5881_v54, %v5880_v21 }
 0x614   : > { %v6998_v43 = vsel %vm6980_vm11, %v6801_v16, %v6997_v38  ;;  %v5940_v60 = vmul.f32 %v5806_v29, %v5806_v29  ;;  %v10442_v15 = vpop.f32.mrb[29].mxu1  ;;  %v5982_v6 = vadd.f32 %v5981_v4, %v5980_v31  ;;  %v6036_v42 = vmax.f32 %v5806_v29, %v10400_v45 }
 0x615   : > { %v6813_v9 = vrot.slane %v6613_v7, %v10259_v41  ;;  %v6999_v19 = vsel %vm6982_vm12, %v6805_v12, %v6998_v43  ;;  %v10447_v44 = vpop.f32.mrb[30].mxu1  ;;  %v5777_v57 = vadd.f32 %v10330_v20, %v10238_v50  ;;  %v5775_v5 = vadd.f32 %v10238_v50, %v10336_v3 }
 0x616   : > { %v7000_v61 = vsel %vm6984_vm13, %v6809_v32, %v6999_v19  ;;  %v5983_v0 = vsel %vm379_vm4, %v5940_v60, 0.0  ;;  %v10455_v11 = vpop.f32.mrb[31].mxu1  ;;  %v6164_v29 = vcombine.high %v6036_v42, %v6036_v42  ;;  %v6171_v46 = vrot.slane %v6036_v42, %v10250_v1 }
 0x617   : > { %v7001_v39 = vsel %vm6986_vm14, %v6813_v9, %v7000_v61  ;;  %v5984_v58 = vadd.f32 %v5983_v0, %v5982_v6  ;;  %v5885_v2 = vsel %vm379_vm4, %v10400_v45, 0.0  ;;  %v5987_v20 = vsel %vm379_vm4, %v5942_v48, 0.0 }
 0x618   : > { %7047 = vst.msk [vmem:[%s10305_s18 + $0x10] sm:$0xff] %vm379_vm4, %v7001_v39  ;;  %v5809_v18 = vmax.f32 %v5777_v57, 0.0  ;;  %v5807_v27 = vmax.f32 %v5775_v5, 0.0  ;;  %v6178_v3 = vrot.slane %v6164_v29, %v10250_v1  ;;  %v6179_v8 = vcombine.high %v6171_v46, %v6171_v46 }
 0x619   : > { %v7532_v34 = vrot.slane %v6171_v46, 9  ;;  %v5780_v37 = vadd.f32 %v10349_v22, %v10238_v50  ;;  %v5778_v45 = vadd.f32 %v10238_v50, %v10354_v33  ;;  %v5781_v35 = vadd.f32 %v10356_v49, %v10238_v50 }
 0x61a   : > { %5841 = vst.msk [vmem:[%s10246_s15 + $0x78] sm:$0xff] %vm379_vm4, %v5809_v18  ;;  %5839 = vst.msk [vmem:[%s10246_s15 + $0x68] sm:$0xff] %vm379_vm4, %v5807_v27  ;;  %v5883_v31 = vsel %vm379_vm4, %v5807_v27, 0.0  ;;  %v5941_v30 = vmul.f32 %v5807_v27, %v5807_v27  ;;  %v6180_v62 = vcombine.high %v6178_v3, %v6178_v3  ;;  %v7533_v14 = vrot.slane %v6179_v8, 9 }
 0x61b   : > { %v7534_v47 = vrot.slane %v6178_v3, 9  ;;  %v6614_v26 = vmax.f32 %v6171_v46, %v7532_v34  ;;  %v5943_v59 = vmul.f32 %v5809_v18, %v5809_v18  ;;  %v5884_v17 = vadd.f32 %v5883_v31, %v5882_v36 }
 0x61c   : > { %v5985_v22 = vsel %vm379_vm4, %v5941_v30, 0.0  ;;  %v6037_v13 = vmax.f32 %v5807_v27, %v5809_v18  ;;  %v7535_v10 = vrot.slane %v6180_v62, 9  ;;  %v6615_v56 = vmax.f32 %v6179_v8, %v7533_v14 }
 0x61d   : > { %v6616_v4 = vmax.f32 %v6178_v3, %v7534_v47  ;;  %v6817_v16 = vrot.slane %v6614_v26, %v10259_v41  ;;  %v5886_v38 = vadd.f32 %v5885_v2, %v5884_v17  ;;  %v5986_v33 = vadd.f32 %v5985_v22, %v5984_v58 }
 0x61e   : > { %v6181_v21 = vcombine.high %v6037_v13, %v6037_v13  ;;  %v6188_v49 = vrot.slane %v6037_v13, %v10250_v1  ;;  %v6617_v7 = vmax.f32 %v6180_v62, %v7535_v10  ;;  %v6821_v12 = vrot.slane %v6615_v56, %v10259_v41 }
 0x61f   : > { %v6825_v48 = vrot.slane %v6616_v4, %v10259_v41  ;;  %v5812_v54 = vmax.f32 %v5780_v37, 0.0  ;;  %v5988_v32 = vadd.f32 %v5987_v20, %v5986_v33  ;;  %v5887_v6 = vsel %vm379_vm4, %v5809_v18, 0.0 }
 0x620   : > { %v6195_v43 = vrot.slane %v6181_v21, %v10250_v1  ;;  %v6196_v36 = vcombine.high %v6188_v49, %v6188_v49  ;;  %v7536_v60 = vrot.slane %v6188_v49, 9  ;;  %v6829_v9 = vrot.slane %v6617_v7, %v10259_v41 }
 0x621   : > { %v7002_v19 = vsel %vm6974_vm8, %v6821_v12, %v6817_v16  ;;  %v5989_v42 = vsel %vm379_vm4, %v5943_v59, 0.0  ;;  %5844 = vst.msk [vmem:[%s10246_s15 + $0x90] sm:$0xff] %vm379_vm4, %v5812_v54  ;;  %v5946_v29 = vmul.f32 %v5812_v54, %v5812_v54  ;;  %v5810_v46 = vmax.f32 %v5778_v45, 0.0 }
 0x622   : > { %v7003_v61 = vsel %vm6976_vm9, %v6825_v48, %v7002_v19  ;;  %v6197_v0 = vcombine.high %v6195_v43, %v6195_v43  ;;  %v7537_v57 = vrot.slane %v6196_v36, 9  ;;  %v7538_v5 = vrot.slane %v6195_v43, 9 }
 0x623   : > { %v6618_v39 = vmax.f32 %v6188_v49, %v7536_v60  ;;  %v7004_v58 = vsel %vm6978_vm10, %v6829_v9, %v7003_v61  ;;  %v5888_v3 = vadd.f32 %v5887_v6, %v5886_v38  ;;  %5842 = vst.msk [vmem:[%s10246_s15 + $0x80] sm:$0xff] %vm379_vm4, %v5810_v46  ;;  %v5889_v8 = vsel %vm379_vm4, %v5810_v46, 0.0 }
 0x624   : > { %v7539_v2 = vrot.slane %v6197_v0, 9  ;;  %v6619_v20 = vmax.f32 %v6196_v36, %v7537_v57  ;;  %v6620_v27 = vmax.f32 %v6195_v43, %v7538_v5  ;;  %v5944_v34 = vmul.f32 %v5810_v46, %v5810_v46 }
 0x625   : > { %v6833_v18 = vrot.slane %v6618_v39, %v10259_v41  ;;  %v5990_v37 = vadd.f32 %v5989_v42, %v5988_v32  ;;  %v5890_v14 = vadd.f32 %v5889_v8, %v5888_v3  ;;  %v6038_v26 = vmax.f32 %v5810_v46, %v5812_v54 }
 0x626   : > { %v6621_v31 = vmax.f32 %v6197_v0, %v7539_v2  ;;  %v6837_v30 = vrot.slane %v6619_v20, %v10259_v41  ;;  %v6841_v62 = vrot.slane %v6620_v27, %v10259_v41  ;;  %v5991_v47 = vsel %vm379_vm4, %v5944_v34, 0.0 }
 0x627   : > { %v7005_v45 = vsel %vm6980_vm11, %v6833_v18, %v7004_v58  ;;  %v5813_v59 = vmax.f32 %v5781_v35, 0.0  ;;  %v5992_v13 = vadd.f32 %v5991_v47, %v5990_v37  ;;  %v5779_v10 = vadd.f32 %v10238_v50, %v10361_v51 }
 0x628   : > { %v6845_v17 = vrot.slane %v6621_v31, %v10259_v41  ;;  %v7006_v22 = vsel %vm6982_vm12, %v6837_v30, %v7005_v45  ;;  %v5893_v4 = vsel %vm379_vm4, %v5812_v54, 0.0  ;;  %v6198_v16 = vcombine.high %v6038_v26, %v6038_v26 }
 0x629   : > { %v7007_v56 = vsel %vm6984_vm13, %v6841_v62, %v7006_v22  ;;  %v6205_v38 = vrot.slane %v6038_v26, %v10250_v1  ;;  %5845 = vst.msk [vmem:[%s10246_s15 + $0x98] sm:$0xff] %vm379_vm4, %v5813_v59  ;;  %v5995_v33 = vsel %vm379_vm4, %v5946_v29, 0.0  ;;  %v5947_v21 = vmul.f32 %v5813_v59, %v5813_v59 }
 0x62a   : > { %v7008_v35 = vsel %vm6986_vm14, %v6845_v17, %v7007_v56  ;;  %v5811_v49 = vmax.f32 %v5779_v10, 0.0  ;;  %v6212_v7 = vrot.slane %v6198_v16, %v10250_v1  ;;  %v5784_v48 = vadd.f32 %v10375_v28, %v10238_v50 }
 0x62b   : > { %7048 = vst.msk [vmem:[%s10305_s18 + $0x18] sm:$0xff] %vm379_vm4, %v7008_v35  ;;  %v6213_v51 = vcombine.high %v6205_v38, %v6205_v38  ;;  %v7540_v12 = vrot.slane %v6205_v38, 9  ;;  %v5782_v36 = vadd.f32 %v10238_v50, %v10381_v53  ;;  %v5997_v10 = vsel %vm379_vm4, %v5947_v21, 0.0 }
 0x62c   : > { %5843 = vst.msk [vmem:[%s10246_s15 + $0x88] sm:$0xff] %vm379_vm4, %v5811_v49  ;;  %v5891_v54 = vsel %vm379_vm4, %v5811_v49, 0.0  ;;  %v5945_v32 = vmul.f32 %v5811_v49, %v5811_v49  ;;  %v6039_v43 = vmax.f32 %v5811_v49, %v5813_v59  ;;  %v6214_v60 = vcombine.high %v6212_v7, %v6212_v7 }
 0x62d   : > { %v7541_v9 = vrot.slane %v6213_v51, 9  ;;  %v7542_v19 = vrot.slane %v6212_v7, 9  ;;  %v6622_v6 = vmax.f32 %v6205_v38, %v7540_v12  ;;  %v5892_v42 = vadd.f32 %v5891_v54, %v5890_v14 }
 0x62e   : > { %v5993_v61 = vsel %vm379_vm4, %v5945_v32, 0.0  ;;  %v6215_v0 = vcombine.high %v6039_v43, %v6039_v43  ;;  %v6222_v57 = vrot.slane %v6039_v43, %v10250_v1  ;;  %v7543_v28 = vrot.slane %v6214_v60, 9 }
 0x62f   : > { %v6623_v5 = vmax.f32 %v6213_v51, %v7541_v9  ;;  %v6624_v39 = vmax.f32 %v6212_v7, %v7542_v19  ;;  %v6849_v58 = vrot.slane %v6622_v6, %v10259_v41  ;;  %v5894_v29 = vadd.f32 %v5893_v4, %v5892_v42 }
 0x630   : > { %v5994_v46 = vadd.f32 %v5993_v61, %v5992_v13  ;;  %v6229_v2 = vrot.slane %v6215_v0, %v10250_v1  ;;  %v6230_v53 = vcombine.high %v6222_v57, %v6222_v57  ;;  %v6625_v20 = vmax.f32 %v6214_v60, %v7543_v28 }
 0x631   : > { %v6853_v27 = vrot.slane %v6623_v5, %v10259_v41  ;;  %v6857_v3 = vrot.slane %v6624_v39, %v10259_v41  ;;  %v7544_v18 = vrot.slane %v6222_v57, 9  ;;  %v5816_v45 = vmax.f32 %v5784_v48, 0.0 }
 0x632   : > { %v5996_v8 = vadd.f32 %v5995_v33, %v5994_v46  ;;  %v6231_v34 = vcombine.high %v6229_v2, %v6229_v2  ;;  %v7545_v37 = vrot.slane %v6230_v53, 9  ;;  %v7546_v31 = vrot.slane %v6229_v2, 9 }
 0x633   : > { %v6861_v30 = vrot.slane %v6625_v20, %v10259_v41  ;;  %v7009_v62 = vsel %vm6974_vm8, %v6853_v27, %v6849_v58  ;;  %v6626_v14 = vmax.f32 %v6222_v57, %v7544_v18  ;;  %v5895_v13 = vsel %vm379_vm4, %v5813_v59, 0.0  ;;  %5848 = vst.msk [vmem:[%s10246_s15 + $0xb0] sm:$0xff] %vm379_vm4, %v5816_v45 }
 0x634   : > { %v7010_v47 = vsel %vm6976_vm9, %v6857_v3, %v7009_v62  ;;  %v7547_v26 = vrot.slane %v6231_v34, 9  ;;  %v6627_v17 = vmax.f32 %v6230_v53, %v7545_v37  ;;  %v6628_v22 = vmax.f32 %v6229_v2, %v7546_v31 }
 0x635   : > { %v6865_v56 = vrot.slane %v6626_v14, %v10259_v41  ;;  %v7011_v4 = vsel %vm6978_vm10, %v6861_v30, %v7010_v47  ;;  %v5950_v35 = vmul.f32 %v5816_v45, %v5816_v45  ;;  %v5814_v33 = vmax.f32 %v5782_v36, 0.0 }
 0x636   : > { %v6629_v16 = vmax.f32 %v6231_v34, %v7547_v26  ;;  %v6869_v38 = vrot.slane %v6627_v17, %v10259_v41  ;;  %v6873_v49 = vrot.slane %v6628_v22, %v10259_v41  ;;  %v5896_v51 = vadd.f32 %v5895_v13, %v5894_v29 }
 0x637   : > { %v7012_v7 = vsel %vm6980_vm11, %v6865_v56, %v7011_v4  ;;  %v5998_v59 = vadd.f32 %v5997_v10, %v5996_v8  ;;  %5846 = vst.msk [vmem:[%s10246_s15 + $0xa0] sm:$0xff] %vm379_vm4, %v5814_v33  ;;  %v5897_v48 = vsel %vm379_vm4, %v5814_v33, 0.0  ;;  %v5948_v54 = vmul.f32 %v5814_v33, %v5814_v33 }
 0x638   : > { %v6877_v21 = vrot.slane %v6629_v16, %v10259_v41  ;;  %v7013_v12 = vsel %vm6982_vm12, %v6869_v38, %v7012_v7  ;;  %v5898_v43 = vadd.f32 %v5897_v48, %v5896_v51  ;;  %v6040_v36 = vmax.f32 %v5814_v33, %v5816_v45 }
 0x639   : > { %v7014_v32 = vsel %vm6984_vm13, %v6873_v49, %v7013_v12  ;;  %v5785_v60 = vadd.f32 %v10388_v24, %v10238_v50  ;;  %v5999_v19 = vsel %vm379_vm4, %v5948_v54, 0.0  ;;  %v5783_v6 = vadd.f32 %v10238_v50, %v10396_v63 }
 0x63a   : > { %v7015_v9 = vsel %vm6986_vm14, %v6877_v21, %v7014_v32  ;;  %v5788_v42 = vadd.f32 %v10415_v25, %v10238_v50  ;;  %v6000_v61 = vadd.f32 %v5999_v19, %v5998_v59  ;;  %v6232_v0 = vcombine.high %v6040_v36, %v6040_v36 }
 0x63b   : > { %7049 = vst.msk [vmem:[%s10305_s18 + $0x20] sm:$0xff] %vm379_vm4, %v7015_v9  ;;  %v6239_v57 = vrot.slane %v6040_v36, %v10250_v1  ;;  %v5817_v24 = vmax.f32 %v5785_v60, 0.0  ;;  %v5901_v28 = vsel %vm379_vm4, %v5816_v45, 0.0  ;;  %v6003_v5 = vsel %vm379_vm4, %v5950_v35, 0.0 }
 0x63c   : > { %v5815_v39 = vmax.f32 %v5783_v6, 0.0  ;;  %v10556_v58 = vmax.f32 %v5788_v42, 0.0  ;;  %v6246_v63 = vrot.slane %v6232_v0, %v10250_v1  ;;  %v5786_v25 = vadd.f32 %v10238_v50, %v10418_v52 }
 0x63d   : > { %v6247_v29 = vcombine.high %v6239_v57, %v6239_v57  ;;  %v7548_v46 = vrot.slane %v6239_v57, 9  ;;  %5849 = vst.msk [vmem:[%s10246_s15 + $0xb8] sm:$0xff] %vm379_vm4, %v5817_v24  ;;  %v5789_v27 = vadd.f32 %v10421_v23, %v10238_v50  ;;  %v5903_v37 = vsel %vm379_vm4, %v5817_v24, 0.0 }
 0x63e   : > { %5847 = vst.msk [vmem:[%s10246_s15 + $0xa8] sm:$0xff] %vm379_vm4, %v5815_v39  ;;  %v5899_v2 = vsel %vm379_vm4, %v5815_v39, 0.0  ;;  %v5949_v53 = vmul.f32 %v5815_v39, %v5815_v39  ;;  %v6041_v20 = vmax.f32 %v5815_v39, %v5817_v24  ;;  %5852 = vst.msk [vmem:[%s10246_s15 + $0xd0] sm:$0xff] %vm379_vm4, %v10556_v58  ;;  %v6248_v3 = vcombine.high %v6246_v63, %v6246_v63 }
 0x63f   : > { %v7549_v18 = vrot.slane %v6247_v29, 9  ;;  %v7550_v8 = vrot.slane %v6246_v63, 9  ;;  %v6630_v34 = vmax.f32 %v6239_v57, %v7548_v46  ;;  %v5900_v31 = vadd.f32 %v5899_v2, %v5898_v43 }
 0x640   : > { %v6001_v52 = vsel %vm379_vm4, %v5949_v53, 0.0  ;;  %v6249_v30 = vcombine.high %v6041_v20, %v6041_v20  ;;  %v7551_v62 = vrot.slane %v6248_v3, 9  ;;  %v5951_v47 = vmul.f32 %v5817_v24, %v5817_v24 }
 0x641   : > { %v6631_v14 = vmax.f32 %v6247_v29, %v7549_v18  ;;  %v6632_v45 = vmax.f32 %v6246_v63, %v7550_v8  ;;  %v5902_v26 = vadd.f32 %v5901_v28, %v5900_v31  ;;  %v6002_v17 = vadd.f32 %v6001_v52, %v6000_v61 }
 0x642   : > { %v6256_v22 = vrot.slane %v6041_v20, %v10250_v1  ;;  %v6263_v23 = vrot.slane %v6249_v30, %v10250_v1  ;;  %v6633_v13 = vmax.f32 %v6248_v3, %v7551_v62  ;;  %v6881_v10 = vrot.slane %v6630_v34, %v10259_v41  ;;  %v10601_v3 = vld [vmem:[%s10708_s4] ss:$0 sm:$0xff] }
 0x643   : > { %v6885_v56 = vrot.slane %v6631_v14, %v10259_v41  ;;  %v6889_v4 = vrot.slane %v6632_v45, %v10259_v41  ;;  %v6004_v16 = vadd.f32 %v6003_v5, %v6002_v17  ;;  %v6005_v51 = vsel %vm379_vm4, %v5951_v47, 0.0 }
 0x644   : > { %v6264_v38 = vcombine.high %v6256_v22, %v6256_v22  ;;  %v6265_v35 = vcombine.high %v6263_v23, %v6263_v23  ;;  %v7552_v33 = vrot.slane %v6256_v22, 9  ;;  %v6893_v49 = vrot.slane %v6633_v13, %v10259_v41 }
 0x645   : > { %v7016_v7 = vsel %vm6974_vm8, %v6885_v56, %v6881_v10  ;;  %v7554_v59 = vrot.slane %v6263_v23, 9  ;;  %v5954_v36 = vmul.f32 %v10556_v58, %v10556_v58  ;;  %v5818_v60 = vmax.f32 %v5786_v25, 0.0 }
 0x646   : > { %v7017_v21 = vsel %vm6976_vm9, %v6889_v4, %v7016_v7  ;;  %v7553_v12 = vrot.slane %v6264_v38, 9  ;;  %v7555_v48 = vrot.slane %v6265_v35, 9  ;;  %v6634_v54 = vmax.f32 %v6256_v22, %v7552_v33 }
 0x647   : > { %v6636_v32 = vmax.f32 %v6263_v23, %v7554_v59  ;;  %v7018_v43 = vsel %vm6978_vm10, %v6893_v49, %v7017_v21  ;;  %v5904_v42 = vadd.f32 %v5903_v37, %v5902_v26  ;;  %5850 = vst.msk [vmem:[%s10246_s15 + $0xc0] sm:$0xff] %vm379_vm4, %v5818_v60  ;;  %v5905_v0 = vsel %vm379_vm4, %v5818_v60, 0.0 }
 0x648   : > { %v6635_v9 = vmax.f32 %v6264_v38, %v7553_v12  ;;  %v6637_v19 = vmax.f32 %v6265_v35, %v7555_v48  ;;  %v6897_v6 = vrot.slane %v6634_v54, %v10259_v41  ;;  %v5952_v57 = vmul.f32 %v5818_v60, %v5818_v60 }
 0x649   : > { %v6905_v61 = vrot.slane %v6636_v32, %v10259_v41  ;;  %v6006_v24 = vadd.f32 %v6005_v51, %v6004_v16  ;;  %v5906_v63 = vadd.f32 %v5905_v0, %v5904_v42  ;;  %v6042_v46 = vmax.f32 %v5818_v60, %v10556_v58 }
 0x64a   : > { %v6901_v28 = vrot.slane %v6635_v9, %v10259_v41  ;;  %v6909_v5 = vrot.slane %v6637_v19, %v10259_v41  ;;  %v7019_v39 = vsel %vm6980_vm11, %v6897_v6, %v7018_v43  ;;  %v6007_v29 = vsel %vm379_vm4, %v5952_v57, 0.0 }
 0x64b   : > { %v5821_v25 = vmax.f32 %v5789_v27, 0.0  ;;  %v5787_v2 = vadd.f32 %v10238_v50, %v10425_v40  ;;  %v6008_v20 = vadd.f32 %v6007_v29, %v6006_v24  ;;  %v5792_v18 = vadd.f32 %v10601_v3, %v10438_v55 }
 0x64c   : > { %v7020_v53 = vsel %vm6982_vm12, %v6901_v28, %v7019_v39  ;;  %v5790_v8 = vadd.f32 %v10601_v3, %v10442_v15  ;;  %v5909_v50 = vsel %vm379_vm4, %v10556_v58, 0.0  ;;  %v6266_v40 = vcombine.high %v6042_v46, %v6042_v46 }
 0x64d   : > { %v7021_v27 = vsel %vm6984_vm13, %v6905_v61, %v7020_v53  ;;  %v6273_v34 = vrot.slane %v6042_v46, %v10250_v1  ;;  %5853 = vst.msk [vmem:[%s10246_s15 + $0xd8] sm:$0xff] %vm379_vm4, %v5821_v25  ;;  %v6011_v31 = vsel %vm379_vm4, %v5954_v36, 0.0  ;;  %v5819_v55 = vmax.f32 %v5787_v2, 0.0 }
 0x64e   : > { %v7022_v37 = vsel %vm6986_vm14, %v6909_v5, %v7021_v27  ;;  %v10615_v52 = vmax.f32 %v5792_v18, 0.0  ;;  %v6280_v15 = vrot.slane %v6266_v40, %v10250_v1  ;;  %v5822_v62 = vmax.f32 %v5790_v8, 0.0 }
 0x64f   : > { %7050 = vst.msk [vmem:[%s10305_s18 + $0x28] sm:$0xff] %vm379_vm4, %v7022_v37  ;;  %v6281_v30 = vcombine.high %v6273_v34, %v6273_v34  ;;  %v7556_v58 = vrot.slane %v6273_v34, 9  ;;  %v5955_v14 = vmul.f32 %v5821_v25, %v5821_v25  ;;  %5851 = vst.msk [vmem:[%s10246_s15 + $0xc8] sm:$0xff] %vm379_vm4, %v5819_v55  ;;  %v5907_v45 = vsel %vm379_vm4, %v5819_v55, 0.0 }
 0x650   : > { %v5953_v47 = vmul.f32 %v5819_v55, %v5819_v55  ;;  %v6043_v26 = vmax.f32 %v5819_v55, %v5821_v25  ;;  %5856 = vst.msk [vmem:[%s10246_s15 + $0xf0] sm:$0xff] %vm379_vm4, %v10615_v52  ;;  %v6282_v17 = vcombine.high %v6280_v15, %v6280_v15  ;;  %v7558_v23 = vrot.slane %v6280_v15, 9  ;;  %5854 = vst.msk [vmem:[%s10246_s15 + $0xe0] sm:$0xff] %vm379_vm4, %v5822_v62 }
 0x651   : > { %v7557_v22 = vrot.slane %v6281_v30, 9  ;;  %v6638_v13 = vmax.f32 %v6273_v34, %v7556_v58  ;;  %v5908_v10 = vadd.f32 %v5907_v45, %v5906_v63  ;;  %v5911_v42 = vsel %vm379_vm4, %v5821_v25, 0.0 }
 0x652   : > { %v6009_v56 = vsel %vm379_vm4, %v5953_v47, 0.0  ;;  %v6283_v4 = vcombine.high %v6043_v26, %v6043_v26  ;;  %v6290_v16 = vrot.slane %v6043_v26, %v10250_v1  ;;  %v7559_v38 = vrot.slane %v6282_v17, 9 }
 0x653   : > { %v6639_v35 = vmax.f32 %v6281_v30, %v7557_v22  ;;  %v6640_v33 = vmax.f32 %v6280_v15, %v7558_v23  ;;  %v6913_v49 = vrot.slane %v6638_v13, %v10259_v41  ;;  %v5910_v7 = vadd.f32 %v5909_v50, %v5908_v10 }
 0x654   : > { %v6010_v51 = vadd.f32 %v6009_v56, %v6008_v20  ;;  %v6297_v59 = vrot.slane %v6283_v4, %v10250_v1  ;;  %v6298_v21 = vcombine.high %v6290_v16, %v6290_v16  ;;  %v6641_v12 = vmax.f32 %v6282_v17, %v7559_v38 }
 0x655   : > { %v6917_v48 = vrot.slane %v6639_v35, %v10259_v41  ;;  %v6921_v54 = vrot.slane %v6640_v33, %v10259_v41  ;;  %v7560_v32 = vrot.slane %v6290_v16, 9  ;;  %v6013_v5 = vsel %vm379_vm4, %v5955_v14, 0.0 }
 0x656   : > { %v6012_v43 = vadd.f32 %v6011_v31, %v6010_v51  ;;  %v6299_v36 = vcombine.high %v6297_v59, %v6297_v59  ;;  %v7561_v60 = vrot.slane %v6298_v21, 9  ;;  %v7562_v9 = vrot.slane %v6297_v59, 9 }
 0x657   : > { %v6925_v19 = vrot.slane %v6641_v12, %v10259_v41  ;;  %v7023_v6 = vsel %vm6974_vm8, %v6917_v48, %v6913_v49  ;;  %v6642_v61 = vmax.f32 %v6290_v16, %v7560_v32  ;;  %v5912_v29 = vadd.f32 %v5911_v42, %v5910_v7 }
 0x658   : > { %v7024_v0 = vsel %vm6976_vm9, %v6921_v54, %v7023_v6  ;;  %v7563_v57 = vrot.slane %v6299_v36, 9  ;;  %v6643_v24 = vmax.f32 %v6298_v21, %v7561_v60  ;;  %v6644_v28 = vmax.f32 %v6297_v59, %v7562_v9 }
 0x659   : > { %v6929_v39 = vrot.slane %v6642_v61, %v10259_v41  ;;  %v7025_v63 = vsel %vm6978_vm10, %v6925_v19, %v7024_v0  ;;  %v5958_v53 = vmul.f32 %v10615_v52, %v10615_v52  ;;  %v5913_v25 = vsel %vm379_vm4, %v5822_v62, 0.0 }
 0x65a   : > { %v6645_v46 = vmax.f32 %v6299_v36, %v7563_v57  ;;  %v6933_v2 = vrot.slane %v6643_v24, %v10259_v41  ;;  %v6937_v20 = vrot.slane %v6644_v28, %v10259_v41  ;;  %v5914_v8 = vadd.f32 %v5913_v25, %v5912_v29 }
 0x65b   : > { %v7026_v18 = vsel %vm6980_vm11, %v6929_v39, %v7025_v63  ;;  %v5956_v27 = vmul.f32 %v5822_v62, %v5822_v62  ;;  %v6014_v34 = vadd.f32 %v6013_v5, %v6012_v43  ;;  %v6044_v37 = vmax.f32 %v5822_v62, %v10615_v52 }
 0x65c   : > { %v6941_v50 = vrot.slane %v6645_v46, %v10259_v41  ;;  %v7027_v40 = vsel %vm6982_vm12, %v6933_v2, %v7026_v18  ;;  %v5793_v15 = vadd.f32 %v10601_v3, %v10447_v44  ;;  %v5791_v30 = vadd.f32 %v10601_v3, %v10455_v11 }
 0x65d   : > { %v7028_v31 = vsel %vm6984_vm13, %v6937_v20, %v7027_v40  ;;  %v6015_v55 = vsel %vm379_vm4, %v5956_v27, 0.0  ;;  %v6300_v45 = vcombine.high %v6044_v37, %v6044_v37  ;;  %v6307_v47 = vrot.slane %v6044_v37, %v10250_v1 }
 0x65e   : > { %v7029_v58 = vsel %vm6986_vm14, %v6941_v50, %v7028_v31  ;;  %v6016_v14 = vadd.f32 %v6015_v55, %v6014_v34  ;;  %v5825_v62 = vmax.f32 %v5793_v15, 0.0  ;;  %v5823_v26 = vmax.f32 %v5791_v30, 0.0 }
 0x65f   : > { %7051 = vst.msk [vmem:[%s10305_s18 + $0x30] sm:$0xff] %vm379_vm4, %v7029_v58  ;;  %v6314_v17 = vrot.slane %v6300_v45, %v10250_v1  ;;  %v6315_v22 = vcombine.high %v6307_v47, %v6307_v47  ;;  %v7564_v23 = vrot.slane %v6307_v47, 9  ;;  %v5917_v44 = vsel %vm379_vm4, %v10615_v52, 0.0 }
 0x660   : > { %v6019_v13 = vsel %vm379_vm4, %v5958_v53, 0.0  ;;  %5857 = vst.msk [vmem:[%s10246_s15 + $0xf8] sm:$0xff] %vm379_vm4, %v5825_v62  ;;  %5855 = vst.msk [vmem:[%s10246_s15 + $0xe8] sm:$0xff] %vm379_vm4, %v5823_v26  ;;  %v5915_v11 = vsel %vm379_vm4, %v5823_v26, 0.0  ;;  %v5957_v3 = vmul.f32 %v5823_v26, %v5823_v26  ;;  %v5919_v38 = vsel %vm379_vm4, %v5825_v62, 0.0 }
 0x661   : > { %v6316_v10 = vcombine.high %v6314_v17, %v6314_v17  ;;  %v7565_v56 = vrot.slane %v6315_v22, 9  ;;  %v7566_v4 = vrot.slane %v6314_v17, 9  ;;  %v6646_v16 = vmax.f32 %v6307_v47, %v7564_v23 }
 0x662   : > { %v5916_v35 = vadd.f32 %v5915_v11, %v5914_v8  ;;  %v6017_v33 = vsel %vm379_vm4, %v5957_v3, 0.0  ;;  %v6045_v49 = vmax.f32 %v5823_v26, %v5825_v62  ;;  %v5959_v59 = vmul.f32 %v5825_v62, %v5825_v62 }
 0x663   : > { %v7567_v52 = vrot.slane %v6316_v10, 9  ;;  %v6647_v7 = vmax.f32 %v6315_v22, %v7565_v56  ;;  %v6648_v51 = vmax.f32 %v6314_v17, %v7566_v4  ;;  %v6018_v12 = vadd.f32 %v6017_v33, %v6016_v14 }
 0x664   : > { %v5918_v21 = vadd.f32 %v5917_v44, %v5916_v35  ;;  %v6317_v48 = vcombine.high %v6045_v49, %v6045_v49  ;;  %v6324_v54 = vrot.slane %v6045_v49, %v10250_v1  ;;  %v6945_v43 = vrot.slane %v6646_v16, %v10259_v41 }
 0x665   : > { %v6649_v32 = vmax.f32 %v6316_v10, %v7567_v52  ;;  %v6949_v36 = vrot.slane %v6647_v7, %v10259_v41  ;;  %v6953_v60 = vrot.slane %v6648_v51, %v10259_v41  ;;  %v6020_v19 = vadd.f32 %v6019_v13, %v6018_v12 }
 0x666   : > { %v5920_v9 = vadd.f32 %v5919_v38, %v5918_v21  ;;  %v6331_v6 = vrot.slane %v6317_v48, %v10250_v1  ;;  %v6332_v42 = vcombine.high %v6324_v54, %v6324_v54  ;;  %v6021_v57 = vsel %vm379_vm4, %v5959_v59, 0.0 }
 0x667   : > { %v6957_v61 = vrot.slane %v6649_v32, %v10259_v41  ;;  %v7030_v0 = vsel %vm6974_vm8, %v6949_v36, %v6945_v43  ;;  %v7568_v24 = vrot.slane %v6324_v54, 9  ;;  %v6022_v39 = vadd.f32 %v6021_v57, %v6020_v19 }
 0x668   : > { %v7031_v28 = vsel %vm6976_vm9, %v6953_v60, %v7030_v0  ;;  %v5921_v5 = vrot.slane %v5920_v9, 4  ;;  %v6333_v63 = vcombine.high %v6331_v6, %v6331_v6  ;;  %v7569_v29 = vrot.slane %v6332_v42, 9 }
 0x669   : > { %v7570_v46 = vrot.slane %v6331_v6, 9  ;;  %v6650_v2 = vmax.f32 %v6324_v54, %v7568_v24  ;;  %v6023_v25 = vrot.slane %v6022_v39, 4  ;;  %v7032_v1 = vsel %vm6978_vm10, %v6957_v61, %v7031_v28 }
 0x66a   : > { %v5922_v53 = vadd.f32 %v5921_v5, %v5920_v9  ;;  %v7571_v20 = vrot.slane %v6333_v63, 9  ;;  %v6651_v18 = vmax.f32 %v6332_v42, %v7569_v29 }
 0x66b   : > { %v6652_v8 = vmax.f32 %v6331_v6, %v7570_v46  ;;  %v6961_v27 = vrot.slane %v6650_v2, %v10259_v41  ;;  %v6024_v40 = vadd.f32 %v6023_v25, %v6022_v39 }
 0x66c   : > { %v5923_v50 = vrot.slane %v5922_v53, 2  ;;  %v6653_v34 = vmax.f32 %v6333_v63, %v7571_v20  ;;  %v6965_v37 = vrot.slane %v6651_v18, %v10259_v41 }
 0x66d   : > { %v7033_v31 = vsel %vm6980_vm11, %v6961_v27, %v7032_v1  ;;  %v6025_v15 = vrot.slane %v6024_v40, 2  ;;  %v6969_v30 = vrot.slane %v6652_v8, %v10259_v41 }
 0x66e   : > { %v5924_v55 = vadd.f32 %v5923_v50, %v5922_v53  ;;  %v6973_v58 = vrot.slane %v6653_v34, %v10259_v41  ;;  %v7034_v14 = vsel %vm6982_vm12, %v6965_v37, %v7033_v31 }
 0x66f   : > { %v6026_v47 = vadd.f32 %v6025_v15, %v6024_v40  ;;  %v7035_v62 = vsel %vm6984_vm13, %v6969_v30, %v7034_v14 }
 0x670   : > { %v5925_v45 = vrot.slane %v5924_v55, 1  ;;  %v7036_v26 = vsel %vm6986_vm14, %v6973_v58, %v7035_v62 }
 0x671   : > { %v6027_v22 = vrot.slane %v6026_v47, 1  ;;  %7052 = vst.msk [vmem:[%s10305_s18 + $0x38] sm:$0xff] %vm379_vm4, %v7036_v26 }
 0x672   : > { %v5926_v17 = vadd.f32 %v5925_v45, %v5924_v55 }
 0x673   : > { %v6028_v41 = vadd.f32 %v6027_v22, %v6026_v47 }
 0x674   : > { %5927 = vst.msk [vmem:[%s331_s23] sm:$0x1] %vm389_vm5, %v5926_v17 }
 0x675   : > { %6029 = vst.msk [vmem:[%s334_s26] sm:$0x1] %vm389_vm5, %v6028_v41 }
 0x676 PF: > { %s19_s27 = sadd.s32 1, %s9042_s27  }
 0x677   : > { %p16_p4 = scmp.ge.s32.totalorder %s19_s27, 4  }
 0x679   :  { %18 = sbr.rel (!%p16_p4) target bundleno = 1 (0x1), region = 128 }

</bundles_post_ra>
